<compile_context>
chip_gen: v7x
topology: tpu7x:2x2x1
jax: 0.10.0
libtpu: 0.0.40
codegen_flags: <defaults>
</compile_context>

<pallas_src>
import math

import jax
import jax.numpy as jnp
from jax import lax
from jax.experimental import pallas as pl
from jax.experimental.pallas import tpu as pltpu

GROUPS = 32      # normalization(channels) == GroupNorm32(32, channels)
EPS = 1e-5       # torch GroupNorm default eps


def _attention_block_kernel(num_heads, channels, seq_len, tq):
    C = channels
    T = seq_len
    ch = C // num_heads
    gs = C // GROUPS
    inv_gn = 1.0 / float(gs * T)
    n_qt = T // tq

    def kernel(x_ref, gamma_ref, beta_ref, agc_ref, acg_ref, wqkv_ref, bqkv_ref,
               wprojT_ref, bproj_ref, o_ref, qkv_ref, a_ref):
        x = x_ref[0].astype(jnp.float32)                         # (C, T)

        # ---- GroupNorm(32, C): lane-reduce over T first, then tiny (G,C)/(C,G)
        #      indicator matmuls (precomputed in the wrapper) for the group sums.
        s_c = jnp.sum(x, axis=1, keepdims=True)                  # (C, 1)
        g_mean = jnp.dot(agc_ref[...], s_c,
                         preferred_element_type=jnp.float32) * inv_gn
        mean_c = jnp.dot(acg_ref[...], g_mean,
                         preferred_element_type=jnp.float32)     # (C, 1)
        d = x - mean_c
        # Centered (two-pass) variance: avoids E[x^2]-E[x]^2 cancellation.
        dss_c = jnp.sum(d * d, axis=1, keepdims=True)            # (C, 1)
        g_var = jnp.dot(agc_ref[...], dss_c,
                        preferred_element_type=jnp.float32) * inv_gn
        var_c = jnp.dot(acg_ref[...], g_var,
                        preferred_element_type=jnp.float32)      # (C, 1)
        gscale = gamma_ref[...] * lax.rsqrt(var_c + EPS)         # gamma folded in
        xn = (d * gscale + beta_ref[...]).astype(jnp.bfloat16)   # (C, T) bf16

        # ---- qkv: Conv1d(C, 3C, 1) as bf16 matmul with f32 accumulation.
        #      Bias add in f32, single cast into the bf16 scratch. The q-scale
        #      is already folded into the q rows of wqkv/bqkv by the wrapper.
        qkv_ref[...] = (jnp.dot(wqkv_ref[...], xn,
                                preferred_element_type=jnp.float32)
                        + bqkv_ref[...]).astype(jnp.bfloat16)    # (3C, T) bf16

        # ---- per-head attention, statically unrolled; query-axis tiled so the
        #      softmax temporaries are bounded to (tq, T) slabs.
        # TODO(synk): for T so large that the bf16 qkv/a scratch itself no
        # longer fits VMEM, additionally tile the key axis (flash-style
        # online softmax).
        for h in range(num_heads):
            base = h * 3 * ch
            k = qkv_ref[base + ch:base + 2 * ch, :]              # (ch, T) bf16
            v = qkv_ref[base + 2 * ch:base + 3 * ch, :]          # (ch, T) bf16
            for qi in range(n_qt):
                q = qkv_ref[base:base + ch, qi * tq:(qi + 1) * tq]   # (ch, tq)
                # logits[t, s] = sum_c q[c, t] * k[c, s]  (no explicit transposes)
                logits = lax.dot_general(
                    q, k, dimension_numbers=(((0,), (0,)), ((), ())),
                    preferred_element_type=jnp.float32)          # (tq, T) f32
                m = jnp.max(logits, axis=-1, keepdims=True)
                p = jnp.exp(logits - m)
                l = jnp.sum(p, axis=-1, keepdims=True)
                probs = (p * pl.reciprocal(l, approx=True)).astype(jnp.bfloat16)
                # a[c, t] = sum_s probs[t, s] * v[c, s]
                a = lax.dot_general(
                    v, probs, dimension_numbers=(((1,), (1,)), ((), ())),
                    preferred_element_type=jnp.float32)          # (ch, tq) f32
                a_ref[h * ch:(h + 1) * ch,
                      qi * tq:(qi + 1) * tq] = a.astype(jnp.bfloat16)

        # ---- proj_out: ONE matmul over the full K=C contraction, then bias +
        #      residual. x is re-read here so it is not live across the heads.
        hproj = lax.dot_general(
            wprojT_ref[...], a_ref[...],
            dimension_numbers=(((0,), (0,)), ((), ())),
            preferred_element_type=jnp.float32)                  # (C, T) f32
        o_ref[0] = (x_ref[0].astype(jnp.float32) + hproj
                    + bproj_ref[...]).astype(o_ref.dtype)

    return kernel


def _vmem_estimate(C, T, tq):
    """Approximate scoped-VMEM bytes for one grid step."""
    f32, bf16 = 4, 2
    resident = (
        4 * C * T * f32                           # x + out blocks, double-buffered
        + 2 * (2 * GROUPS * C * f32)              # GN indicator matrices
        + 2 * (2 * C * f32)                       # gamma + beta
        + 2 * (3 * C * C * bf16 + 3 * C * f32)    # qkv weights (bf16) + bias
        + 2 * (C * C * bf16 + C * f32)            # proj weights (bf16) + bias
        + 3 * C * T * bf16                        # qkv scratch (bf16)
        + C * T * bf16                            # attention staging scratch (bf16)
    )
    phase_peak = max(
        3 * C * T * f32 + C * T * bf16,           # qkv conv: f32 acc + bf16 xn
        3 * tq * T * f32 + 2 * C * T * f32,       # softmax slabs + misc f32 temps
    )
    return resident + phase_peak


def attention_block_forward(x, params, num_heads):
    """x: (B, C, H, W) float32 -> (B, C, H, W) float32."""
    B, C, H, W = x.shape
    T = H * W
    assert C % GROUPS == 0, "GroupNorm32 requires channels % 32 == 0"
    assert C % num_heads == 0, "channels must be divisible by num_heads"
    ch = C // num_heads
    assert ch % 8 == 0, "head channels must be sublane-aligned (multiple of 8)"
    # Full attention scale (scale*scale == 1/sqrt(ch)) is applied once to q;
    # f32 accumulation makes the legacy split-scale trick unnecessary.
    qscale = 1.0 / math.sqrt(ch)

    xf = x.reshape(B, C, T)

    gamma = params["gn_gamma"].reshape(C, 1).astype(jnp.float32)
    beta = params["gn_beta"].reshape(C, 1).astype(jnp.float32)

    # GroupNorm group-indicator matrices, precomputed once in the wrapper.
    grp_of_chan = jnp.arange(C, dtype=jnp.int32) // (C // GROUPS)
    agc = (jnp.arange(GROUPS, dtype=jnp.int32)[:, None]
           == grp_of_chan[None, :]).astype(jnp.float32)          # (G, C)
    acg = agc.T                                                  # (C, G)

    # qkv conv weights: fold the attention q-scale into the q rows. Legacy head
    # layout: rows [h*3*ch, h*3*ch + ch) are q for head h.
    row = jnp.arange(3 * C)
    is_q_row = (row % (3 * ch)) < ch
    row_scale = jnp.where(is_q_row, qscale, 1.0).astype(jnp.float32)
    wqkv = (params["qkv_w"].astype(jnp.float32)
            * row_scale[:, None]).astype(jnp.bfloat16)           # (3C, C) bf16
    bqkv = (params["qkv_b"].astype(jnp.float32) * row_scale).reshape(3 * C, 1)

    wprojT = params["proj_w"].T.astype(jnp.bfloat16)             # (C_in, C_out)
    bproj = params["proj_b"].reshape(C, 1).astype(jnp.float32)

    # Generation-aware VMEM budget (v7x: 64 MiB, v5e/v6e: 128 MiB) and a
    # query-tile size that keeps the (tq, T) softmax slabs inside it.
    try:
        vmem_cap = int(pltpu.get_tpu_info().vmem_capacity_bytes)
    except Exception:
        vmem_cap = 64 * 2**20                 # v7x-safe fallback
    cap = vmem_cap - vmem_cap // 8            # leave headroom for the compiler
    if T <= 512:
        tq = T
    else:
        tq = next((c for c in (512, 256, 128) if T % c == 0), T)
    while _vmem_estimate(C, T, tq) > cap and tq % 16 == 0 and tq > 128:
        tq //= 2
    est = _vmem_estimate(C, T, tq)
    assert est <= cap, (
        f"AttentionBlock kernel needs ~{est / 2**20:.1f} MiB VMEM but only "
        f"{cap / 2**20:.1f} MiB is available; key-axis (flash) tiling needed.")
    vmem_limit = min(max(int(est * 1.25), 32 * 2**20), cap)

    def full(shape):
        zeros = (0,) * len(shape)
        return pl.BlockSpec(shape, lambda b, _z=zeros: _z)

    out = pl.pallas_call(
        _attention_block_kernel(num_heads, C, T, tq),
        out_shape=jax.ShapeDtypeStruct((B, C, T), x.dtype),
        grid_spec=pltpu.PrefetchScalarGridSpec(
            num_scalar_prefetch=0,
            grid=(B,),
            in_specs=[
                pl.BlockSpec((1, C, T), lambda b: (b, 0, 0)),    # x
                full((C, 1)), full((C, 1)),                      # gamma, beta
                full((GROUPS, C)), full((C, GROUPS)),            # GN indicators
                full((3 * C, C)), full((3 * C, 1)),              # qkv w (bf16), b
                full((C, C)), full((C, 1)),                      # proj w^T (bf16), b
            ],
            out_specs=pl.BlockSpec((1, C, T), lambda b: (b, 0, 0)),
            scratch_shapes=[
                pltpu.VMEM((3 * C, T), jnp.bfloat16),            # qkv (bf16)
                pltpu.VMEM((C, T), jnp.bfloat16),                # per-head attn out
            ],
        ),
        # TODO(synk): on v7x (2 TCs) grid=(B,) only engages the second core
        # when B >= 2; if B == 1 is common, add a parallel query-tile grid axis.
        compiler_params=pltpu.CompilerParams(
            dimension_semantics=("parallel",),
            vmem_limit_bytes=vmem_limit),
    )(xf, gamma, beta, agc, acg, wqkv, bqkv, wprojT, bproj)
    return out.reshape(B, C, H, W)


def ref_forward(x, params, num_heads):
    """Pure-JAX (f32) reference mirroring AttentionBlock._forward."""
    B, C, H, W = x.shape
    T = H * W
    xf = x.reshape(B, C, T).astype(jnp.float32)
    xg = xf.reshape(B, GROUPS, C // GROUPS, T)
    mean = xg.mean(axis=(2, 3), keepdims=True)
    var = ((xg - mean) ** 2).mean(axis=(2, 3), keepdims=True)
    xn = ((xg - mean) / jnp.sqrt(var + EPS)).reshape(B, C, T)
    xn = xn * params["gn_gamma"][None, :, None] + params["gn_beta"][None, :, None]
    qkv = jnp.einsum('oc,bct->bot', params["qkv_w"], xn) + params["qkv_b"][None, :, None]
    ch = C // num_heads
    qkv = qkv.reshape(B * num_heads, 3 * ch, T)
    q, k, v = qkv[:, :ch], qkv[:, ch:2 * ch], qkv[:, 2 * ch:]
    scale = 1.0 / math.sqrt(math.sqrt(ch))
    w = jax.nn.softmax(jnp.einsum('bct,bcs->bts', q * scale, k * scale), axis=-1)
    a = jnp.einsum('bts,bcs->bct', w, v).reshape(B, C, T)
    h = jnp.einsum('oc,bct->bot', params["proj_w"], a) + params["proj_b"][None, :, None]
    return (xf + h).reshape(B, C, H, W)


if __name__ == "__main__":
    # Channels must be divisible by 32 (GroupNorm32); T = H*W kept a multiple
    # of 128 so the output lane axis is dense.
    B, C, H, W = 2, 64, 16, 16
    NUM_HEADS = 2            # head dim = 32 (sublane aligned)

    key = jax.random.PRNGKey(0)
    kx, kw, kb = jax.random.split(key, 3)
    x = jax.random.normal(kx, (B, C, H, W), jnp.float32)

    # Module-faithful deterministic init:
    #   GroupNorm: gamma=1, beta=0 (torch default)
    #   qkv conv1d: deterministic random weights
    #   proj_out: zero_module -> all zeros
    params = {
        "gn_gamma": jnp.ones((C,), jnp.float32),
        "gn_beta": jnp.zeros((C,), jnp.float32),
        "qkv_w": 0.05 * jax.random.normal(kw, (3 * C, C), jnp.float32),
        "qkv_b": 0.05 * jax.random.normal(kb, (3 * C,), jnp.float32),
        "proj_w": jnp.zeros((C, C), jnp.float32),
        "proj_b": jnp.zeros((C,), jnp.float32),
    }

    out = jax.block_until_ready(attention_block_forward(x, params, NUM_HEADS))
    assert out.shape == x.shape

    # Numerical check of the full fused path against a pure-JAX f32 reference.
    # proj_out is made non-zero so the attention path is actually exercised;
    # tolerance accounts for the bf16-operand / f32-accumulate matmuls and the
    # approximate-reciprocal softmax normalization.
    kpw, kpb = jax.random.split(jax.random.PRNGKey(1))
    chk = dict(params)
    chk["proj_w"] = 0.05 * jax.random.normal(kpw, (C, C), jnp.float32)
    chk["proj_b"] = 0.05 * jax.random.normal(kpb, (C,), jnp.float32)
    got = jax.block_until_ready(attention_block_forward(x, chk, NUM_HEADS))
    want = ref_forward(x, chk, NUM_HEADS)
    err = float(jnp.max(jnp.abs(got - want)))
    assert jnp.allclose(got, want, atol=2e-2, rtol=2e-2), f"max abs err {err}"

    print("KERNEL_OK")
</pallas_src>

<mosaic_0001>
module attributes {stable_mosaic.version = 11 : i64} {
  func.func @kernel(%arg0: i32, %arg1: memref<1x64x256xf32, #tpu.memory_space<vmem>>, %arg2: memref<64x1xf32, #tpu.memory_space<vmem>>, %arg3: memref<64x1xf32, #tpu.memory_space<vmem>>, %arg4: memref<32x64xf32, #tpu.memory_space<vmem>>, %arg5: memref<64x32xf32, #tpu.memory_space<vmem>>, %arg6: memref<192x64xbf16, #tpu.memory_space<vmem>>, %arg7: memref<192x1xf32, #tpu.memory_space<vmem>>, %arg8: memref<64x64xbf16, #tpu.memory_space<vmem>>, %arg9: memref<64x1xf32, #tpu.memory_space<vmem>>, %arg10: memref<1x64x256xf32, #tpu.memory_space<vmem>>, %arg11: memref<192x256xbf16, #tpu.memory_space<vmem>>, %arg12: memref<64x256xbf16, #tpu.memory_space<vmem>>) attributes {dimension_semantics = [#tpu.dimension_semantics<parallel>], iteration_bounds = array<i64: 2>, scalar_prefetch = 0 : i64, scratch_operands = 2 : i64, tpu.core_type = #tpu.core_type<tc>, window_params = [{transform_indices = @transform_0, window_bounds = array<i64: 1, 64, 256>}, {pipeline_mode = #tpu.pipeline_mode<synchronous>, transform_indices = @transform_1, window_bounds = array<i64: 64, 1>}, {pipeline_mode = #tpu.pipeline_mode<synchronous>, transform_indices = @transform_2, window_bounds = array<i64: 64, 1>}, {pipeline_mode = #tpu.pipeline_mode<synchronous>, transform_indices = @transform_3, window_bounds = array<i64: 32, 64>}, {pipeline_mode = #tpu.pipeline_mode<synchronous>, transform_indices = @transform_4, window_bounds = array<i64: 64, 32>}, {pipeline_mode = #tpu.pipeline_mode<synchronous>, transform_indices = @transform_5, window_bounds = array<i64: 192, 64>}, {pipeline_mode = #tpu.pipeline_mode<synchronous>, transform_indices = @transform_6, window_bounds = array<i64: 192, 1>}, {pipeline_mode = #tpu.pipeline_mode<synchronous>, transform_indices = @transform_7, window_bounds = array<i64: 64, 64>}, {pipeline_mode = #tpu.pipeline_mode<synchronous>, transform_indices = @transform_8, window_bounds = array<i64: 64, 1>}, {transform_indices = @transform_9, window_bounds = array<i64: 1, 64, 256>}]} {
    %c0 = arith.constant 0 : index
    %c0_0 = arith.constant 0 : index
    %c0_1 = arith.constant 0 : index
    %0 = vector.load %arg1[%c0, %c0_0, %c0_1] : memref<1x64x256xf32, #tpu.memory_space<vmem>>, vector<1x64x256xf32>
    %1 = vector.shape_cast %0 : vector<1x64x256xf32> to vector<64x256xf32>
    %cst = arith.constant dense<0.000000e+00> : vector<64xf32>
    %2 = vector.multi_reduction <add>, %1, %cst [1] : vector<64x256xf32> to vector<64xf32>
    %3 = vector.shape_cast %2 : vector<64xf32> to vector<64x1xf32>
    %c0_2 = arith.constant 0 : index
    %c0_3 = arith.constant 0 : index
    %4 = vector.load %arg4[%c0_2, %c0_3] : memref<32x64xf32, #tpu.memory_space<vmem>>, vector<32x64xf32>
    %cst_4 = arith.constant dense<0.000000e+00> : vector<32x1xf32>
    %5 = tpu.matmul %4, %3, %cst_4 {dimension_numbers = #tpu.dot_dimension_numbers<[1], [0], [0], [1], [0, 0, 1, 1], [], []>} : vector<32x64xf32>, vector<64x1xf32>, vector<32x1xf32> -> vector<32x1xf32>
    %cst_5 = arith.constant 0.001953125 : f32
    %6 = vector.broadcast %cst_5 : f32 to vector<32x1xf32>
    %7 = arith.mulf %5, %6 : vector<32x1xf32>
    %c0_6 = arith.constant 0 : index
    %c0_7 = arith.constant 0 : index
    %8 = vector.load %arg5[%c0_6, %c0_7] : memref<64x32xf32, #tpu.memory_space<vmem>>, vector<64x32xf32>
    %cst_8 = arith.constant dense<0.000000e+00> : vector<64x1xf32>
    %9 = tpu.matmul %8, %7, %cst_8 {dimension_numbers = #tpu.dot_dimension_numbers<[1], [0], [0], [1], [0, 0, 1, 1], [], []>} : vector<64x32xf32>, vector<32x1xf32>, vector<64x1xf32> -> vector<64x1xf32>
    %10 = vector.broadcast %9 : vector<64x1xf32> to vector<64x256xf32>
    %11 = arith.subf %1, %10 : vector<64x256xf32>
    %12 = arith.mulf %11, %11 : vector<64x256xf32>
    %cst_9 = arith.constant dense<0.000000e+00> : vector<64xf32>
    %13 = vector.multi_reduction <add>, %12, %cst_9 [1] : vector<64x256xf32> to vector<64xf32>
    %14 = vector.shape_cast %13 : vector<64xf32> to vector<64x1xf32>
    %c0_10 = arith.constant 0 : index
    %c0_11 = arith.constant 0 : index
    %15 = vector.load %arg4[%c0_10, %c0_11] : memref<32x64xf32, #tpu.memory_space<vmem>>, vector<32x64xf32>
    %cst_12 = arith.constant dense<0.000000e+00> : vector<32x1xf32>
    %16 = tpu.matmul %15, %14, %cst_12 {dimension_numbers = #tpu.dot_dimension_numbers<[1], [0], [0], [1], [0, 0, 1, 1], [], []>} : vector<32x64xf32>, vector<64x1xf32>, vector<32x1xf32> -> vector<32x1xf32>
    %cst_13 = arith.constant 0.001953125 : f32
    %17 = vector.broadcast %cst_13 : f32 to vector<32x1xf32>
    %18 = arith.mulf %16, %17 : vector<32x1xf32>
    %c0_14 = arith.constant 0 : index
    %c0_15 = arith.constant 0 : index
    %19 = vector.load %arg5[%c0_14, %c0_15] : memref<64x32xf32, #tpu.memory_space<vmem>>, vector<64x32xf32>
    %cst_16 = arith.constant dense<0.000000e+00> : vector<64x1xf32>
    %20 = tpu.matmul %19, %18, %cst_16 {dimension_numbers = #tpu.dot_dimension_numbers<[1], [0], [0], [1], [0, 0, 1, 1], [], []>} : vector<64x32xf32>, vector<32x1xf32>, vector<64x1xf32> -> vector<64x1xf32>
    %c0_17 = arith.constant 0 : index
    %c0_18 = arith.constant 0 : index
    %21 = vector.load %arg2[%c0_17, %c0_18] : memref<64x1xf32, #tpu.memory_space<vmem>>, vector<64x1xf32>
    %cst_19 = arith.constant 9.99999974E-6 : f32
    %22 = vector.broadcast %cst_19 : f32 to vector<64x1xf32>
    %23 = arith.addf %20, %22 : vector<64x1xf32>
    %24 = math.rsqrt %23 : vector<64x1xf32>
    %25 = arith.mulf %21, %24 : vector<64x1xf32>
    %26 = vector.broadcast %25 : vector<64x1xf32> to vector<64x256xf32>
    %27 = arith.mulf %11, %26 : vector<64x256xf32>
    %c0_20 = arith.constant 0 : index
    %c0_21 = arith.constant 0 : index
    %28 = vector.load %arg3[%c0_20, %c0_21] : memref<64x1xf32, #tpu.memory_space<vmem>>, vector<64x1xf32>
    %29 = vector.broadcast %28 : vector<64x1xf32> to vector<64x256xf32>
    %30 = arith.addf %27, %29 : vector<64x256xf32>
    %31 = arith.truncf %30 : vector<64x256xf32> to vector<64x256xbf16>
    %c0_22 = arith.constant 0 : index
    %c0_23 = arith.constant 0 : index
    %32 = vector.load %arg6[%c0_22, %c0_23] : memref<192x64xbf16, #tpu.memory_space<vmem>>, vector<192x64xbf16>
    %cst_24 = arith.constant dense<0.000000e+00> : vector<192x256xf32>
    %33 = tpu.matmul %32, %31, %cst_24 {dimension_numbers = #tpu.dot_dimension_numbers<[1], [0], [0], [1], [0, 0, 1, 1], [], []>} : vector<192x64xbf16>, vector<64x256xbf16>, vector<192x256xf32> -> vector<192x256xf32>
    %c0_25 = arith.constant 0 : index
    %c0_26 = arith.constant 0 : index
    %34 = vector.load %arg7[%c0_25, %c0_26] : memref<192x1xf32, #tpu.memory_space<vmem>>, vector<192x1xf32>
    %35 = vector.broadcast %34 : vector<192x1xf32> to vector<192x256xf32>
    %36 = arith.addf %33, %35 : vector<192x256xf32>
    %37 = arith.truncf %36 : vector<192x256xf32> to vector<192x256xbf16>
    %c0_27 = arith.constant 0 : index
    %c0_28 = arith.constant 0 : index
    %38 = vector.load %arg11[%c0_27, %c0_28] : memref<192x256xbf16, #tpu.memory_space<vmem>>, vector<192x256xbf16>
    tpu.vector_store %arg11[%c0_27, %c0_28], %37 {strides = array<i32>} : memref<192x256xbf16, #tpu.memory_space<vmem>>, vector<192x256xbf16>,
    %c32 = arith.constant 32 : index
    %c0_29 = arith.constant 0 : index
    %39 = vector.load %arg11[%c32, %c0_29] : memref<192x256xbf16, #tpu.memory_space<vmem>>, vector<32x256xbf16>
    %c64 = arith.constant 64 : index
    %c0_30 = arith.constant 0 : index
    %40 = vector.load %arg11[%c64, %c0_30] : memref<192x256xbf16, #tpu.memory_space<vmem>>, vector<32x256xbf16>
    %c0_31 = arith.constant 0 : index
    %c0_32 = arith.constant 0 : index
    %41 = vector.load %arg11[%c0_31, %c0_32] : memref<192x256xbf16, #tpu.memory_space<vmem>>, vector<32x256xbf16>
    %cst_33 = arith.constant dense<0.000000e+00> : vector<256x256xf32>
    %42 = tpu.matmul %41, %39, %cst_33 {dimension_numbers = #tpu.dot_dimension_numbers<[0], [0], [1], [1], [0, 1, 1, 1], [], []>} : vector<32x256xbf16>, vector<32x256xbf16>, vector<256x256xf32> -> vector<256x256xf32>
    %cst_34 = arith.constant dense<0xFF800000> : vector<256xf32>
    %43 = vector.multi_reduction <maximumf>, %42, %cst_34 [1] : vector<256x256xf32> to vector<256xf32>
    %44 = vector.shape_cast %43 : vector<256xf32> to vector<256x1xf32>
    %45 = vector.broadcast %44 : vector<256x1xf32> to vector<256x256xf32>
    %46 = arith.subf %42, %45 : vector<256x256xf32>
    %47 = math.exp %46 : vector<256x256xf32>
    %cst_35 = arith.constant dense<0.000000e+00> : vector<256xf32>
    %48 = vector.multi_reduction <add>, %47, %cst_35 [1] : vector<256x256xf32> to vector<256xf32>
    %49 = vector.shape_cast %48 : vector<256xf32> to vector<256x1xf32>
    %50 = tpu.reciprocal %49 {approx = true} : vector<256x1xf32> -> vector<256x1xf32>
    %51 = vector.broadcast %50 : vector<256x1xf32> to vector<256x256xf32>
    %52 = arith.mulf %47, %51 : vector<256x256xf32>
    %53 = arith.truncf %52 : vector<256x256xf32> to vector<256x256xbf16>
    %cst_36 = arith.constant dense<0.000000e+00> : vector<32x256xf32>
    %54 = tpu.matmul %40, %53, %cst_36 {dimension_numbers = #tpu.dot_dimension_numbers<[1], [1], [0], [0], [0, 0, 1, 0], [], []>} : vector<32x256xbf16>, vector<256x256xbf16>, vector<32x256xf32> -> vector<32x256xf32>
    %55 = arith.truncf %54 : vector<32x256xf32> to vector<32x256xbf16>
    %c0_37 = arith.constant 0 : index
    %c0_38 = arith.constant 0 : index
    %56 = vector.load %arg12[%c0_37, %c0_38] : memref<64x256xbf16, #tpu.memory_space<vmem>>, vector<32x256xbf16>
    tpu.vector_store %arg12[%c0_37, %c0_38], %55 {strides = array<i32>} : memref<64x256xbf16, #tpu.memory_space<vmem>>, vector<32x256xbf16>,
    %c128 = arith.constant 128 : index
    %c0_39 = arith.constant 0 : index
    %57 = vector.load %arg11[%c128, %c0_39] : memref<192x256xbf16, #tpu.memory_space<vmem>>, vector<32x256xbf16>
    %c160 = arith.constant 160 : index
    %c0_40 = arith.constant 0 : index
    %58 = vector.load %arg11[%c160, %c0_40] : memref<192x256xbf16, #tpu.memory_space<vmem>>, vector<32x256xbf16>
    %c96 = arith.constant 96 : index
    %c0_41 = arith.constant 0 : index
    %59 = vector.load %arg11[%c96, %c0_41] : memref<192x256xbf16, #tpu.memory_space<vmem>>, vector<32x256xbf16>
    %cst_42 = arith.constant dense<0.000000e+00> : vector<256x256xf32>
    %60 = tpu.matmul %59, %57, %cst_42 {dimension_numbers = #tpu.dot_dimension_numbers<[0], [0], [1], [1], [0, 1, 1, 1], [], []>} : vector<32x256xbf16>, vector<32x256xbf16>, vector<256x256xf32> -> vector<256x256xf32>
    %cst_43 = arith.constant dense<0xFF800000> : vector<256xf32>
    %61 = vector.multi_reduction <maximumf>, %60, %cst_43 [1] : vector<256x256xf32> to vector<256xf32>
    %62 = vector.shape_cast %61 : vector<256xf32> to vector<256x1xf32>
    %63 = vector.broadcast %62 : vector<256x1xf32> to vector<256x256xf32>
    %64 = arith.subf %60, %63 : vector<256x256xf32>
    %65 = math.exp %64 : vector<256x256xf32>
    %cst_44 = arith.constant dense<0.000000e+00> : vector<256xf32>
    %66 = vector.multi_reduction <add>, %65, %cst_44 [1] : vector<256x256xf32> to vector<256xf32>
    %67 = vector.shape_cast %66 : vector<256xf32> to vector<256x1xf32>
    %68 = tpu.reciprocal %67 {approx = true} : vector<256x1xf32> -> vector<256x1xf32>
    %69 = vector.broadcast %68 : vector<256x1xf32> to vector<256x256xf32>
    %70 = arith.mulf %65, %69 : vector<256x256xf32>
    %71 = arith.truncf %70 : vector<256x256xf32> to vector<256x256xbf16>
    %cst_45 = arith.constant dense<0.000000e+00> : vector<32x256xf32>
    %72 = tpu.matmul %58, %71, %cst_45 {dimension_numbers = #tpu.dot_dimension_numbers<[1], [1], [0], [0], [0, 0, 1, 0], [], []>} : vector<32x256xbf16>, vector<256x256xbf16>, vector<32x256xf32> -> vector<32x256xf32>
    %73 = arith.truncf %72 : vector<32x256xf32> to vector<32x256xbf16>
    %c32_46 = arith.constant 32 : index
    %c0_47 = arith.constant 0 : index
    %74 = vector.load %arg12[%c32_46, %c0_47] : memref<64x256xbf16, #tpu.memory_space<vmem>>, vector<32x256xbf16>
    tpu.vector_store %arg12[%c32_46, %c0_47], %73 {strides = array<i32>} : memref<64x256xbf16, #tpu.memory_space<vmem>>, vector<32x256xbf16>,
    %c0_48 = arith.constant 0 : index
    %c0_49 = arith.constant 0 : index
    %75 = vector.load %arg8[%c0_48, %c0_49] : memref<64x64xbf16, #tpu.memory_space<vmem>>, vector<64x64xbf16>
    %c0_50 = arith.constant 0 : index
    %c0_51 = arith.constant 0 : index
    %76 = vector.load %arg12[%c0_50, %c0_51] : memref<64x256xbf16, #tpu.memory_space<vmem>>, vector<64x256xbf16>
    %cst_52 = arith.constant dense<0.000000e+00> : vector<64x256xf32>
    %77 = tpu.matmul %75, %76, %cst_52 {dimension_numbers = #tpu.dot_dimension_numbers<[0], [0], [1], [1], [0, 1, 1, 1], [], []>} : vector<64x64xbf16>, vector<64x256xbf16>, vector<64x256xf32> -> vector<64x256xf32>
    %c0_53 = arith.constant 0 : index
    %c0_54 = arith.constant 0 : index
    %c0_55 = arith.constant 0 : index
    %78 = vector.load %arg1[%c0_53, %c0_54, %c0_55] : memref<1x64x256xf32, #tpu.memory_space<vmem>>, vector<1x64x256xf32>
    %79 = vector.shape_cast %78 : vector<1x64x256xf32> to vector<64x256xf32>
    %80 = arith.addf %79, %77 : vector<64x256xf32>
    %c0_56 = arith.constant 0 : index
    %c0_57 = arith.constant 0 : index
    %81 = vector.load %arg9[%c0_56, %c0_57] : memref<64x1xf32, #tpu.memory_space<vmem>>, vector<64x1xf32>
    %82 = vector.broadcast %81 : vector<64x1xf32> to vector<64x256xf32>
    %83 = arith.addf %80, %82 : vector<64x256xf32>
    %c0_58 = arith.constant 0 : index
    %c0_59 = arith.constant 0 : index
    %c0_60 = arith.constant 0 : index
    %84 = vector.load %arg10[%c0_58, %c0_59, %c0_60] : memref<1x64x256xf32, #tpu.memory_space<vmem>>, vector<1x64x256xf32>
    %85 = vector.shape_cast %84 : vector<1x64x256xf32> to vector<64x256xf32>
    %86 = vector.shape_cast %83 : vector<64x256xf32> to vector<1x64x256xf32>
    tpu.vector_store %arg10[%c0_58, %c0_59, %c0_60], %86 {strides = array<i32>} : memref<1x64x256xf32, #tpu.memory_space<vmem>>, vector<1x64x256xf32>,
    return
  }
  func.func @transform_0(%arg0: i32) -> (i32, i32, i32) {
    %c0_i32 = arith.constant 0 : i32
    %c0_i32_0 = arith.constant 0 : i32
    %c0_i32_1 = arith.constant 0 : i32
    return %arg0, %c0_i32, %c0_i32_0 : i32, i32, i32
  }
  func.func @transform_1(%arg0: i32) -> (i32, i32) {
    %c0_i32 = arith.constant 0 : i32
    %c0_i32_0 = arith.constant 0 : i32
    %c0_i32_1 = arith.constant 0 : i32
    return %c0_i32, %c0_i32_0 : i32, i32
  }
  func.func @transform_2(%arg0: i32) -> (i32, i32) {
    %c0_i32 = arith.constant 0 : i32
    %c0_i32_0 = arith.constant 0 : i32
    %c0_i32_1 = arith.constant 0 : i32
    return %c0_i32, %c0_i32_0 : i32, i32
  }
  func.func @transform_3(%arg0: i32) -> (i32, i32) {
    %c0_i32 = arith.constant 0 : i32
    %c0_i32_0 = arith.constant 0 : i32
    %c0_i32_1 = arith.constant 0 : i32
    return %c0_i32, %c0_i32_0 : i32, i32
  }
  func.func @transform_4(%arg0: i32) -> (i32, i32) {
    %c0_i32 = arith.constant 0 : i32
    %c0_i32_0 = arith.constant 0 : i32
    %c0_i32_1 = arith.constant 0 : i32
    return %c0_i32, %c0_i32_0 : i32, i32
  }
  func.func @transform_5(%arg0: i32) -> (i32, i32) {
    %c0_i32 = arith.constant 0 : i32
    %c0_i32_0 = arith.constant 0 : i32
    %c0_i32_1 = arith.constant 0 : i32
    return %c0_i32, %c0_i32_0 : i32, i32
  }
  func.func @transform_6(%arg0: i32) -> (i32, i32) {
    %c0_i32 = arith.constant 0 : i32
    %c0_i32_0 = arith.constant 0 : i32
    %c0_i32_1 = arith.constant 0 : i32
    return %c0_i32, %c0_i32_0 : i32, i32
  }
  func.func @transform_7(%arg0: i32) -> (i32, i32) {
    %c0_i32 = arith.constant 0 : i32
    %c0_i32_0 = arith.constant 0 : i32
    %c0_i32_1 = arith.constant 0 : i32
    return %c0_i32, %c0_i32_0 : i32, i32
  }
  func.func @transform_8(%arg0: i32) -> (i32, i32) {
    %c0_i32 = arith.constant 0 : i32
    %c0_i32_0 = arith.constant 0 : i32
    %c0_i32_1 = arith.constant 0 : i32
    return %c0_i32, %c0_i32_0 : i32, i32
  }
  func.func @transform_9(%arg0: i32) -> (i32, i32, i32) {
    %c0_i32 = arith.constant 0 : i32
    %c0_i32_0 = arith.constant 0 : i32
    %c0_i32_1 = arith.constant 0 : i32
    return %arg0, %c0_i32, %c0_i32_0 : i32, i32, i32
  }
}

</mosaic_0001>

<bundles_post_ra>
// kernel: tpu_custom_call.1
= control target key start
LH: loop header
LB: loop body
LE: loop exit
PB: predicated region body
PF: predicated region fallthrough
CT: control target
= control target key end

     0   :  { %14 = vsyncpa [#allocation5], 0  ;;  %s6273_s0 = inlined_call_operand.vmem [shape: f32[2,64,256], index: 0, kind: input, shape index: {}]   ;;  %s6274_s1 = inlined_call_operand.vmem [shape: f32[64,1], index: 1, kind: input, shape index: {}]   ;;  %s6275_s2 = inlined_call_operand.vmem [shape: f32[64,1], index: 2, kind: input, shape index: {}]   ;;  %s6276_s3 = inlined_call_operand.vmem [shape: f32[32,64], index: 3, kind: input, shape index: {}]   ;;  %s6277_s4 = inlined_call_operand.vmem [shape: f32[64,32], index: 4, kind: input, shape index: {}]   ;;  %s6278_s5 = inlined_call_operand.vmem [shape: bf16[192,64], index: 5, kind: input, shape index: {}]   ;;  %s6279_s6 = inlined_call_operand.vmem [shape: f32[192,1], index: 6, kind: input, shape index: {}]   ;;  %s6280_s7 = inlined_call_operand.vmem [shape: bf16[64,64], index: 7, kind: input, shape index: {}]   ;;  %s6281_s8 = inlined_call_operand.vmem [shape: f32[64,1], index: 8, kind: input, shape index: {}]   ;;  %s6282_s9 = inlined_call_operand.hbm [shape: f32[2,64,256], index: 9, kind: output, shape index: {}]  }
   0x1   :  { %16 = vsyncpa [#allocation5 + $0x1], 0  ;;  %s4436_s30 = smov 0   ;;  %s4438_s10 = smov 0  }
   0x2   :  { %s4440_s11 = smov 0   ;;  %s4442_s12 = smov 0  }
   0x3 LB: > { %s4457_s13 = sadd.s32 4294967295, %s4380_s12   ;;  %s3568_s14 = sadd.s32 4294967294, %s4380_s12   ;;  %s4380_s12 = sphi %s4442_s12, %s6763_s12   ;;  %s4376_s11 = sphi %s4440_s11, %s6762_s11   ;;  %s4372_s10 = sphi %s4438_s10, %s6761_s10   ;;  %s4368_s30 = sphi %s4436_s30, %s6760_s30  }
   0x4   : > { %s4461_s15 = sadd.s32 1, %s4380_s12   ;;  %s223_s16 = sadd.s32 1, %s4376_s11 }
   0x5   : > { %s220_s17 = ssub.s32 %s4380_s12, %s4461_s15  ;;  %p233_p0 = scmp.ne.s32.totalorder %s4376_s11, %s4372_s10 }
   0x6   : > { %p221_p1 = scmp.eq.s32.totalorder %s220_s17, 0  ;;  %p234_p2 = scmp.eq.s32.totalorder %s4457_s13, 1 }
   0x7   : > { %p239_p3 = scmp.ne.s32.totalorder %s4372_s10, %s4368_s30  ;;  %p240_p4 = scmp.eq.s32.totalorder %s3568_s14, 1 }
   0x8   : > { %s4472_s18 = scalar_select %p221_p1, %s4376_s11, %s223_s16  }
   0x9   : > { %p4474_p5 = por %p234_p2, %p233_p0  ;;  %p4478_p6 = por %p240_p4, %p239_p3 }
   0xa   : > { %p3571_p7 = scmp.ge.s32.totalorder %s4380_s12, 1  ;;  %p290_p8 = scmp.lt.s32.totalorder %s4380_s12, 3 }
   0xc   : > { %p291_p9 = pnand %p3571_p7, %p290_p8 }
   0xe   : > { %294 = sbr.rel (%p291_p9) target bundleno = 3115 (0xc2b), region = 56 }
  0x15   : > { %p326_p10 = scmp.lt.s32.totalorder %s4457_s13, 1  ;;  %v4558_v24 = vld [vmem:[%s6276_s3] sm:$0xff]  ;;  %vm376_vm0 = vcmask 523264   ;;  %v4565_v37 = vld [vmem:[%s6276_s3 + $0x8] sm:$0xff]  ;;  %v4570_v38 = vld [vmem:[%s6276_s3 + $0x10] sm:$0xff]  ;;  %vm486_vm1 = vcmask 261120  }
  0x16   : > { %3734 = vmatprep.mubr.msk.f32.mxu0 %vm376_vm0, %v4558_v24  ;;  %v4579_v39 = vld [vmem:[%s6276_s3 + $0x18] sm:$0xff]  ;;  %v478_v40 = vld [vmem:[%s6277_s4] sm:$0xff]  ;;  %v6283_v41 = vmov 0   ;;  %v4593_v52 = vld [vmem:[%s6277_s4 + $0x8] sm:$0xff]  ;;  %s323_s23 = sand.u32 1, %s4372_s10   ;;  %s3669_s27 = sshll.u32 %s4457_s13, 11 }
  0x17   : > { %s327_s21 = scalar_select %p326_p10, %s4457_s13, 1  ;;  %3748 = vmatprep.mubr.msk.f32.mxu1 %vm486_vm1, %v478_v40  ;;  %3901 = vset.pattern.permute.xlu1 %v6283_v41  ;;  %v4598_v53 = vld [vmem:[%s6277_s4 + $0x10] sm:$0xff]  ;;  %v4607_v54 = vld [vmem:[%s6277_s4 + $0x18] sm:$0xff]  ;;  %v4612_v55 = vld [vmem:[%s6277_s4 + $0x20] sm:$0xff] }
  0x18   : > { %3900 = vset.pattern.permute.xlu0 %v6283_v41  ;;  %v4621_v56 = vld [vmem:[%s6277_s4 + $0x28] sm:$0xff]  ;;  %v4626_v57 = vld [vmem:[%s6277_s4 + $0x30] sm:$0xff]  ;;  %v4635_v58 = vld [vmem:[%s6277_s4 + $0x38] sm:$0xff]  ;;  %s3572_s24 = sshll.u32 %s323_s23, 7  ;;  %s6232_s13 = scalar_lea.sflag [#allocation5], %s323_s23 }
  0x19   : > { %s3668_s22 = sshll.u32 %s327_s21, 7  ;;  %s6191_s26 = scalar_lea.vmem [#allocation4], %s3572_s24 }
  0x1a   : > { %s4489_s25 = scalar_lea.vmem %s6273_s0, %s3668_s22  ;;  %s3506_s28 = sshll.u32 %s6191_s26, 4  ;;  %s6225_s28 = int_to_ptr.vmem [resolvable:$true] %s3506_s28 }
  0x1b   : > { %v4492_v0 = vld [vmem:[%s4489_s25 + $0x20] sm:$0xff]  ;;  %v4495_v1 = vld [vmem:[%s4489_s25 + $0x28] sm:$0xff]  ;;  %v4506_v5 = vld [vmem:[%s4489_s25 + $0x30] sm:$0xff]  ;;  %s4318_s16 = scalar_lea.vmem %s6225_s28, 2048  ;;  %s4383_s17 = smov [#allocation4]  }
  0x1c   : > { %v4498_v2 = vld [vmem:[%s4489_s25] sm:$0xff]  ;;  %v354_v3 = vadd.f32 %v4495_v1, %v4492_v0  ;;  %v4503_v4 = vld [vmem:[%s4489_s25 + $0x8] sm:$0xff]  ;;  %v4509_v6 = vld [vmem:[%s4489_s25 + $0x38] sm:$0xff]  ;;  %p4319_p11 = scmp.ne.s32.totalorder %s6225_s28, %s4318_s16  ;;  %s4322_s21 = sshll.u32 %s4383_s17, 4  ;;  %s4323_s21 = int_to_ptr.vmem [resolvable:$false] %s4322_s21 }
  0x1d   : > { %v348_v7 = vadd.f32 %v4503_v4, %v4498_v2  ;;  %v4514_v8 = vld [vmem:[%s4489_s25 + $0x10] sm:$0xff]  ;;  %v4517_v9 = vld [vmem:[%s4489_s25 + $0x18] sm:$0xff]  ;;  %v357_v10 = vadd.f32 %v4509_v6, %v4506_v5  ;;  %v4530_v14 = vld [vmem:[%s4489_s25 + $0x40] sm:$0xff]  ;;  %s4324_s22 = scalar_lea.vmem %s4323_s21, 4096  ;;  %p4325_p0 = scmp.lt.s32.totalorder %s6225_s28, %s4323_s21 }
  0x1e   : > { %355 = vadd.xlane.f32.xlu1 %v354_v3  ;;  %v351_v11 = vadd.f32 %v4517_v9, %v4514_v8  ;;  %v4524_v12 = vld [vmem:[%s4489_s25 + $0x50] sm:$0xff]  ;;  %v4527_v13 = vld [vmem:[%s4489_s25 + $0x58] sm:$0xff]  ;;  %v4533_v15 = vld [vmem:[%s4489_s25 + $0x48] sm:$0xff]  ;;  %p4320_p12 = pnand %p4319_p11, %p4474_p5  ;;  %p4326_p1 = scmp.lt.s32.totalorder %s4324_s22, %s4318_s16 }
  0x1f   : > { %349 = vadd.xlane.f32.xlu0 %v348_v7  ;;  %v4536_v16 = vld [vmem:[%s4489_s25 + $0x70] sm:$0xff]  ;;  %v4539_v17 = vld [vmem:[%s4489_s25 + $0x78] sm:$0xff]  ;;  %v363_v18 = vadd.f32 %v4527_v13, %v4524_v12  ;;  %v4544_v19 = vld [vmem:[%s4489_s25 + $0x60] sm:$0xff]  ;;  %v360_v21 = vadd.f32 %v4533_v15, %v4530_v14 }
  0x20   : > { %v4547_v20 = vld [vmem:[%s4489_s25 + $0x68] sm:$0xff]  ;;  %v369_v22 = vadd.f32 %v4539_v17, %v4536_v16  ;;  %p4321_p13 = pneg %p4320_p12  ;;  %p4327_p2 = por %p4326_p1, %p4325_p0 }
  0x21   : > { %v366_v23 = vadd.f32 %v4547_v20, %v4544_v19 }
  0x22   : > { %358 = vadd.xlane.f32.xlu1 %v357_v10  ;;  %p4328_p3 = pnand %p4327_p2, %p4321_p13 }
  0x23   : > { %352 = vadd.xlane.f32.xlu0 %v351_v11 }
  0x26   : > { %364 = vadd.xlane.f32.xlu1 %v363_v18 }
  0x27   : > { %361 = vadd.xlane.f32.xlu0 %v360_v21 }
  0x2a   : > { %370 = vadd.xlane.f32.xlu1 %v369_v22 }
  0x2b   : > { %367 = vadd.xlane.f32.xlu0 %v366_v23 }
  0xab   : > { %v356_v25 = vpop.xlane.xlu1 %355 }
  0xac   : > { %v350_v26 = vpop.xlane.xlu0 %349 }
  0xaf   : > { %v359_v27 = vpop.xlane.xlu1 %358 }
  0xb0   : > { %v353_v28 = vpop.xlane.xlu0 %352  ;;  %v3806_v30 = vpack.c.bf16 %v359_v27, %v356_v25 }
  0xb1   : > { %v3802_v29 = vpack.c.bf16 %v353_v28, %v350_v26 }
  0xb3   : > { %3803 = vmatprep.subr.bf16.mxu0 %v3802_v29  ;;  %v365_v31 = vpop.xlane.xlu1 %364 }
  0xb4   : > { %3805 = vmatpush3.bf16.msra.mxu0 %v3802_v29  ;;  %v362_v32 = vpop.xlane.xlu0 %361 }
  0xb5   : > { %3807 = vmatprep.subr.bf16.mxu0 %v3806_v30  ;;  %v3810_v33 = vpack.c.bf16 %v365_v31, %v362_v32 }
  0xb7   : > { %v371_v34 = vpop.xlane.xlu1 %370 }
  0xb8   : > { %3809 = vmatpush3.bf16.msra.mxu0 %v3806_v30  ;;  %v368_v35 = vpop.xlane.xlu0 %367 }
  0xb9   : > { %3811 = vmatprep.subr.bf16.mxu0 %v3810_v33  ;;  %v3814_v36 = vpack.c.bf16 %v371_v34, %v368_v35 }
  0xbc   : > { %3813 = vmatpush3.bf16.msra.mxu0 %v3810_v33 }
  0xbd   : > { %3815 = vmatprep.subr.bf16.mxu0 %v3814_v36 }
  0xc0   : > { %3817 = vmatpush3.bf16.msra.mxu0 %v3814_v36 }
  0xc3   : > { %3735 = vmatmul.mubr.msk.f32.vlgmr.msra.gmra.mrb[0].mxu0 %vm376_vm0, %v4565_v37 }
  0xc4   : > { %3737 = vmatprep.mubr.msk.f32.mxu0 %vm376_vm0, %v4570_v38 }
  0xc7   : > { %3738 = vmatmul.mubr.msk.f32.gmra.mrb[2].mxu0 %vm376_vm0, %v4579_v39 }
  0xc8   : > { %3790 = vmatprep.mubr.msk.f32.mxu0 %vm486_vm1, %v478_v40 }
 0x196   : > { %v3736_v42 = vpop.f32.mrb[0].mxu0 }
 0x197   : > { %v475_v43 = vmul.f32 0.001953125, %v3736_v42  ;;  %v455_v44 = vpop.f32.mrb[1].mxu0 }
 0x198   : > { %v474_v45 = vmul.f32 0.001953125, %v455_v44 }
 0x19a   : > { %v3739_v46 = vpop.f32.mrb[2].mxu0  ;;  %v3818_v47 = vpack.c.bf16 %v475_v43, %v474_v45 }
 0x19b   : > { %v477_v48 = vmul.f32 0.001953125, %v3739_v46  ;;  %v465_v49 = vpop.f32.mrb[3].mxu0 }
 0x19c   : > { %v476_v50 = vmul.f32 0.001953125, %v465_v49  ;;  %3819 = vmatprep.subr.bf16.mxu1 %v3818_v47 }
 0x19d   : > { %3821 = vmatpush3.bf16.msra.mxu1 %v3818_v47 }
 0x19e   : > { %v3822_v51 = vpack.c.bf16 %v477_v48, %v476_v50 }
 0x1a0   : > { %3823 = vmatprep.subr.bf16.mxu1 %v3822_v51 }
 0x1a1   : > { %3825 = vmatpush3.bf16.msra.mxu1 %v3822_v51 }
 0x1a4   : > { %3749 = vmatmul.mubr.msk.f32.vlgmr.msra.gmra.mrb[0].mxu1 %vm486_vm1, %v4593_v52 }
 0x1a5   : > { %3751 = vmatprep.mubr.msk.f32.mxu1 %vm486_vm1, %v4598_v53 }
 0x1a8   : > { %3752 = vmatmul.mubr.msk.f32.gmra.mrb[2].mxu1 %vm486_vm1, %v4607_v54 }
 0x1a9   : > { %3754 = vmatprep.mubr.msk.f32.mxu1 %vm486_vm1, %v4612_v55 }
 0x1ac   : > { %3755 = vmatmul.mubr.msk.f32.gmra.mrb[4].mxu1 %vm486_vm1, %v4621_v56 }
 0x1ad   : > { %3757 = vmatprep.mubr.msk.f32.mxu1 %vm486_vm1, %v4626_v57 }
 0x1b0   : > { %3758 = vmatmul.mubr.msk.f32.gmra.mrb[6].mxu1 %vm486_vm1, %v4635_v58 }
 0x1b1   : > { %3776 = vmatprep.mubr.msk.f32.mxu1 %vm376_vm0, %v4558_v24 }
 0x277   : > { %v3750_v59 = vpop.f32.mrb[0].mxu1 }
 0x278   : > { %623 = vperm.xlu1 %3901, %v3750_v59   ;;  %v577_v60 = vpop.f32.mrb[1].mxu1 }
 0x279   : > { %618 = vperm.xlu0 %3900, %v577_v60  }
 0x27b   : > { %v3753_v61 = vpop.f32.mrb[2].mxu1 }
 0x27c   : > { %633 = vperm.xlu1 %3901, %v3753_v61   ;;  %v587_v62 = vpop.f32.mrb[3].mxu1 }
 0x27f   : > { %v3756_v63 = vpop.f32.mrb[4].mxu1 }
 0x280   : > { %628 = vperm.xlu1 %3901, %v587_v62   ;;  %v597_v3 = vpop.f32.mrb[5].mxu1 }
 0x283   : > { %v3759_v7 = vpop.f32.mrb[6].mxu1 }
 0x284   : > { %643 = vperm.xlu1 %3901, %v3756_v63   ;;  %v607_v10 = vpop.f32.mrb[7].mxu1 }
 0x288   : > { %638 = vperm.xlu1 %3901, %v597_v3   ;;  %v986_v3 = vld [vmem:[%s6275_s2] sm:$0xff] }
 0x28c   : > { %648 = vperm.xlu1 %3901, %v607_v10   ;;  %v990_v10 = vld [vmem:[%s6275_s2 + $0x20] sm:$0xff] }
 0x290   : > { %653 = vperm.xlu1 %3901, %v3759_v7   ;;  %v989_v7 = vld [vmem:[%s6275_s2 + $0x18] sm:$0xff] }
 0x2f7   : > { %v624_v11 = vpop.permute.xlu1 %623 }
 0x2f8   : > { %v4642_v18 = vsub.f32 %v4514_v8, %v624_v11  ;;  %v4645_v21 = vsub.f32 %v4517_v9, %v624_v11  ;;  %v619_v22 = vpop.permute.xlu0 %618  ;;  %v991_v11 = vld [vmem:[%s6275_s2 + $0x28] sm:$0xff] }
 0x2f9   : > { %v4648_v23 = vsub.f32 %v4498_v2, %v619_v22  ;;  %v4651_v24 = vsub.f32 %v4503_v4, %v619_v22 }
 0x2fa   : > { %v674_v25 = vmul.f32 %v4642_v18, %v4642_v18  ;;  %v675_v26 = vmul.f32 %v4645_v21, %v4645_v21 }
 0x2fb   : > { %v634_v27 = vpop.permute.xlu1 %633  ;;  %v672_v8 = vmul.f32 %v4648_v23, %v4648_v23  ;;  %v673_v9 = vmul.f32 %v4651_v24, %v4651_v24 }
 0x2fc   : > { %v4662_v28 = vsub.f32 %v4506_v5, %v634_v27  ;;  %v4665_v2 = vsub.f32 %v4509_v6, %v634_v27  ;;  %v691_v4 = vadd.f32 %v675_v26, %v674_v25 }
 0x2fd   : > { %v688_v29 = vadd.f32 %v673_v9, %v672_v8 }
 0x2fe   : > { %692 = vadd.xlane.f32.xlu0 %v691_v4  ;;  %v678_v30 = vmul.f32 %v4662_v28, %v4662_v28  ;;  %v679_v31 = vmul.f32 %v4665_v2, %v4665_v2 }
 0x2ff   : > { %v629_v32 = vpop.permute.xlu1 %628  ;;  %689 = vadd.xlane.f32.xlu1 %v688_v29 }
 0x300   : > { %v4672_v33 = vsub.f32 %v4492_v0, %v629_v32  ;;  %v4675_v5 = vsub.f32 %v4495_v1, %v629_v32  ;;  %v697_v34 = vadd.f32 %v679_v31, %v678_v30 }
 0x302   : > { %v676_v6 = vmul.f32 %v4672_v33, %v4672_v33  ;;  %v677_v35 = vmul.f32 %v4675_v5, %v4675_v5 }
 0x303   : > { %v644_v36 = vpop.permute.xlu1 %643  ;;  %698 = vadd.xlane.f32.xlu1 %v697_v34 }
 0x304   : > { %v4682_v40 = vsub.f32 %v4524_v12, %v644_v36  ;;  %v4685_v42 = vsub.f32 %v4527_v13, %v644_v36  ;;  %v694_v0 = vadd.f32 %v677_v35, %v676_v6 }
 0x306   : > { %695 = vadd.xlane.f32.xlu0 %v694_v0  ;;  %v682_v1 = vmul.f32 %v4682_v40, %v4682_v40  ;;  %v683_v43 = vmul.f32 %v4685_v42, %v4685_v42 }
 0x307   : > { %v639_v44 = vpop.permute.xlu1 %638 }
 0x308   : > { %v4692_v45 = vsub.f32 %v4530_v14, %v639_v44  ;;  %v4695_v46 = vsub.f32 %v4533_v15, %v639_v44  ;;  %v703_v12 = vadd.f32 %v683_v43, %v682_v1 }
 0x30a   : > { %704 = vadd.xlane.f32.xlu1 %v703_v12  ;;  %v680_v13 = vmul.f32 %v4692_v45, %v4692_v45  ;;  %v681_v47 = vmul.f32 %v4695_v46, %v4695_v46 }
 0x30b   : > { %v649_v48 = vpop.permute.xlu1 %648 }
 0x30c   : > { %v4702_v49 = vsub.f32 %v4544_v19, %v649_v48  ;;  %v4705_v50 = vsub.f32 %v4547_v20, %v649_v48  ;;  %v700_v14 = vadd.f32 %v681_v47, %v680_v13 }
 0x30e   : > { %701 = vadd.xlane.f32.xlu0 %v700_v14  ;;  %v684_v15 = vmul.f32 %v4702_v49, %v4702_v49  ;;  %v685_v51 = vmul.f32 %v4705_v50, %v4705_v50 }
 0x30f   : > { %v654_v59 = vpop.permute.xlu1 %653 }
 0x310   : > { %v4712_v60 = vsub.f32 %v4536_v16, %v654_v59  ;;  %v4715_v61 = vsub.f32 %v4539_v17, %v654_v59  ;;  %v706_v19 = vadd.f32 %v685_v51, %v684_v15  ;;  %v987_v16 = vld [vmem:[%s6275_s2 + $0x8] sm:$0xff]  ;;  %v988_v17 = vld [vmem:[%s6275_s2 + $0x10] sm:$0xff]  ;;  %v801_v59 = vld [vmem:[%s6274_s1] sm:$0xff] }
 0x312   : > { %707 = vadd.xlane.f32.xlu0 %v706_v19  ;;  %v686_v20 = vmul.f32 %v4712_v60, %v4712_v60  ;;  %v687_v62 = vmul.f32 %v4715_v61, %v4715_v61 }
 0x314   : > { %v709_v63 = vadd.f32 %v687_v62, %v686_v20 }
 0x316   : > { %710 = vadd.xlane.f32.xlu1 %v709_v63 }
 0x327   : > { %996 = vperm.xlu1 %3901, %v986_v3  }
 0x328   : > { %1001 = vperm.xlu0 %3900, %v987_v16  }
 0x32b   : > { %1006 = vperm.xlu1 %3901, %v988_v17  }
 0x32c   : > { %1011 = vperm.xlu0 %3900, %v989_v7   ;;  %v804_v7 = vld [vmem:[%s6274_s1 + $0x18] sm:$0xff] }
 0x32f   : > { %1016 = vperm.xlu1 %3901, %v990_v10   ;;  %v803_v10 = vld [vmem:[%s6274_s1 + $0x10] sm:$0xff] }
 0x330   : > { %1021 = vperm.xlu0 %3900, %v991_v11  }
 0x38b   : > { %v693_v22 = vpop.xlane.xlu0 %692 }
 0x38c   : > { %v690_v25 = vpop.xlane.xlu1 %689 }
 0x38d   : > { %v3826_v26 = vpack.c.bf16 %v693_v22, %v690_v25 }
 0x38f   : > { %3827 = vmatprep.subr.bf16.mxu1 %v3826_v26 }
 0x390   : > { %3829 = vmatpush3.bf16.msra.mxu1 %v3826_v26  ;;  %v699_v27 = vpop.xlane.xlu1 %698 }
 0x393   : > { %v696_v8 = vpop.xlane.xlu0 %695 }
 0x394   : > { %v3830_v9 = vpack.c.bf16 %v699_v27, %v696_v8  ;;  %v806_v27 = vld [vmem:[%s6274_s1 + $0x28] sm:$0xff]  ;;  %v805_v8 = vld [vmem:[%s6274_s1 + $0x20] sm:$0xff] }
 0x396   : > { %3831 = vmatprep.subr.bf16.mxu1 %v3830_v9 }
 0x397   : > { %3833 = vmatpush3.bf16.msra.mxu1 %v3830_v9  ;;  %v705_v4 = vpop.xlane.xlu1 %704 }
 0x39b   : > { %v702_v29 = vpop.xlane.xlu0 %701 }
 0x39c   : > { %v3834_v30 = vpack.c.bf16 %v705_v4, %v702_v29 }
 0x39e   : > { %3835 = vmatprep.subr.bf16.mxu1 %v3834_v30 }
 0x39f   : > { %3837 = vmatpush3.bf16.msra.mxu1 %v3834_v30  ;;  %v708_v31 = vpop.xlane.xlu0 %707 }
 0x3a3   : > { %v711_v32 = vpop.xlane.xlu1 %710 }
 0x3a4   : > { %v3838_v34 = vpack.c.bf16 %v711_v32, %v708_v31  ;;  %v808_v31 = vld [vmem:[%s6274_s1 + $0x38] sm:$0xff]  ;;  %v807_v32 = vld [vmem:[%s6274_s1 + $0x30] sm:$0xff] }
 0x3a6   : > { %3839 = vmatprep.subr.bf16.mxu1 %v3838_v34 }
 0x3a7   : > { %3841 = vmatpush3.bf16.msra.mxu1 %v3838_v34 }
 0x3aa   : > { %3777 = vmatmul.mubr.msk.f32.vlgmr.msra.gmra.mrb[8].mxu1 %vm376_vm0, %v4565_v37 }
 0x3ab   : > { %3779 = vmatprep.mubr.msk.f32.mxu1 %vm376_vm0, %v4570_v38 }
 0x3ae   : > { %3780 = vmatmul.mubr.msk.f32.gmra.mrb[10].mxu1 %vm376_vm0, %v4579_v39 }
 0x3af   : > { %1434 = vmatprep.mubr.bf16.mxu1 %v6283_v41 }
 0x47d   : > { %v3778_v6 = vpop.f32.mrb[8].mxu1 }
 0x47e   : > { %v798_v35 = vmul.f32 0.001953125, %v3778_v6  ;;  %v778_v36 = vpop.f32.mrb[9].mxu1 }
 0x47f   : > { %v797_v0 = vmul.f32 0.001953125, %v778_v36 }
 0x481   : > { %v3842_v1 = vpack.c.bf16 %v798_v35, %v797_v0  ;;  %v3781_v43 = vpop.f32.mrb[10].mxu1  ;;  %v992_v0 = vld [vmem:[%s6275_s2 + $0x30] sm:$0xff] }
 0x482   : > { %v800_v44 = vmul.f32 0.001953125, %v3781_v43  ;;  %v788_v12 = vpop.f32.mrb[11].mxu1  ;;  %v1082_v43 = vld [vmem:[%s6279_s6] sm:$0xff] }
 0x483   : > { %v799_v13 = vmul.f32 0.001953125, %v788_v12  ;;  %3843 = vmatprep.subr.bf16.mxu0 %v3842_v1  ;;  %v1084_v12 = vld [vmem:[%s6279_s6 + $0x10] sm:$0xff] }
 0x484   : > { %3845 = vmatpush3.bf16.msra.mxu0 %v3842_v1  ;;  %v993_v1 = vld [vmem:[%s6275_s2 + $0x38] sm:$0xff] }
 0x485   : > { %v3846_v37 = vpack.c.bf16 %v800_v44, %v799_v13  ;;  %v1083_v44 = vld [vmem:[%s6279_s6 + $0x8] sm:$0xff]  ;;  %v1085_v13 = vld [vmem:[%s6279_s6 + $0x18] sm:$0xff] }
 0x487   : > { %3847 = vmatprep.subr.bf16.mxu0 %v3846_v37 }
 0x488   : > { %3849 = vmatpush3.bf16.msra.mxu0 %v3846_v37  ;;  %v1094_v37 = vld [vmem:[%s6279_s6 + $0x60] sm:$0xff] }
 0x48b   : > { %3791 = vmatmul.mubr.msk.f32.vlgmr.msra.gmra.mrb[4].mxu0 %vm486_vm1, %v4593_v52 }
 0x48c   : > { %3793 = vmatprep.mubr.msk.f32.mxu0 %vm486_vm1, %v4598_v53 }
 0x48f   : > { %3794 = vmatmul.mubr.msk.f32.gmra.mrb[6].mxu0 %vm486_vm1, %v4607_v54 }
 0x490   : > { %3796 = vmatprep.mubr.msk.f32.mxu0 %vm486_vm1, %v4612_v55 }
 0x493   : > { %3797 = vmatmul.mubr.msk.f32.gmra.mrb[8].mxu0 %vm486_vm1, %v4621_v56 }
 0x494   : > { %3799 = vmatprep.mubr.msk.f32.mxu0 %vm486_vm1, %v4626_v57 }
 0x497   : > { %3800 = vmatmul.mubr.msk.f32.gmra.mrb[10].mxu0 %vm486_vm1, %v4635_v58  ;;  %v802_v58 = vld [vmem:[%s6274_s1 + $0x8] sm:$0xff] }
 0x498   : > { %1354 = vmatprep.mubr.bf16.mxu0 %v6283_v41 }
 0x55e   : > { %v3792_v38 = vpop.f32.mrb[4].mxu0 }
 0x55f   : > { %v881_v39 = vadd.f32 1e-05, %v3792_v38  ;;  %v875_v52 = vpop.f32.mrb[5].mxu0  ;;  %v1095_v38 = vld [vmem:[%s6279_s6 + $0x68] sm:$0xff] }
 0x560   : > { %v876_v53 = vadd.f32 1e-05, %v875_v52  ;;  %v1097_v52 = vld [vmem:[%s6279_s6 + $0x78] sm:$0xff] }
 0x561   : > { %3918 = vrsqrt.f32 %v881_v39  ;;  %v1096_v39 = vld [vmem:[%s6279_s6 + $0x70] sm:$0xff] }
 0x562   : > { %3920 = vrsqrt.f32 %v876_v53  ;;  %v3795_v54 = vpop.f32.mrb[6].mxu0  ;;  %v1086_v53 = vld [vmem:[%s6279_s6 + $0x20] sm:$0xff] }
 0x563   : > { %v891_v47 = vadd.f32 1e-05, %v3795_v54  ;;  %v885_v55 = vpop.f32.mrb[7].mxu0  ;;  %v1087_v54 = vld [vmem:[%s6279_s6 + $0x28] sm:$0xff] }
 0x564   : > { %v886_v48 = vadd.f32 1e-05, %v885_v55  ;;  %v1089_v55 = vld [vmem:[%s6279_s6 + $0x38] sm:$0xff] }
 0x565   : > { %3922 = vrsqrt.f32 %v891_v47  ;;  %v1088_v47 = vld [vmem:[%s6279_s6 + $0x30] sm:$0xff] }
 0x566   : > { %3924 = vrsqrt.f32 %v886_v48  ;;  %v3798_v56 = vpop.f32.mrb[8].mxu0  ;;  %v1098_v48 = vld [vmem:[%s6279_s6 + $0x80] sm:$0xff] }
 0x567   : > { %v901_v14 = vadd.f32 1e-05, %v3798_v56  ;;  %v895_v57 = vpop.f32.mrb[9].mxu0  ;;  %v1099_v56 = vld [vmem:[%s6279_s6 + $0x88] sm:$0xff] }
 0x568   : > { %v896_v15 = vadd.f32 1e-05, %v895_v57  ;;  %v1101_v57 = vld [vmem:[%s6279_s6 + $0x98] sm:$0xff] }
 0x569   : > { %3926 = vrsqrt.f32 %v901_v14  ;;  %v1100_v14 = vld [vmem:[%s6279_s6 + $0x90] sm:$0xff] }
 0x56a   : > { %3928 = vrsqrt.f32 %v896_v15  ;;  %v3801_v51 = vpop.f32.mrb[10].mxu0  ;;  %v997_v15 = vpop.permute.xlu1 %996 }
 0x56b   : > { %v3919_v19 = vpop.eup %3918  ;;  %v911_v20 = vadd.f32 1e-05, %v3801_v51  ;;  %v905_v62 = vpop.f32.mrb[11].mxu0 }
 0x56c   : > { %v3921_v63 = vpop.eup %3920  ;;  %v906_v3 = vadd.f32 1e-05, %v905_v62  ;;  %v923_v16 = vmul.f32 %v3919_v19, %v802_v58  ;;  %v1002_v58 = vpop.permute.xlu0 %1001 }
 0x56d   : > { %3930 = vrsqrt.f32 %v911_v20  ;;  %v922_v17 = vmul.f32 %v3921_v63, %v801_v59 }
 0x56e   : > { %3932 = vrsqrt.f32 %v906_v3  ;;  %937 = vperm.xlu1 %3901, %v923_v16   ;;  %v1007_v51 = vpop.permute.xlu1 %1006 }
 0x56f   : > { %v3923_v11 = vpop.eup %3922  ;;  %932 = vperm.xlu0 %3900, %v922_v17  }
 0x570   : > { %v3925_v22 = vpop.eup %3924  ;;  %v925_v25 = vmul.f32 %v3923_v11, %v804_v7  ;;  %v1012_v59 = vpop.permute.xlu0 %1011 }
 0x571   : > { %v924_v26 = vmul.f32 %v3925_v22, %v803_v10 }
 0x572   : > { %v1017_v19 = vpop.permute.xlu1 %1016 }
 0x573   : > { %v3927_v9 = vpop.eup %3926  ;;  %942 = vperm.xlu1 %3901, %v924_v26   ;;  %947 = vperm.xlu0 %3900, %v925_v25  }
 0x574   : > { %v3929_v4 = vpop.eup %3928  ;;  %v927_v29 = vmul.f32 %v3927_v9, %v806_v27  ;;  %v1022_v20 = vpop.permute.xlu0 %1021 }
 0x575   : > { %v926_v30 = vmul.f32 %v3929_v4, %v805_v8 }
 0x577   : > { %v3931_v34 = vpop.eup %3930  ;;  %952 = vperm.xlu1 %3901, %v926_v30   ;;  %957 = vperm.xlu0 %3900, %v927_v29  }
 0x578   : > { %v3933_v6 = vpop.eup %3932  ;;  %v929_v35 = vmul.f32 %v3931_v34, %v808_v31 }
 0x579   : > { %v928_v36 = vmul.f32 %v3933_v6, %v807_v32 }
 0x57b   : > { %962 = vperm.xlu1 %3901, %v928_v36   ;;  %967 = vperm.xlu0 %3900, %v929_v35  }
 0x57f   : > { %1026 = vperm.xlu1 %3901, %v992_v0   ;;  %1031 = vperm.xlu0 %3900, %v993_v1  }
 0x583   : > { %1108 = vperm.xlu1 %3901, %v1082_v43   ;;  %1113 = vperm.xlu0 %3900, %v1083_v44  }
 0x587   : > { %1118 = vperm.xlu1 %3901, %v1084_v12   ;;  %1123 = vperm.xlu0 %3900, %v1085_v13  }
 0x58b   : > { %1168 = vperm.xlu1 %3901, %v1094_v37   ;;  %1173 = vperm.xlu0 %3900, %v1095_v38  }
 0x58f   : > { %1178 = vperm.xlu1 %3901, %v1096_v39   ;;  %1183 = vperm.xlu0 %3900, %v1097_v52  }
 0x593   : > { %1128 = vperm.xlu1 %3901, %v1086_v53   ;;  %1133 = vperm.xlu0 %3900, %v1087_v54  }
 0x597   : > { %1138 = vperm.xlu1 %3901, %v1088_v47   ;;  %1143 = vperm.xlu0 %3900, %v1089_v55  }
 0x59b   : > { %1188 = vperm.xlu1 %3901, %v1098_v48   ;;  %1193 = vperm.xlu0 %3900, %v1099_v56   ;;  %v3906_v56 = vld [vmem:[%s6278_s5 + $0x10] sm:$0xff]  }
 0x59f   : > { %1198 = vperm.xlu1 %3901, %v1100_v14   ;;  %1203 = vperm.xlu0 %3900, %v1101_v57   ;;  %v3907_v14 = vld [vmem:[%s6278_s5 + $0x18] sm:$0xff]   ;;  %v3908_v57 = vld [vmem:[%s6278_s5 + $0x20] sm:$0xff]  }
 0x5ed   : > { %v938_v62 = vpop.permute.xlu1 %937 }
 0x5ee   : > { %v972_v63 = vmul.f32 %v938_v62, %v4642_v18  ;;  %v973_v3 = vmul.f32 %v938_v62, %v4645_v21  ;;  %v933_v16 = vpop.permute.xlu0 %932 }
 0x5ef   : > { %v970_v17 = vmul.f32 %v933_v16, %v4648_v23  ;;  %v971_v7 = vmul.f32 %v933_v16, %v4651_v24 }
 0x5f0   : > { %v1036_v10 = vadd.f32 %v1002_v58, %v972_v63  ;;  %v1037_v11 = vadd.f32 %v1002_v58, %v973_v3  ;;  %v3910_v58 = vld [vmem:[%s6278_s5 + $0x30] sm:$0xff]   ;;  %v3913_v3 = vld [vmem:[%s6278_s5 + $0x58] sm:$0xff]  }
 0x5f1   : > { %v1034_v22 = vadd.f32 %v997_v15, %v970_v17  ;;  %v1035_v25 = vadd.f32 %v997_v15, %v971_v7  ;;  %v3909_v15 = vld [vmem:[%s6278_s5 + $0x28] sm:$0xff]  }
 0x5f2   : > { %v948_v26 = vpop.permute.xlu0 %947  ;;  %v943_v27 = vpop.permute.xlu1 %942 }
 0x5f3   : > { %v976_v8 = vmul.f32 %v948_v26, %v4662_v28  ;;  %v977_v9 = vmul.f32 %v948_v26, %v4665_v2  ;;  %v974_v4 = vmul.f32 %v943_v27, %v4672_v33  ;;  %v975_v18 = vmul.f32 %v943_v27, %v4675_v5 }
 0x5f4   : > { %v1051_v21 = vpack.c.bf16 %v1037_v11, %v1035_v25  ;;  %v1050_v29 = vpack.c.bf16 %v1036_v10, %v1034_v22 }
 0x5f5   : > { %v1040_v30 = vadd.f32 %v1012_v59, %v976_v8  ;;  %v1041_v23 = vadd.f32 %v1012_v59, %v977_v9  ;;  %v1038_v31 = vadd.f32 %v1007_v51, %v974_v4  ;;  %v1039_v24 = vadd.f32 %v1007_v51, %v975_v18  ;;  %v3911_v51 = vld [vmem:[%s6278_s5 + $0x38] sm:$0xff]  }
 0x5f6   : > { %1322 = vmatprep.subr.bf16.mxu0 %v1051_v21  ;;  %3850 = vmatprep.subr.bf16.mxu1 %v1051_v21  ;;  %v958_v32 = vpop.permute.xlu0 %957  ;;  %v953_v34 = vpop.permute.xlu1 %952 }
 0x5f7   : > { %v980_v6 = vmul.f32 %v958_v32, %v4682_v40  ;;  %v981_v28 = vmul.f32 %v958_v32, %v4685_v42  ;;  %1323 = vmatpush1.bf16.msra.mxu0 %v1050_v29  ;;  %3854 = vmatpush1.bf16.msra.mxu1 %v1050_v29  ;;  %v978_v2 = vmul.f32 %v953_v34, %v4692_v45 }
 0x5f8   : > { %v979_v33 = vmul.f32 %v953_v34, %v4695_v46  ;;  %v1053_v5 = vpack.c.bf16 %v1041_v23, %v1039_v24  ;;  %v1052_v35 = vpack.c.bf16 %v1040_v30, %v1038_v31 }
 0x5f9   : > { %v1044_v36 = vadd.f32 %v1022_v20, %v980_v6  ;;  %v1045_v0 = vadd.f32 %v1022_v20, %v981_v28  ;;  %v1042_v1 = vadd.f32 %v1017_v19, %v978_v2  ;;  %v3912_v20 = vld [vmem:[%s6278_s5 + $0x50] sm:$0xff]  }
 0x5fa   : > { %v1043_v43 = vadd.f32 %v1017_v19, %v979_v33  ;;  %1324 = vmatprep.subr.bf16.mxu0 %v1053_v5  ;;  %3851 = vmatprep.subr.bf16.mxu1 %v1053_v5  ;;  %v968_v44 = vpop.permute.xlu0 %967  ;;  %v963_v12 = vpop.permute.xlu1 %962 }
 0x5fb   : > { %1325 = vmatpush1.bf16.msra.mxu0 %v1052_v35  ;;  %3855 = vmatpush1.bf16.msra.mxu1 %v1052_v35  ;;  %v1054_v42 = vpack.c.bf16 %v1044_v36, %v1042_v1  ;;  %v984_v13 = vmul.f32 %v968_v44, %v4712_v60  ;;  %v985_v45 = vmul.f32 %v968_v44, %v4715_v61  ;;  %v3904_v60 = vld [vmem:[%s6278_s5 + $0x8] sm:$0xff]  }
 0x5fc   : > { %v1055_v40 = vpack.c.bf16 %v1045_v0, %v1043_v43  ;;  %v982_v46 = vmul.f32 %v963_v12, %v4702_v49  ;;  %v983_v37 = vmul.f32 %v963_v12, %v4705_v50  ;;  %v3902_v49 = vld [vmem:[%s6278_s5] sm:$0xff]   ;;  %v3905_v61 = vld [vmem:[%s6278_s5 + $0x48] sm:$0xff]  }
 0x5fd   : > { %v3903_v50 = vld [vmem:[%s6278_s5 + $0x40] sm:$0xff]  }
 0x5fe   : > { %1326 = vmatprep.subr.bf16.mxu0 %v1055_v40  ;;  %3852 = vmatprep.subr.bf16.mxu1 %v1055_v40  ;;  %v1032_v38 = vpop.permute.xlu0 %1031  ;;  %v1027_v39 = vpop.permute.xlu1 %1026 }
 0x5ff   : > { %v1048_v52 = vadd.f32 %v1032_v38, %v984_v13  ;;  %v1049_v53 = vadd.f32 %v1032_v38, %v985_v45  ;;  %1327 = vmatpush1.bf16.msra.mxu0 %v1054_v42  ;;  %3856 = vmatpush1.bf16.msra.mxu1 %v1054_v42  ;;  %v1046_v54 = vadd.f32 %v1027_v39, %v982_v46 }
 0x600   : > { %v1047_v47 = vadd.f32 %v1027_v39, %v983_v37 }
 0x601   : > { %v1056_v55 = vpack.c.bf16 %v1048_v52, %v1046_v54 }
 0x602   : > { %v1057_v48 = vpack.c.bf16 %v1049_v53, %v1047_v47  ;;  %v1114_v59 = vpop.permute.xlu0 %1113  ;;  %v1109_v19 = vpop.permute.xlu1 %1108 }
 0x604   : > { %1328 = vmatprep.subr.bf16.mxu0 %v1057_v48  ;;  %3853 = vmatprep.subr.bf16.mxu1 %v1057_v48 }
 0x605   : > { %1329 = vmatpush1.bf16.msra.mxu0 %v1056_v55  ;;  %3857 = vmatpush1.bf16.msra.mxu1 %v1056_v55 }
 0x606   : > { %v1124_v62 = vpop.permute.xlu0 %1123  ;;  %v1119_v63 = vpop.permute.xlu1 %1118 }
 0x608   : > { %3611 = vmatmul.mubr.msk.bf16.vlgmr.msra.gmra.mrb[12].mxu0 %vm376_vm0, %v3902_v49  ;;  %3619 = vmatmul.mubr.msk.bf16.vlgmr.msra.gmra.mrb[12].mxu1 %vm376_vm0, %v3903_v50 }
 0x609   : > { %1364 = vmatprep.mubr.bf16.mxu0 %v6283_v41  ;;  %1444 = vmatprep.mubr.bf16.mxu1 %v6283_v41 }
 0x60a   : > { %v4914_v16 = vpop.permute.xlu0 %1173  ;;  %v4916_v17 = vpop.permute.xlu1 %1168 }
 0x60e   : > { %v4919_v7 = vpop.permute.xlu0 %1183  ;;  %v4921_v10 = vpop.permute.xlu1 %1178 }
 0x610   : > { %3612 = vmatmul.mubr.msk.bf16.gmra.mrb[16].mxu0 %vm376_vm0, %v3904_v60  ;;  %3620 = vmatmul.mubr.msk.bf16.gmra.mrb[16].mxu1 %vm376_vm0, %v3905_v61 }
 0x611   : > { %1374 = vmatprep.mubr.bf16.mxu0 %v6283_v41  ;;  %1454 = vmatprep.mubr.bf16.mxu1 %v6283_v41 }
 0x612   : > { %v1134_v11 = vpop.permute.xlu0 %1133  ;;  %v1129_v22 = vpop.permute.xlu1 %1128 }
 0x616   : > { %v4923_v25 = vpop.permute.xlu0 %1143  ;;  %v4925_v26 = vpop.permute.xlu1 %1138 }
 0x618   : > { %3613 = vmatmul.mubr.msk.bf16.gmra.mrb[20].mxu0 %vm376_vm0, %v3906_v56  ;;  %3621 = vmatmul.mubr.msk.bf16.gmra.mrb[20].mxu1 %vm376_vm0, %v3912_v20 }
 0x619   : > { %1384 = vmatprep.mubr.bf16.mxu0 %v6283_v41  ;;  %1464 = vmatprep.mubr.bf16.mxu1 %v6283_v41 }
 0x61a   : > { %v1194_v27 = vpop.permute.xlu0 %1193  ;;  %v1189_v8 = vpop.permute.xlu1 %1188 }
 0x61e   : > { %v1204_v43 = vpop.permute.xlu0 %1203  ;;  %v1199_v44 = vpop.permute.xlu1 %1198 }
 0x620   : > { %3614 = vmatmul.mubr.msk.bf16.gmra.mrb[24].mxu0 %vm376_vm0, %v3907_v14  ;;  %3622 = vmatmul.mubr.msk.bf16.gmra.mrb[24].mxu1 %vm376_vm0, %v3913_v3 }
 0x621   : > { %1394 = vmatprep.mubr.bf16.mxu0 %v6283_v41  ;;  %1647 = vmatprep.mubr.bf16.mxu1 %v6283_v41 }
 0x628   : > { %3615 = vmatmul.mubr.msk.bf16.gmra.mrb[28].mxu0 %vm376_vm0, %v3908_v57 }
 0x629   : > { %1404 = vmatprep.mubr.bf16.mxu0 %v6283_v41 }
 0x630   : > { %3616 = vmatmul.mubr.msk.bf16.gmra.mrb[32].mxu0 %vm376_vm0, %v3909_v15 }
 0x631   : > { %1414 = vmatprep.mubr.bf16.mxu0 %v6283_v41 }
 0x638   : > { %3617 = vmatmul.mubr.msk.bf16.gmra.mrb[36].mxu0 %vm376_vm0, %v3910_v58 }
 0x639   : > { %1424 = vmatprep.mubr.bf16.mxu0 %v6283_v41 }
 0x640   : > { %3618 = vmatmul.mubr.msk.bf16.gmra.mrb[40].mxu0 %vm376_vm0, %v3911_v51 }
 0x641   : > { %2505 = vmatprep.mubr.bf16.mxu0 %v6283_v41 }
 0x6db   : > { %v1356_v9 = vpop.f32.mrb[12].mxu0  ;;  %v1436_v4 = vpop.f32.mrb[12].mxu1 }
 0x6dc   : > { %v1358_v18 = vpop.f32.mrb[13].mxu0  ;;  %v1438_v21 = vpop.f32.mrb[13].mxu1  ;;  %v1357_v23 = vadd.f32 %v1356_v9, %v1109_v19  ;;  %v1437_v31 = vadd.f32 %v1436_v4, %v1189_v8 }
 0x6dd   : > { %v1360_v29 = vpop.f32.mrb[14].mxu0  ;;  %v1440_v30 = vpop.f32.mrb[14].mxu1  ;;  %v4927_v28 = vadd.f32 %v1358_v18, %v1109_v19  ;;  %v1439_v2 = vadd.f32 %v1438_v21, %v1189_v8 }
 0x6de   : > { %v1361_v24 = vadd.f32 %v1360_v29, %v1114_v59  ;;  %v1441_v32 = vadd.f32 %v1440_v30, %v1194_v27  ;;  %v1362_v34 = vpop.f32.mrb[15].mxu0  ;;  %v1442_v6 = vpop.f32.mrb[15].mxu1 }
 0x6df   : > { %v4929_v33 = vadd.f32 %v1362_v34, %v1114_v59  ;;  %v1443_v5 = vadd.f32 %v1442_v6, %v1194_v27 }
 0x6e0   : > { %v1475_v35 = vpack.c.bf16 %v1361_v24, %v1357_v23  ;;  %v1491_v36 = vpack.c.bf16 %v1441_v32, %v1437_v31 }
 0x6e1   : > { %v1476_v0 = vpack.c.bf16 %v4929_v33, %v4927_v28  ;;  %v1492_v1 = vpack.c.bf16 %v1443_v5, %v1439_v2  ;;  %v1090_v33 = vld [vmem:[%s6279_s6 + $0x40] sm:$0xff] }
 0x6e2   : > { %1535 = vxpose.xlu1.c.b16.start [1/2] (short) %v1475_v35, 128 }
 0x6e3   : > { %v1366_v12 = vpop.f32.mrb[16].mxu0  ;;  %v1446_v40 = vpop.f32.mrb[16].mxu1  ;;  %2473 = vmatprep.subr.bf16.mxu0 %v1492_v1 }
 0x6e4   : > { %v1368_v42 = vpop.f32.mrb[17].mxu0  ;;  %v1448_v13 = vpop.f32.mrb[17].mxu1  ;;  %2474 = vmatpush1.bf16.msra.mxu0 %v1491_v36  ;;  %v1367_v37 = vadd.f32 %v1366_v12, %v1119_v63  ;;  %v1447_v38 = vadd.f32 %v1446_v40, %v1199_v44 }
 0x6e5   : > { %v1370_v45 = vpop.f32.mrb[18].mxu0  ;;  %v1450_v46 = vpop.f32.mrb[18].mxu1  ;;  %v4933_v47 = vadd.f32 %v1368_v42, %v1119_v63  ;;  %v1449_v55 = vadd.f32 %v1448_v13, %v1199_v44 }
 0x6e6   : > { %v1371_v39 = vadd.f32 %v1370_v45, %v1124_v62  ;;  %v1451_v52 = vadd.f32 %v1450_v46, %v1204_v43  ;;  %v1372_v53 = vpop.f32.mrb[19].mxu0  ;;  %v1452_v54 = vpop.f32.mrb[19].mxu1 }
 0x6e7   : > { %v4935_v48 = vadd.f32 %v1372_v53, %v1124_v62  ;;  %v1453_v49 = vadd.f32 %v1452_v54, %v1204_v43 }
 0x6e8   : > { %v1477_v50 = vpack.c.bf16 %v1371_v39, %v1367_v37  ;;  %v1493_v60 = vpack.c.bf16 %v1451_v52, %v1447_v38 }
 0x6e9   : > { %v1478_v61 = vpack.c.bf16 %v4935_v48, %v4933_v47  ;;  %v1494_v56 = vpack.c.bf16 %v1453_v49, %v1449_v55 }
 0x6ea   : > { %1536 = vxpose.xlu1.c.b16.end [2/2] (short) %v1477_v50, 128 }
 0x6eb   : > { %v1376_v14 = vpop.f32.mrb[20].mxu0  ;;  %2475 = vmatprep.subr.bf16.mxu0 %v1494_v56 }
 0x6ec   : > { %v1378_v57 = vpop.f32.mrb[21].mxu0  ;;  %2476 = vmatpush1.bf16.msra.mxu0 %v1493_v60  ;;  %v1377_v58 = vadd.f32 %v1376_v14, %v1129_v22 }
 0x6ed   : > { %v1380_v15 = vpop.f32.mrb[22].mxu0  ;;  %v1379_v19 = vadd.f32 %v1378_v57, %v1129_v22  ;;  %v5002_v57 = vpop.f32.mrb[20].mxu1 }
 0x6ee   : > { %v1381_v51 = vadd.f32 %v1380_v15, %v1134_v11  ;;  %v1382_v59 = vpop.f32.mrb[23].mxu0  ;;  %6440 = vst [vmem:[#allocation11_spill] sm:$0xff] %v5002_v57  ;;  %v5005_v15 = vpop.f32.mrb[21].mxu1 }
 0x6ef   : > { %v1383_v20 = vadd.f32 %v1382_v59, %v1134_v11  ;;  %6441 = vst [vmem:[#allocation12_spill] sm:$0xff] %v5005_v15 }
 0x6f0   : > { %v1479_v62 = vpack.c.bf16 %v1381_v51, %v1377_v58  ;;  %v5008_v58 = vpop.f32.mrb[22].mxu1 }
 0x6f1   : > { %v1480_v63 = vpack.c.bf16 %v1383_v20, %v1379_v19  ;;  %6442 = vst [vmem:[#allocation13_spill] sm:$0xff] %v5008_v58  ;;  %v5010_v51 = vpop.f32.mrb[23].mxu1 }
 0x6f2   : > { %6443 = vst [vmem:[#allocation14_spill] sm:$0xff] %v5010_v51 }
 0x6f3   : > { %v1386_v3 = vpop.f32.mrb[24].mxu0  ;;  %1615 = vmatprep.subr.bf16.mxu1 %v1480_v63  ;;  %v5012_v20 = vpop.f32.mrb[24].mxu1 }
 0x6f4   : > { %v1388_v27 = vpop.f32.mrb[25].mxu0  ;;  %1616 = vmatpush1.bf16.msra.mxu1 %v1479_v62  ;;  %v1387_v9 = vadd.f32 %v1386_v3, %v4925_v26  ;;  %6444 = vst [vmem:[#allocation15_spill] sm:$0xff] %v5012_v20  ;;  %v5015_v62 = vpop.f32.mrb[25].mxu1 }
 0x6f5   : > { %v1390_v8 = vpop.f32.mrb[26].mxu0  ;;  %v1389_v21 = vadd.f32 %v1388_v27, %v4925_v26  ;;  %6445 = vst [vmem:[#allocation16_spill] sm:$0xff] %v5015_v62  ;;  %v5018_v63 = vpop.f32.mrb[26].mxu1 }
 0x6f6   : > { %v1391_v4 = vadd.f32 %v1390_v8, %v4923_v25  ;;  %v1392_v18 = vpop.f32.mrb[27].mxu0  ;;  %6446 = vst [vmem:[#allocation17_spill] sm:$0xff] %v5018_v63  ;;  %v5020_v3 = vpop.f32.mrb[27].mxu1 }
 0x6f7   : > { %v1393_v29 = vadd.f32 %v1392_v18, %v4923_v25  ;;  %6447 = vst [vmem:[#allocation18_spill] sm:$0xff] %v5020_v3 }
 0x6f8   : > { %v1481_v30 = vpack.c.bf16 %v1391_v4, %v1387_v9 }
 0x6f9   : > { %v1482_v23 = vpack.c.bf16 %v1393_v29, %v1389_v21 }
 0x6fb   : > { %v4943_v22 = vpop.f32.mrb[28].mxu0  ;;  %1617 = vmatprep.subr.bf16.mxu1 %v1482_v23 }
 0x6fc   : > { %v4945_v11 = vpop.f32.mrb[29].mxu0  ;;  %1618 = vmatpush1.bf16.msra.mxu1 %v1481_v30 }
 0x6fd   : > { %v4947_v31 = vpop.f32.mrb[30].mxu0 }
 0x6fe   : > { %v4949_v24 = vpop.f32.mrb[31].mxu0 }
 0x703   : > { %v4951_v32 = vpop.f32.mrb[32].mxu0 }
 0x704   : > { %6436 = vst [vmem:[#allocation7_spill] sm:$0xff] %v4951_v32  ;;  %v4953_v34 = vpop.f32.mrb[33].mxu0 }
 0x705   : > { %6437 = vst [vmem:[#allocation8_spill] sm:$0xff] %v4953_v34  ;;  %v4955_v6 = vpop.f32.mrb[34].mxu0 }
 0x706   : > { %6438 = vst [vmem:[#allocation9_spill] sm:$0xff] %v4955_v6  ;;  %v4957_v26 = vpop.f32.mrb[35].mxu0 }
 0x707   : > { %6439 = vst [vmem:[#allocation10_spill] sm:$0xff] %v4957_v26 }
 0x70b   : > { %v1416_v25 = vpop.f32.mrb[36].mxu0 }
 0x70c   : > { %v1418_v2 = vpop.f32.mrb[37].mxu0  ;;  %v1417_v35 = vadd.f32 %v1416_v25, %v4916_v17 }
 0x70d   : > { %v1420_v5 = vpop.f32.mrb[38].mxu0  ;;  %v1419_v43 = vadd.f32 %v1418_v2, %v4916_v17 }
 0x70e   : > { %v1421_v36 = vadd.f32 %v1420_v5, %v4914_v16  ;;  %v1422_v1 = vpop.f32.mrb[39].mxu0 }
 0x70f   : > { %v1423_v44 = vadd.f32 %v1422_v1, %v4914_v16  ;;  %v1091_v16 = vld [vmem:[%s6279_s6 + $0x48] sm:$0xff] }
 0x710   : > { %v1487_v12 = vpack.c.bf16 %v1421_v36, %v1417_v35 }
 0x711   : > { %v1488_v40 = vpack.c.bf16 %v1423_v44, %v1419_v43 }
 0x712   : > { %2393 = vxpose.xlu0.c.b16.start [1/2] (short) %v1487_v12, 128 }
 0x713   : > { %v1426_v42 = vpop.f32.mrb[40].mxu0  ;;  %2409 = vxpose.xlu1.c.b16.start [1/2] (short) %v1488_v40, 128 }
 0x714   : > { %v1428_v13 = vpop.f32.mrb[41].mxu0  ;;  %v1427_v46 = vadd.f32 %v1426_v42, %v4921_v10 }
 0x715   : > { %v1430_v45 = vpop.f32.mrb[42].mxu0  ;;  %v1429_v39 = vadd.f32 %v1428_v13, %v4921_v10 }
 0x716   : > { %v1431_v37 = vadd.f32 %v1430_v45, %v4919_v7  ;;  %v1432_v38 = vpop.f32.mrb[43].mxu0 }
 0x717   : > { %v1433_v52 = vadd.f32 %v1432_v38, %v4919_v7  ;;  %v1092_v7 = vld [vmem:[%s6279_s6 + $0x50] sm:$0xff] }
 0x718   : > { %v1489_v53 = vpack.c.bf16 %v1431_v37, %v1427_v46 }
 0x719   : > { %v1490_v17 = vpack.c.bf16 %v1433_v52, %v1429_v39 }
 0x71a   : > { %2394 = vxpose.xlu0.c.b16.end [2/2] (short) %v1489_v53, 128 }
 0x71b   : > { %2410 = vxpose.xlu1.c.b16.end [2/2] (short) %v1490_v17, 128 }
 0x733   : > { %1551 = vxpose.xlu0.c.b16.start [1/2] (short) %v1476_v0, 128 }
 0x737   : > { %1153 = vperm.xlu1 %3901, %v1091_v16   ;;  %1552 = vxpose.xlu0.c.b16.end [2/2] (short) %v1478_v61, 128 }
 0x73b   : > { %1158 = vperm.xlu1 %3901, %v1092_v7  }
 0x74c   : > { %v1543_v10 = vpop.trf.xlu1 }
 0x74d   : > { %3623 = vmatmul.mubr.msk.bf16.vlgmr.msra.gmra.mrb[28].mxu1 %vm486_vm1, %v1543_v10 }
 0x74e   : > { %1657 = vmatprep.mubr.bf16.mxu1 %v6283_v41 }
 0x750   : > { %v1544_v28 = vpop.trf.xlu1 }
 0x754   : > { %v1545_v0 = vpop.trf.xlu1 }
 0x755   : > { %3624 = vmatmul.mubr.msk.bf16.gmra.mrb[32].mxu1 %vm486_vm1, %v1544_v28 }
 0x756   : > { %1667 = vmatprep.mubr.bf16.mxu1 %v6283_v41 }
 0x758   : > { %1148 = vperm.xlu0 %3900, %v1090_v33   ;;  %v1546_v54 = vpop.trf.xlu1 }
 0x75c   : > { %v1547_v47 = vpop.trf.xlu1 }
 0x75d   : > { %3625 = vmatmul.mubr.msk.bf16.gmra.mrb[36].mxu1 %vm486_vm1, %v1545_v0 }
 0x75e   : > { %1677 = vmatprep.mubr.bf16.mxu1 %v6283_v41 }
 0x760   : > { %v1548_v55 = vpop.trf.xlu1 }
 0x764   : > { %v1549_v48 = vpop.trf.xlu1 }
 0x765   : > { %3626 = vmatmul.mubr.msk.bf16.gmra.mrb[40].mxu1 %vm486_vm1, %v1546_v54 }
 0x766   : > { %1687 = vmatprep.mubr.bf16.mxu1 %v6283_v41 }
 0x768   : > { %v1550_v60 = vpop.trf.xlu1 }
 0x76d   : > { %3627 = vmatmul.mubr.msk.bf16.gmra.mrb[44].mxu1 %vm486_vm1, %v1547_v47 }
 0x76e   : > { %1697 = vmatprep.mubr.bf16.mxu1 %v6283_v41 }
 0x775   : > { %3628 = vmatmul.mubr.msk.bf16.gmra.mrb[48].mxu1 %vm486_vm1, %v1548_v55 }
 0x776   : > { %1707 = vmatprep.mubr.bf16.mxu1 %v6283_v41 }
 0x77c   : > { %v2401_v49 = vpop.trf.xlu0 }
 0x77d   : > { %3639 = vmatmul.mubr.msk.bf16.vlgmr.msra.gmra.mrb[44].mxu0 %vm486_vm1, %v2401_v49  ;;  %3629 = vmatmul.mubr.msk.bf16.gmra.mrb[52].mxu1 %vm486_vm1, %v1549_v48  ;;  %v2417_v4 = vpop.trf.xlu1 }
 0x77e   : > { %2515 = vmatprep.mubr.bf16.mxu0 %v6283_v41  ;;  %1717 = vmatprep.mubr.bf16.mxu1 %v6283_v41 }
 0x780   : > { %v2402_v50 = vpop.trf.xlu0 }
 0x781   : > { %v2418_v21 = vpop.trf.xlu1 }
 0x784   : > { %v2403_v61 = vpop.trf.xlu0 }
 0x785   : > { %3640 = vmatmul.mubr.msk.bf16.gmra.mrb[48].mxu0 %vm486_vm1, %v2402_v50  ;;  %3630 = vmatmul.mubr.msk.bf16.gmra.mrb[56].mxu1 %vm486_vm1, %v1550_v60  ;;  %v2419_v29 = vpop.trf.xlu1 }
 0x786   : > { %2525 = vmatprep.mubr.bf16.mxu0 %v6283_v41  ;;  %1727 = vmatprep.mubr.bf16.mxu1 %v6283_v41 }
 0x788   : > { %v2404_v56 = vpop.trf.xlu0 }
 0x789   : > { %v2420_v23 = vpop.trf.xlu1 }
 0x78c   : > { %v2405_v14 = vpop.trf.xlu0 }
 0x78d   : > { %3641 = vmatmul.mubr.msk.bf16.gmra.mrb[52].mxu0 %vm486_vm1, %v2403_v61  ;;  %v2421_v2 = vpop.trf.xlu1 }
 0x78e   : > { %2535 = vmatprep.mubr.bf16.mxu0 %v6283_v41 }
 0x790   : > { %v2406_v59 = vpop.trf.xlu0 }
 0x791   : > { %v2422_v35 = vpop.trf.xlu1 }
 0x794   : > { %v2407_v19 = vpop.trf.xlu0 }
 0x795   : > { %3642 = vmatmul.mubr.msk.bf16.gmra.mrb[56].mxu0 %vm486_vm1, %v2404_v56  ;;  %v2423_v36 = vpop.trf.xlu1 }
 0x796   : > { %2545 = vmatprep.mubr.bf16.mxu0 %v6283_v41 }
 0x798   : > { %v2408_v27 = vpop.trf.xlu0 }
 0x799   : > { %v2424_v43 = vpop.trf.xlu1 }
 0x79c   : > { %v1559_v8 = vpop.trf.xlu0 }
 0x79d   : > { %3631 = vmatmul.mubr.msk.bf16.gmra.mrb[60].mxu1 %vm486_vm1, %v1559_v8  ;;  %3643 = vmatmul.mubr.msk.bf16.gmra.mrb[60].mxu0 %vm486_vm1, %v2405_v14 }
 0x79e   : > { %1737 = vmatprep.mubr.bf16.mxu1 %v6283_v41  ;;  %2555 = vmatprep.mubr.bf16.mxu0 %v6283_v41 }
 0x7a0   : > { %v1560_v9 = vpop.trf.xlu0 }
 0x7a4   : > { %v1561_v18 = vpop.trf.xlu0 }
 0x7a5   : > { %3632 = vmatmul.mubr.msk.bf16.gmra.mrb[64].mxu1 %vm486_vm1, %v1560_v9  ;;  %3644 = vmatmul.mubr.msk.bf16.gmra.mrb[64].mxu0 %vm486_vm1, %v2406_v59 }
 0x7a6   : > { %1747 = vmatprep.mubr.bf16.mxu1 %v6283_v41  ;;  %2565 = vmatprep.mubr.bf16.mxu0 %v6283_v41 }
 0x7a8   : > { %v1562_v30 = vpop.trf.xlu0 }
 0x7ac   : > { %v1563_v25 = vpop.trf.xlu0 }
 0x7ad   : > { %3633 = vmatmul.mubr.msk.bf16.gmra.mrb[68].mxu1 %vm486_vm1, %v1561_v18  ;;  %3645 = vmatmul.mubr.msk.bf16.gmra.mrb[68].mxu0 %vm486_vm1, %v2407_v19 }
 0x7ae   : > { %1757 = vmatprep.mubr.bf16.mxu1 %v6283_v41  ;;  %2575 = vmatprep.mubr.bf16.mxu0 %v6283_v41 }
 0x7b0   : > { %v1564_v5 = vpop.trf.xlu0 }
 0x7b4   : > { %v1565_v1 = vpop.trf.xlu0 }
 0x7b5   : > { %3634 = vmatmul.mubr.msk.bf16.gmra.mrb[72].mxu1 %vm486_vm1, %v1562_v30  ;;  %3646 = vmatmul.mubr.msk.bf16.gmra.mrb[72].mxu0 %vm486_vm1, %v2408_v27 }
 0x7b6   : > { %1767 = vmatprep.mubr.bf16.mxu1 %v6283_v41  ;;  %2585 = vmatprep.mubr.bf16.mxu0 %v6283_v41  ;;  %v1154_v12 = vpop.permute.xlu1 %1153 }
 0x7b7   : > { %v5054_v42 = vadd.f32 %v4947_v31, %v1154_v12  ;;  %v1403_v13 = vadd.f32 %v4949_v24, %v1154_v12 }
 0x7b8   : > { %v1566_v44 = vpop.trf.xlu0 }
 0x7b9   : > { %6448 = vst [vmem:[#allocation19_spill] sm:$0xff] %v5054_v42 }
 0x7bd   : > { %3635 = vmatmul.mubr.msk.bf16.gmra.mrb[76].mxu1 %vm486_vm1, %v1563_v25  ;;  %3647 = vmatmul.mubr.msk.bf16.gmra.mrb[76].mxu0 %vm486_vm1, %v2417_v4 }
 0x7be   : > { %1777 = vmatprep.mubr.bf16.mxu1 %v6283_v41  ;;  %2595 = vmatprep.mubr.bf16.mxu0 %v6283_v41 }
 0x7c5   : > { %3636 = vmatmul.mubr.msk.bf16.gmra.mrb[80].mxu1 %vm486_vm1, %v1564_v5  ;;  %3648 = vmatmul.mubr.msk.bf16.gmra.mrb[80].mxu0 %vm486_vm1, %v2418_v21 }
 0x7c6   : > { %1787 = vmatprep.mubr.bf16.mxu1 %v6283_v41  ;;  %2605 = vmatprep.mubr.bf16.mxu0 %v6283_v41 }
 0x7cd   : > { %3637 = vmatmul.mubr.msk.bf16.gmra.mrb[84].mxu1 %vm486_vm1, %v1565_v1  ;;  %3649 = vmatmul.mubr.msk.bf16.gmra.mrb[84].mxu0 %vm486_vm1, %v2419_v29 }
 0x7ce   : > { %1797 = vmatprep.mubr.bf16.mxu1 %v6283_v41  ;;  %2615 = vmatprep.mubr.bf16.mxu0 %v6283_v41 }
 0x7d5   : > { %3638 = vmatmul.mubr.msk.bf16.gmra.mrb[88].mxu1 %vm486_vm1, %v1566_v44  ;;  %3650 = vmatmul.mubr.msk.bf16.gmra.mrb[88].mxu0 %vm486_vm1, %v2420_v23 }
 0x7d6   : > { %2625 = vmatprep.mubr.bf16.mxu0 %v6283_v41 }
 0x7d7   : > { %v1149_v40 = vpop.permute.xlu0 %1148 }
 0x7d8   : > { %v5058_v45 = vadd.f32 %v4943_v22, %v1149_v40  ;;  %v1399_v46 = vadd.f32 %v4945_v11, %v1149_v40 }
 0x7da   : > { %6449 = vst [vmem:[#allocation20_spill] sm:$0xff] %v5058_v45  ;;  %v1484_v38 = vpack.c.bf16 %v1403_v13, %v1399_v46 }
 0x7dc   : > { %2352 = vmatprep.mubr.bf16.mxu1 %v1484_v38 }
 0x7dd   : > { %3651 = vmatmul.mubr.msk.bf16.gmra.mrb[92].mxu0 %vm486_vm1, %v2421_v2 }
 0x7de   : > { %2635 = vmatprep.mubr.bf16.mxu0 %v6283_v41 }
 0x7e5   : > { %3652 = vmatmul.mubr.msk.bf16.gmra.mrb[96].mxu0 %vm486_vm1, %v2422_v35 }
 0x7e6   : > { %2645 = vmatprep.mubr.bf16.mxu0 %v6283_v41 }
 0x7ed   : > { %3653 = vmatmul.mubr.msk.bf16.gmra.mrb[100].mxu0 %vm486_vm1, %v2423_v36 }
 0x7ee   : > { %2655 = vmatprep.mubr.bf16.mxu0 %v6283_v41 }
 0x7f5   : > { %3654 = vmatmul.mubr.msk.bf16.gmra.mrb[104].mxu0 %vm486_vm1, %v2424_v43 }
 0x820   : > { %v5070_v22 = vpop.f32.mrb[28].mxu1 }
 0x821   : > { %v5072_v11 = vpop.f32.mrb[29].mxu1 }
 0x822   : > { %v5074_v31 = vpop.f32.mrb[30].mxu1  ;;  %v1808_v24 = vmax.f32 %v5070_v22, %v5072_v11 }
 0x823   : > { %v5078_v39 = vpop.f32.mrb[31].mxu1 }
 0x824   : > { %v1811_v52 = vmax.f32 %v5074_v31, %v5078_v39  ;;  %1809 = vmax.xlane.f32.xlu0 %v1808_v24 }
 0x826   : > { %1812 = vmax.xlane.f32.xlu1 %v1811_v52 }
 0x828   : > { %v5082_v53 = vpop.f32.mrb[32].mxu1 }
 0x829   : > { %v5084_v17 = vpop.f32.mrb[33].mxu1 }
 0x82a   : > { %v5086_v16 = vpop.f32.mrb[34].mxu1  ;;  %v1814_v7 = vmax.f32 %v5082_v53, %v5084_v17 }
 0x82b   : > { %v5090_v10 = vpop.f32.mrb[35].mxu1 }
 0x82c   : > { %v1817_v28 = vmax.f32 %v5086_v16, %v5090_v10  ;;  %1815 = vmax.xlane.f32.xlu0 %v1814_v7 }
 0x82e   : > { %1818 = vmax.xlane.f32.xlu1 %v1817_v28 }
 0x830   : > { %v5094_v33 = vpop.f32.mrb[36].mxu1 }
 0x831   : > { %v5096_v0 = vpop.f32.mrb[37].mxu1 }
 0x832   : > { %v5098_v54 = vpop.f32.mrb[38].mxu1  ;;  %v1820_v47 = vmax.f32 %v5094_v33, %v5096_v0 }
 0x833   : > { %v5102_v55 = vpop.f32.mrb[39].mxu1 }
 0x834   : > { %v1823_v48 = vmax.f32 %v5098_v54, %v5102_v55  ;;  %1821 = vmax.xlane.f32.xlu0 %v1820_v47 }
 0x836   : > { %1824 = vmax.xlane.f32.xlu1 %v1823_v48 }
 0x838   : > { %v5106_v49 = vpop.f32.mrb[40].mxu1 }
 0x839   : > { %v5108_v50 = vpop.f32.mrb[41].mxu1 }
 0x83a   : > { %v5110_v60 = vpop.f32.mrb[42].mxu1  ;;  %v1826_v61 = vmax.f32 %v5106_v49, %v5108_v50 }
 0x83b   : > { %v5114_v56 = vpop.f32.mrb[43].mxu1 }
 0x83c   : > { %v1829_v14 = vmax.f32 %v5110_v60, %v5114_v56  ;;  %1827 = vmax.xlane.f32.xlu0 %v1826_v61 }
 0x83e   : > { %1830 = vmax.xlane.f32.xlu1 %v1829_v14 }
 0x840   : > { %v5118_v59 = vpop.f32.mrb[44].mxu1 }
 0x841   : > { %v5120_v19 = vpop.f32.mrb[45].mxu1 }
 0x842   : > { %v5122_v27 = vpop.f32.mrb[46].mxu1  ;;  %v1832_v8 = vmax.f32 %v5118_v59, %v5120_v19 }
 0x843   : > { %v5126_v9 = vpop.f32.mrb[47].mxu1 }
 0x844   : > { %v1835_v4 = vmax.f32 %v5122_v27, %v5126_v9  ;;  %1833 = vmax.xlane.f32.xlu0 %v1832_v8 }
 0x846   : > { %1836 = vmax.xlane.f32.xlu1 %v1835_v4 }
 0x848   : > { %v5130_v18 = vpop.f32.mrb[48].mxu1 }
 0x849   : > { %v5132_v21 = vpop.f32.mrb[49].mxu1 }
 0x84a   : > { %v5134_v29 = vpop.f32.mrb[50].mxu1  ;;  %v1838_v30 = vmax.f32 %v5130_v18, %v5132_v21 }
 0x84b   : > { %v5138_v23 = vpop.f32.mrb[51].mxu1 }
 0x84c   : > { %v1841_v25 = vmax.f32 %v5134_v29, %v5138_v23  ;;  %1839 = vmax.xlane.f32.xlu0 %v1838_v30 }
 0x84e   : > { %1842 = vmax.xlane.f32.xlu1 %v1841_v25 }
 0x850   : > { %v5142_v2 = vpop.f32.mrb[44].mxu0  ;;  %v5144_v5 = vpop.f32.mrb[52].mxu1 }
 0x851   : > { %v5146_v35 = vpop.f32.mrb[45].mxu0  ;;  %v5148_v36 = vpop.f32.mrb[53].mxu1 }
 0x852   : > { %v5150_v1 = vpop.f32.mrb[46].mxu0  ;;  %v2666_v43 = vmax.f32 %v5142_v2, %v5146_v35  ;;  %v1844_v44 = vmax.f32 %v5144_v5, %v5148_v36  ;;  %v5156_v12 = vpop.f32.mrb[54].mxu1 }
 0x853   : > { %v5158_v40 = vpop.f32.mrb[47].mxu0  ;;  %v5160_v13 = vpop.f32.mrb[55].mxu1 }
 0x854   : > { %v2669_v46 = vmax.f32 %v5150_v1, %v5158_v40  ;;  %2667 = vmax.xlane.f32.xlu0 %v2666_v43  ;;  %v1847_v38 = vmax.f32 %v5156_v12, %v5160_v13 }
 0x856   : > { %2670 = vmax.xlane.f32.xlu1 %v2669_v46 }
 0x858   : > { %v5166_v24 = vpop.f32.mrb[48].mxu0  ;;  %1845 = vmax.xlane.f32.xlu0 %v1844_v44  ;;  %v5168_v52 = vpop.f32.mrb[56].mxu1 }
 0x859   : > { %v5170_v7 = vpop.f32.mrb[49].mxu0  ;;  %v5172_v28 = vpop.f32.mrb[57].mxu1 }
 0x85a   : > { %v2672_v47 = vmax.f32 %v5166_v24, %v5170_v7  ;;  %v5176_v48 = vpop.f32.mrb[50].mxu0  ;;  %1848 = vmax.xlane.f32.xlu1 %v1847_v38  ;;  %v1850_v61 = vmax.f32 %v5168_v52, %v5172_v28  ;;  %v5180_v14 = vpop.f32.mrb[58].mxu1 }
 0x85b   : > { %v5182_v8 = vpop.f32.mrb[51].mxu0  ;;  %v5184_v4 = vpop.f32.mrb[59].mxu1 }
 0x85c   : > { %v2675_v30 = vmax.f32 %v5176_v48, %v5182_v8  ;;  %2673 = vmax.xlane.f32.xlu0 %v2672_v47  ;;  %v1853_v25 = vmax.f32 %v5180_v14, %v5184_v4 }
 0x85e   : > { %2676 = vmax.xlane.f32.xlu1 %v2675_v30 }
 0x860   : > { %v5190_v43 = vpop.f32.mrb[52].mxu0  ;;  %1851 = vmax.xlane.f32.xlu0 %v1850_v61 }
 0x861   : > { %v5192_v44 = vpop.f32.mrb[53].mxu0 }
 0x862   : > { %v2678_v46 = vmax.f32 %v5190_v43, %v5192_v44  ;;  %v5196_v38 = vpop.f32.mrb[54].mxu0  ;;  %1854 = vmax.xlane.f32.xlu1 %v1853_v25 }
 0x863   : > { %v5198_v41 = vpop.f32.mrb[55].mxu0 }
 0x864   : > { %v2681_v47 = vmax.f32 %v5196_v38, %v5198_v41  ;;  %2679 = vmax.xlane.f32.xlu0 %v2678_v46 }
 0x866   : > { %2682 = vmax.xlane.f32.xlu1 %v2681_v47 }
 0x868   : > { %v5202_v37 = vpop.f32.mrb[56].mxu0 }
 0x869   : > { %6450 = vst [vmem:[#allocation21_spill] sm:$0xff] %v5202_v37  ;;  %v5204_v30 = vpop.f32.mrb[57].mxu0 }
 0x86a   : > { %6451 = vst [vmem:[#allocation22_spill] sm:$0xff] %v5204_v30  ;;  %v2684_v61 = vmax.f32 %v5202_v37, %v5204_v30  ;;  %v5208_v62 = vpop.f32.mrb[58].mxu0 }
 0x86b   : > { %6452 = vst [vmem:[#allocation23_spill] sm:$0xff] %v5208_v62  ;;  %v5210_v20 = vpop.f32.mrb[59].mxu0 }
 0x86c   : > { %6453 = vst [vmem:[#allocation24_spill] sm:$0xff] %v5210_v20  ;;  %v2687_v25 = vmax.f32 %v5208_v62, %v5210_v20 }
 0x870   : > { %v5214_v3 = vpop.f32.mrb[60].mxu1  ;;  %v5216_v63 = vpop.f32.mrb[60].mxu0 }
 0x871   : > { %6454 = vst [vmem:[#allocation25_spill] sm:$0xff] %v5216_v63  ;;  %v5218_v46 = vpop.f32.mrb[61].mxu1  ;;  %v5220_v47 = vpop.f32.mrb[61].mxu0 }
 0x872   : > { %6455 = vst [vmem:[#allocation26_spill] sm:$0xff] %v5220_v47  ;;  %v1856_v51 = vmax.f32 %v5214_v3, %v5218_v46  ;;  %v2690_v58 = vmax.f32 %v5216_v63, %v5220_v47  ;;  %v5226_v15 = vpop.f32.mrb[62].mxu1  ;;  %v5228_v57 = vpop.f32.mrb[62].mxu0 }
 0x873   : > { %6456 = vst [vmem:[#allocation27_spill] sm:$0xff] %v5228_v57  ;;  %v5230_v45 = vpop.f32.mrb[63].mxu1  ;;  %v5232_v42 = vpop.f32.mrb[63].mxu0 }
 0x874   : > { %6457 = vst [vmem:[#allocation28_spill] sm:$0xff] %v5232_v42  ;;  %v1859_v26 = vmax.f32 %v5226_v15, %v5230_v45  ;;  %v2693_v6 = vmax.f32 %v5228_v57, %v5232_v42  ;;  %1857 = vmax.xlane.f32.xlu0 %v1856_v51 }
 0x876   : > { %1860 = vmax.xlane.f32.xlu1 %v1859_v26 }
 0x878   : > { %v5238_v34 = vpop.f32.mrb[64].mxu0  ;;  %2685 = vmax.xlane.f32.xlu0 %v2684_v61  ;;  %v5240_v32 = vpop.f32.mrb[64].mxu1 }
 0x879   : > { %6458 = vst [vmem:[#allocation29_spill] sm:$0xff] %v5238_v34  ;;  %6459 = vst [vmem:[#allocation30_spill] sm:$0xff] %v5240_v32  ;;  %v5242_v47 = vpop.f32.mrb[65].mxu1  ;;  %v5244_v63 = vpop.f32.mrb[65].mxu0 }
 0x87a   : > { %6460 = vst [vmem:[#allocation31_spill] sm:$0xff] %v5242_v47  ;;  %6461 = vst [vmem:[#allocation32_spill] sm:$0xff] %v5244_v63  ;;  %v1862_v20 = vmax.f32 %v5240_v32, %v5242_v47  ;;  %v2696_v62 = vmax.f32 %v5238_v34, %v5244_v63  ;;  %v5250_v30 = vpop.f32.mrb[66].mxu0  ;;  %2688 = vmax.xlane.f32.xlu1 %v2687_v25  ;;  %v5252_v51 = vpop.f32.mrb[66].mxu1 }
 0x87b   : > { %6462 = vst [vmem:[#allocation33_spill] sm:$0xff] %v5250_v30  ;;  %6463 = vst [vmem:[#allocation34_spill] sm:$0xff] %v5252_v51  ;;  %v5254_v26 = vpop.f32.mrb[67].mxu1  ;;  %v5256_v61 = vpop.f32.mrb[67].mxu0 }
 0x87c   : > { %6464 = vst [vmem:[#allocation35_spill] sm:$0xff] %v5254_v26  ;;  %6465 = vst [vmem:[#allocation36_spill] sm:$0xff] %v5256_v61  ;;  %v1865_v42 = vmax.f32 %v5252_v51, %v5254_v26  ;;  %v2699_v57 = vmax.f32 %v5250_v30, %v5256_v61  ;;  %1863 = vmax.xlane.f32.xlu0 %v1862_v20 }
 0x87e   : > { %1866 = vmax.xlane.f32.xlu1 %v1865_v42 }
 0x880   : > { %v5262_v47 = vpop.f32.mrb[68].mxu0  ;;  %2691 = vmax.xlane.f32.xlu0 %v2690_v58  ;;  %v5264_v63 = vpop.f32.mrb[68].mxu1 }
 0x881   : > { %6466 = vst [vmem:[#allocation37_spill] sm:$0xff] %v5262_v47  ;;  %6467 = vst [vmem:[#allocation38_spill] sm:$0xff] %v5264_v63  ;;  %v5266_v25 = vpop.f32.mrb[69].mxu1  ;;  %v5268_v34 = vpop.f32.mrb[69].mxu0 }
 0x882   : > { %6468 = vst [vmem:[#allocation39_spill] sm:$0xff] %v5266_v25  ;;  %6469 = vst [vmem:[#allocation40_spill] sm:$0xff] %v5268_v34  ;;  %v1868_v32 = vmax.f32 %v5264_v63, %v5266_v25  ;;  %v2702_v26 = vmax.f32 %v5262_v47, %v5268_v34  ;;  %v5274_v51 = vpop.f32.mrb[70].mxu0  ;;  %2694 = vmax.xlane.f32.xlu1 %v2693_v6  ;;  %v5276_v20 = vpop.f32.mrb[70].mxu1 }
 0x883   : > { %6470 = vst [vmem:[#allocation41_spill] sm:$0xff] %v5274_v51  ;;  %6471 = vst [vmem:[#allocation42_spill] sm:$0xff] %v5276_v20  ;;  %v5278_v42 = vpop.f32.mrb[71].mxu1  ;;  %v5280_v58 = vpop.f32.mrb[71].mxu0 }
 0x884   : > { %6472 = vst [vmem:[#allocation43_spill] sm:$0xff] %v5278_v42  ;;  %6473 = vst [vmem:[#allocation44_spill] sm:$0xff] %v5280_v58  ;;  %v1871_v61 = vmax.f32 %v5276_v20, %v5278_v42  ;;  %v2705_v30 = vmax.f32 %v5274_v51, %v5280_v58  ;;  %1869 = vmax.xlane.f32.xlu0 %v1868_v32 }
 0x886   : > { %1872 = vmax.xlane.f32.xlu1 %v1871_v61 }
 0x888   : > { %v5286_v25 = vpop.f32.mrb[72].mxu0  ;;  %2697 = vmax.xlane.f32.xlu0 %v2696_v62  ;;  %v5288_v34 = vpop.f32.mrb[72].mxu1 }
 0x889   : > { %6474 = vst [vmem:[#allocation45_spill] sm:$0xff] %v5286_v25  ;;  %6475 = vst [vmem:[#allocation46_spill] sm:$0xff] %v5288_v34  ;;  %v5290_v6 = vpop.f32.mrb[73].mxu1  ;;  %v5292_v47 = vpop.f32.mrb[73].mxu0 }
 0x88a   : > { %6476 = vst [vmem:[#allocation47_spill] sm:$0xff] %v5290_v6  ;;  %6477 = vst [vmem:[#allocation48_spill] sm:$0xff] %v5292_v47  ;;  %v1874_v63 = vmax.f32 %v5288_v34, %v5290_v6  ;;  %v2708_v42 = vmax.f32 %v5286_v25, %v5292_v47  ;;  %v5298_v20 = vpop.f32.mrb[74].mxu0  ;;  %2700 = vmax.xlane.f32.xlu1 %v2699_v57  ;;  %v5300_v32 = vpop.f32.mrb[74].mxu1 }
 0x88b   : > { %6478 = vst [vmem:[#allocation49_spill] sm:$0xff] %v5298_v20  ;;  %6479 = vst [vmem:[#allocation50_spill] sm:$0xff] %v5300_v32  ;;  %v5302_v61 = vpop.f32.mrb[75].mxu1  ;;  %v5304_v62 = vpop.f32.mrb[75].mxu0 }
 0x88c   : > { %6480 = vst [vmem:[#allocation51_spill] sm:$0xff] %v5302_v61  ;;  %6481 = vst [vmem:[#allocation52_spill] sm:$0xff] %v5304_v62  ;;  %v1877_v58 = vmax.f32 %v5300_v32, %v5302_v61  ;;  %v2711_v51 = vmax.f32 %v5298_v20, %v5304_v62  ;;  %1875 = vmax.xlane.f32.xlu0 %v1874_v63 }
 0x88e   : > { %1878 = vmax.xlane.f32.xlu1 %v1877_v58 }
 0x890   : > { %2703 = vmax.xlane.f32.xlu0 %v2702_v26  ;;  %v5310_v6 = vpop.f32.mrb[76].mxu1  ;;  %v5312_v47 = vpop.f32.mrb[76].mxu0 }
 0x891   : > { %6482 = vst [vmem:[#allocation53_spill] sm:$0xff] %v5310_v6  ;;  %6483 = vst [vmem:[#allocation54_spill] sm:$0xff] %v5312_v47  ;;  %v5314_v57 = vpop.f32.mrb[77].mxu1  ;;  %v5316_v25 = vpop.f32.mrb[77].mxu0 }
 0x892   : > { %6484 = vst [vmem:[#allocation55_spill] sm:$0xff] %v5314_v57  ;;  %6485 = vst [vmem:[#allocation56_spill] sm:$0xff] %v5316_v25  ;;  %v1880_v34 = vmax.f32 %v5310_v6, %v5314_v57  ;;  %v2714_v61 = vmax.f32 %v5312_v47, %v5316_v25  ;;  %2706 = vmax.xlane.f32.xlu1 %v2705_v30  ;;  %v5322_v32 = vpop.f32.mrb[78].mxu1  ;;  %v5324_v63 = vpop.f32.mrb[78].mxu0 }
 0x893   : > { %6486 = vst [vmem:[#allocation57_spill] sm:$0xff] %v5322_v32  ;;  %6487 = vst [vmem:[#allocation58_spill] sm:$0xff] %v5324_v63  ;;  %v5326_v26 = vpop.f32.mrb[79].mxu1  ;;  %v5328_v58 = vpop.f32.mrb[79].mxu0 }
 0x894   : > { %6488 = vst [vmem:[#allocation59_spill] sm:$0xff] %v5326_v26  ;;  %6489 = vst [vmem:[#allocation60_spill] sm:$0xff] %v5328_v58  ;;  %v1883_v62 = vmax.f32 %v5322_v32, %v5326_v26  ;;  %v2717_v20 = vmax.f32 %v5324_v63, %v5328_v58  ;;  %1881 = vmax.xlane.f32.xlu0 %v1880_v34 }
 0x896   : > { %1884 = vmax.xlane.f32.xlu1 %v1883_v62 }
 0x898   : > { %2709 = vmax.xlane.f32.xlu0 %v2708_v42  ;;  %v5334_v57 = vpop.f32.mrb[80].mxu1  ;;  %v5336_v30 = vpop.f32.mrb[80].mxu0 }
 0x899   : > { %6490 = vst [vmem:[#allocation61_spill] sm:$0xff] %v5334_v57  ;;  %6491 = vst [vmem:[#allocation62_spill] sm:$0xff] %v5336_v30  ;;  %v5338_v25 = vpop.f32.mrb[81].mxu1  ;;  %v5340_v47 = vpop.f32.mrb[81].mxu0 }
 0x89a   : > { %6492 = vst [vmem:[#allocation63_spill] sm:$0xff] %v5338_v25  ;;  %6493 = vst [vmem:[#allocation64_spill] sm:$0xff] %v5340_v47  ;;  %v1886_v6 = vmax.f32 %v5334_v57, %v5338_v25  ;;  %v2720_v26 = vmax.f32 %v5336_v30, %v5340_v47  ;;  %2712 = vmax.xlane.f32.xlu1 %v2711_v51  ;;  %v5346_v32 = vpop.f32.mrb[82].mxu1  ;;  %v5348_v34 = vpop.f32.mrb[82].mxu0 }
 0x89b   : > { %6494 = vst [vmem:[#allocation65_spill] sm:$0xff] %v5346_v32  ;;  %6495 = vst [vmem:[#allocation66_spill] sm:$0xff] %v5348_v34  ;;  %v5350_v42 = vpop.f32.mrb[83].mxu1  ;;  %v5352_v62 = vpop.f32.mrb[83].mxu0 }
 0x89c   : > { %6496 = vst [vmem:[#allocation67_spill] sm:$0xff] %v5350_v42  ;;  %6497 = vst [vmem:[#allocation68_spill] sm:$0xff] %v5352_v62  ;;  %v1889_v58 = vmax.f32 %v5346_v32, %v5350_v42  ;;  %v2723_v63 = vmax.f32 %v5348_v34, %v5352_v62  ;;  %1887 = vmax.xlane.f32.xlu0 %v1886_v6 }
 0x89e   : > { %1890 = vmax.xlane.f32.xlu1 %v1889_v58 }
 0x8a0   : > { %v5358_v25 = vpop.f32.mrb[84].mxu1  ;;  %2715 = vmax.xlane.f32.xlu0 %v2714_v61  ;;  %v5360_v51 = vpop.f32.mrb[84].mxu0 }
 0x8a1   : > { %6498 = vst [vmem:[#allocation69_spill] sm:$0xff] %v5358_v25  ;;  %6499 = vst [vmem:[#allocation70_spill] sm:$0xff] %v5360_v51  ;;  %v5362_v47 = vpop.f32.mrb[85].mxu1  ;;  %v5364_v30 = vpop.f32.mrb[85].mxu0 }
 0x8a2   : > { %6500 = vst [vmem:[#allocation71_spill] sm:$0xff] %v5362_v47  ;;  %6501 = vst [vmem:[#allocation72_spill] sm:$0xff] %v5364_v30  ;;  %v1892_v57 = vmax.f32 %v5358_v25, %v5362_v47  ;;  %v2726_v42 = vmax.f32 %v5360_v51, %v5364_v30  ;;  %v5370_v32 = vpop.f32.mrb[86].mxu1  ;;  %2718 = vmax.xlane.f32.xlu1 %v2717_v20  ;;  %v5372_v6 = vpop.f32.mrb[86].mxu0 }
 0x8a3   : > { %6502 = vst [vmem:[#allocation73_spill] sm:$0xff] %v5370_v32  ;;  %6503 = vst [vmem:[#allocation74_spill] sm:$0xff] %v5372_v6  ;;  %v5374_v58 = vpop.f32.mrb[87].mxu1  ;;  %v5376_v61 = vpop.f32.mrb[87].mxu0 }
 0x8a4   : > { %6504 = vst [vmem:[#allocation75_spill] sm:$0xff] %v5374_v58  ;;  %6505 = vst [vmem:[#allocation76_spill] sm:$0xff] %v5376_v61  ;;  %v1895_v62 = vmax.f32 %v5370_v32, %v5374_v58  ;;  %v2729_v34 = vmax.f32 %v5372_v6, %v5376_v61  ;;  %1893 = vmax.xlane.f32.xlu0 %v1892_v57 }
 0x8a6   : > { %1896 = vmax.xlane.f32.xlu1 %v1895_v62 }
 0x8a8   : > { %v5382_v47 = vpop.f32.mrb[88].mxu1  ;;  %2721 = vmax.xlane.f32.xlu0 %v2720_v26  ;;  %v5384_v30 = vpop.f32.mrb[88].mxu0 }
 0x8a9   : > { %6506 = vst [vmem:[#allocation77_spill] sm:$0xff] %v5382_v47  ;;  %6507 = vst [vmem:[#allocation78_spill] sm:$0xff] %v5384_v30  ;;  %v5386_v20 = vpop.f32.mrb[89].mxu1  ;;  %v5388_v51 = vpop.f32.mrb[89].mxu0 }
 0x8aa   : > { %6508 = vst [vmem:[#allocation79_spill] sm:$0xff] %v5386_v20  ;;  %6509 = vst [vmem:[#allocation80_spill] sm:$0xff] %v5388_v51  ;;  %v1898_v25 = vmax.f32 %v5382_v47, %v5386_v20  ;;  %v2732_v58 = vmax.f32 %v5384_v30, %v5388_v51  ;;  %v5394_v32 = vpop.f32.mrb[90].mxu1  ;;  %2724 = vmax.xlane.f32.xlu1 %v2723_v63  ;;  %v5396_v57 = vpop.f32.mrb[90].mxu0 }
 0x8ab   : > { %6510 = vst [vmem:[#allocation81_spill] sm:$0xff] %v5394_v32  ;;  %6511 = vst [vmem:[#allocation82_spill] sm:$0xff] %v5396_v57  ;;  %v5398_v62 = vpop.f32.mrb[91].mxu1  ;;  %v5400_v26 = vpop.f32.mrb[91].mxu0 }
 0x8ac   : > { %6512 = vst [vmem:[#allocation83_spill] sm:$0xff] %v5398_v62  ;;  %6513 = vst [vmem:[#allocation84_spill] sm:$0xff] %v5400_v26  ;;  %v1901_v61 = vmax.f32 %v5394_v32, %v5398_v62  ;;  %v2735_v6 = vmax.f32 %v5396_v57, %v5400_v26  ;;  %1899 = vmax.xlane.f32.xlu0 %v1898_v25  ;;  %v5406_v20 = vpop.permute.xlu1 %1158 }
 0x8ad   : > { %6514 = vst [vmem:[#allocation85_spill] sm:$0xff] %v5406_v20 }
 0x8ae   : > { %1902 = vmax.xlane.f32.xlu1 %v1901_v61 }
 0x8b0   : > { %2727 = vmax.xlane.f32.xlu0 %v2726_v42  ;;  %v5408_v51 = vpop.f32.mrb[92].mxu0 }
 0x8b1   : > { %v1810_v63 = vpop.xlane.xlu0 %1809  ;;  %v5410_v30 = vpop.f32.mrb[93].mxu0 }
 0x8b2   : > { %v1904_v47 = vsub.f32 %v5070_v22, %v1810_v63  ;;  %v1905_v37 = vsub.f32 %v5072_v11, %v1810_v63  ;;  %v2738_v62 = vmax.f32 %v5408_v51, %v5410_v30  ;;  %2730 = vmax.xlane.f32.xlu1 %v2729_v34  ;;  %v5416_v32 = vpop.f32.mrb[94].mxu0 }
 0x8b3   : > { %v5418_v25 = vpop.f32.mrb[95].mxu0  ;;  %v1813_v61 = vpop.xlane.xlu1 %1812 }
 0x8b4   : > { %6515 = vst [vmem:[#allocation86_spill] sm:$0xff] %v5418_v25  ;;  %v1968_v20 = vmul.f32 1.442695, %v1904_v47  ;;  %v1970_v42 = vmul.f32 1.442695, %v1905_v37  ;;  %v2741_v26 = vmax.f32 %v5416_v32, %v5418_v25  ;;  %v1906_v57 = vsub.f32 %v5074_v31, %v1813_v61  ;;  %2733 = vmax.xlane.f32.xlu0 %v2732_v58 }
 0x8b5   : > { %v1907_v22 = vsub.f32 %v5078_v39, %v1813_v61 }
 0x8b6   : > { %3934 = vpow2.f32 %v1968_v20  ;;  %v1972_v11 = vmul.f32 1.442695, %v1906_v57  ;;  %2736 = vmax.xlane.f32.xlu1 %v2735_v6 }
 0x8b7   : > { %3936 = vpow2.f32 %v1970_v42  ;;  %v1974_v34 = vmul.f32 1.442695, %v1907_v22 }
 0x8b8   : > { %3938 = vpow2.f32 %v1972_v11  ;;  %2739 = vmax.xlane.f32.xlu0 %v2738_v62  ;;  %v5424_v63 = vpop.f32.mrb[96].mxu0 }
 0x8b9   : > { %3940 = vpow2.f32 %v1974_v34  ;;  %v1816_v47 = vpop.xlane.xlu0 %1815  ;;  %v5426_v37 = vpop.f32.mrb[97].mxu0 }
 0x8ba   : > { %v1908_v25 = vsub.f32 %v5082_v53, %v1816_v47  ;;  %v1909_v31 = vsub.f32 %v5084_v17, %v1816_v47  ;;  %v2744_v39 = vmax.f32 %v5424_v63, %v5426_v37  ;;  %2742 = vmax.xlane.f32.xlu1 %v2741_v26  ;;  %v5432_v58 = vpop.f32.mrb[98].mxu0 }
 0x8bb   : > { %v5434_v6 = vpop.f32.mrb[99].mxu0  ;;  %v1819_v20 = vpop.xlane.xlu1 %1818 }
 0x8bc   : > { %v1976_v57 = vmul.f32 1.442695, %v1908_v25  ;;  %v1978_v62 = vmul.f32 1.442695, %v1909_v31  ;;  %v2747_v61 = vmax.f32 %v5432_v58, %v5434_v6  ;;  %v1910_v42 = vsub.f32 %v5086_v16, %v1819_v20  ;;  %2745 = vmax.xlane.f32.xlu0 %v2744_v39 }
 0x8bd   : > { %v1911_v53 = vsub.f32 %v5090_v10, %v1819_v20 }
 0x8be   : > { %3942 = vpow2.f32 %v1976_v57  ;;  %v1980_v17 = vmul.f32 1.442695, %v1910_v42  ;;  %2748 = vmax.xlane.f32.xlu1 %v2747_v61 }
 0x8bf   : > { %3944 = vpow2.f32 %v1978_v62  ;;  %v1982_v26 = vmul.f32 1.442695, %v1911_v53 }
 0x8c0   : > { %v5440_v22 = vpop.eup %3934  ;;  %3946 = vpow2.f32 %v1980_v17  ;;  %v5442_v11 = vpop.f32.mrb[100].mxu0 }
 0x8c1   : > { %6516 = vst [vmem:[#allocation87_spill] sm:$0xff] %v5440_v22  ;;  %6517 = vst [vmem:[#allocation88_spill] sm:$0xff] %v5442_v11  ;;  %v5444_v25 = vpop.eup %3936  ;;  %3948 = vpow2.f32 %v1982_v26  ;;  %v1822_v34 = vpop.xlane.xlu0 %1821 }
 0x8c2   : > { %v5446_v47 = vpop.f32.mrb[101].mxu0  ;;  %v5448_v16 = vpop.eup %3938  ;;  %v1912_v10 = vsub.f32 %v5094_v33, %v1822_v34  ;;  %v1913_v31 = vsub.f32 %v5096_v0, %v1822_v34  ;;  %v2096_v57 = vadd.f32 %v5444_v25, %v5440_v22 }
 0x8c3   : > { %6518 = vst [vmem:[#allocation89_spill] sm:$0xff] %v5446_v47  ;;  %6519 = vst [vmem:[#allocation90_spill] sm:$0xff] %v5448_v16  ;;  %v2750_v39 = vmax.f32 %v5442_v11, %v5446_v47  ;;  %v5454_v20 = vpop.f32.mrb[102].mxu0  ;;  %v5458_v62 = vpop.eup %3940 }
 0x8c4   : > { %v5460_v61 = vpop.f32.mrb[103].mxu0  ;;  %v1825_v42 = vpop.xlane.xlu1 %1824  ;;  %v1984_v53 = vmul.f32 1.442695, %v1912_v10  ;;  %v1986_v17 = vmul.f32 1.442695, %v1913_v31  ;;  %2097 = vadd.xlane.f32.xlu0 %v2096_v57  ;;  %v2099_v34 = vadd.f32 %v5458_v62, %v5448_v16 }
 0x8c5   : > { %v2753_v33 = vmax.f32 %v5454_v20, %v5460_v61  ;;  %v1914_v0 = vsub.f32 %v5098_v54, %v1825_v42  ;;  %v1915_v26 = vsub.f32 %v5102_v55, %v1825_v42 }
 0x8c6   : > { %3950 = vpow2.f32 %v1984_v53  ;;  %2100 = vadd.xlane.f32.xlu1 %v2099_v34 }
 0x8c7   : > { %v1988_v47 = vmul.f32 1.442695, %v1914_v0  ;;  %3952 = vpow2.f32 %v1986_v17  ;;  %v1990_v11 = vmul.f32 1.442695, %v1915_v26 }
 0x8c8   : > { %v5468_v22 = vpop.eup %3942  ;;  %2751 = vmax.xlane.f32.xlu0 %v2750_v39  ;;  %v5470_v10 = vpop.f32.mrb[104].mxu0 }
 0x8c9   : > { %6520 = vst [vmem:[#allocation91_spill] sm:$0xff] %v5468_v22  ;;  %3954 = vpow2.f32 %v1988_v47  ;;  %6521 = vst [vmem:[#allocation92_spill] sm:$0xff] %v5470_v10  ;;  %v5472_v31 = vpop.eup %3944  ;;  %v1828_v54 = vpop.xlane.xlu0 %1827 }
 0x8ca   : > { %3956 = vpow2.f32 %v1990_v11  ;;  %v5474_v57 = vpop.f32.mrb[105].mxu0  ;;  %v5476_v55 = vpop.eup %3946  ;;  %v1916_v42 = vsub.f32 %v5106_v49, %v1828_v54  ;;  %v1917_v53 = vsub.f32 %v5108_v50, %v1828_v54  ;;  %v2102_v17 = vadd.f32 %v5472_v31, %v5468_v22  ;;  %2754 = vmax.xlane.f32.xlu1 %v2753_v33 }
 0x8cb   : > { %6522 = vst [vmem:[#allocation93_spill] sm:$0xff] %v5474_v57  ;;  %v2756_v47 = vmax.f32 %v5470_v10, %v5474_v57  ;;  %v5484_v39 = vpop.f32.mrb[106].mxu0  ;;  %v5486_v0 = vpop.eup %3948 }
 0x8cc   : > { %v1831_v11 = vpop.xlane.xlu1 %1830  ;;  %v5488_v26 = vpop.f32.mrb[107].mxu0  ;;  %v1992_v34 = vmul.f32 1.442695, %v1916_v42  ;;  %v1994_v16 = vmul.f32 1.442695, %v1917_v53  ;;  %2103 = vadd.xlane.f32.xlu0 %v2102_v17  ;;  %v2105_v54 = vadd.f32 %v5486_v0, %v5476_v55 }
 0x8cd   : > { %v1918_v49 = vsub.f32 %v5110_v60, %v1831_v11  ;;  %v1919_v50 = vsub.f32 %v5114_v56, %v1831_v11  ;;  %v2759_v57 = vmax.f32 %v5484_v39, %v5488_v26 }
 0x8ce   : > { %3958 = vpow2.f32 %v1992_v34  ;;  %2106 = vadd.xlane.f32.xlu1 %v2105_v54 }
 0x8cf   : > { %v1996_v10 = vmul.f32 1.442695, %v1918_v49  ;;  %v1998_v22 = vmul.f32 1.442695, %v1919_v50  ;;  %3960 = vpow2.f32 %v1994_v16 }
 0x8d0   : > { %v5496_v33 = vpop.eup %3950  ;;  %2757 = vmax.xlane.f32.xlu0 %v2756_v47 }
 0x8d1   : > { %3962 = vpow2.f32 %v1996_v10  ;;  %v5498_v42 = vpop.eup %3952  ;;  %v1834_v60 = vpop.xlane.xlu0 %1833 }
 0x8d2   : > { %3964 = vpow2.f32 %v1998_v22  ;;  %v1920_v53 = vsub.f32 %v5118_v59, %v1834_v60  ;;  %v1921_v17 = vsub.f32 %v5120_v19, %v1834_v60  ;;  %v2108_v11 = vadd.f32 %v5498_v42, %v5496_v33  ;;  %2760 = vmax.xlane.f32.xlu1 %v2759_v57 }
 0x8d3   : > { %v5500_v56 = vpop.eup %3954  ;;  %v1837_v16 = vpop.xlane.xlu1 %1836 }
 0x8d4   : > { %v5506_v34 = vpop.eup %3956  ;;  %v2000_v49 = vmul.f32 1.442695, %v1920_v53  ;;  %v2002_v10 = vmul.f32 1.442695, %v1921_v17  ;;  %2109 = vadd.xlane.f32.xlu0 %v2108_v11  ;;  %v1922_v47 = vsub.f32 %v5122_v27, %v1837_v16  ;;  %v1923_v22 = vsub.f32 %v5126_v9, %v1837_v16 }
 0x8d5   : > { %v2111_v50 = vadd.f32 %v5506_v34, %v5500_v56 }
 0x8d6   : > { %3966 = vpow2.f32 %v2000_v49  ;;  %v2004_v59 = vmul.f32 1.442695, %v1922_v47  ;;  %v2006_v19 = vmul.f32 1.442695, %v1923_v22 }
 0x8d7   : > { %3968 = vpow2.f32 %v2002_v10  ;;  %2112 = vadd.xlane.f32.xlu1 %v2111_v50 }
 0x8d8   : > { %v5512_v54 = vpop.eup %3958  ;;  %3970 = vpow2.f32 %v2004_v59 }
 0x8d9   : > { %v5514_v57 = vpop.eup %3960  ;;  %3972 = vpow2.f32 %v2006_v19  ;;  %v1840_v60 = vpop.xlane.xlu0 %1839 }
 0x8da   : > { %v1924_v27 = vsub.f32 %v5130_v18, %v1840_v60  ;;  %v1925_v9 = vsub.f32 %v5132_v21, %v1840_v60  ;;  %v2114_v17 = vadd.f32 %v5514_v57, %v5512_v54 }
 0x8db   : > { %v5516_v53 = vpop.eup %3962  ;;  %v1843_v16 = vpop.xlane.xlu1 %1842 }
 0x8dc   : > { %v5522_v11 = vpop.eup %3964  ;;  %v2008_v49 = vmul.f32 1.442695, %v1924_v27  ;;  %v2010_v10 = vmul.f32 1.442695, %v1925_v9  ;;  %2115 = vadd.xlane.f32.xlu0 %v2114_v17  ;;  %v1926_v47 = vsub.f32 %v5134_v29, %v1843_v16  ;;  %v1927_v22 = vsub.f32 %v5138_v23, %v1843_v16 }
 0x8dd   : > { %v2117_v50 = vadd.f32 %v5522_v11, %v5516_v53 }
 0x8de   : > { %3974 = vpow2.f32 %v2008_v49  ;;  %v2012_v18 = vmul.f32 1.442695, %v1926_v47  ;;  %v2014_v59 = vmul.f32 1.442695, %v1927_v22 }
 0x8df   : > { %3976 = vpow2.f32 %v2010_v10  ;;  %2118 = vadd.xlane.f32.xlu1 %v2117_v50 }
 0x8e0   : > { %v5528_v21 = vpop.eup %3966  ;;  %3978 = vpow2.f32 %v2012_v18 }
 0x8e1   : > { %v5530_v19 = vpop.eup %3968  ;;  %3980 = vpow2.f32 %v2014_v59  ;;  %v2668_v60 = vpop.xlane.xlu0 %2667 }
 0x8e2   : > { %v5532_v27 = vpop.eup %3970  ;;  %v2762_v29 = vsub.f32 %v5142_v2, %v2668_v60  ;;  %v2763_v23 = vsub.f32 %v5146_v35, %v2668_v60  ;;  %v2120_v9 = vadd.f32 %v5530_v19, %v5528_v21 }
 0x8e3   : > { %v5538_v17 = vpop.eup %3972  ;;  %v2671_v16 = vpop.xlane.xlu1 %2670 }
 0x8e4   : > { %v2826_v49 = vmul.f32 1.442695, %v2762_v29  ;;  %v2828_v10 = vmul.f32 1.442695, %v2763_v23  ;;  %2121 = vadd.xlane.f32.xlu0 %v2120_v9  ;;  %v2764_v47 = vsub.f32 %v5150_v1, %v2671_v16  ;;  %v2765_v22 = vsub.f32 %v5158_v40, %v2671_v16 }
 0x8e5   : > { %v1846_v50 = vpop.xlane.xlu0 %1845  ;;  %v2123_v18 = vadd.f32 %v5538_v17, %v5532_v27 }
 0x8e6   : > { %3982 = vpow2.f32 %v2826_v49  ;;  %v2830_v2 = vmul.f32 1.442695, %v2764_v47  ;;  %v2832_v35 = vmul.f32 1.442695, %v2765_v22  ;;  %v1928_v59 = vsub.f32 %v5144_v5, %v1846_v50 }
 0x8e7   : > { %3984 = vpow2.f32 %v2828_v10  ;;  %v1929_v60 = vsub.f32 %v5148_v36, %v1846_v50  ;;  %2124 = vadd.xlane.f32.xlu1 %v2123_v18  ;;  %v1849_v29 = vpop.xlane.xlu1 %1848 }
 0x8e8   : > { %v5546_v23 = vpop.eup %3974  ;;  %3986 = vpow2.f32 %v2830_v2  ;;  %v2016_v1 = vmul.f32 1.442695, %v1928_v59  ;;  %v1930_v40 = vsub.f32 %v5156_v12, %v1849_v29  ;;  %v1931_v9 = vsub.f32 %v5160_v13, %v1849_v29 }
 0x8e9   : > { %v5550_v16 = vpop.eup %3976  ;;  %3988 = vpow2.f32 %v2832_v35  ;;  %v2018_v49 = vmul.f32 1.442695, %v1929_v60  ;;  %v2674_v47 = vpop.xlane.xlu0 %2673 }
 0x8ea   : > { %v5552_v22 = vpop.eup %3978  ;;  %3990 = vpow2.f32 %v2016_v1  ;;  %v2020_v5 = vmul.f32 1.442695, %v1930_v40  ;;  %v2022_v36 = vmul.f32 1.442695, %v1931_v9  ;;  %v2766_v10 = vsub.f32 %v5166_v24, %v2674_v47 }
 0x8eb   : > { %v5555_v50 = vpop.eup %3980  ;;  %3992 = vpow2.f32 %v2018_v49  ;;  %v2767_v18 = vsub.f32 %v5170_v7, %v2674_v47  ;;  %v2126_v12 = vadd.f32 %v5550_v16, %v5546_v23  ;;  %v2677_v13 = vpop.xlane.xlu1 %2676 }
 0x8ec   : > { %3994 = vpow2.f32 %v2020_v5  ;;  %v2834_v2 = vmul.f32 1.442695, %v2766_v10  ;;  %v2768_v35 = vsub.f32 %v5176_v48, %v2677_v13  ;;  %v2769_v59 = vsub.f32 %v5182_v8, %v2677_v13 }
 0x8ed   : > { %3996 = vpow2.f32 %v2022_v36  ;;  %v2836_v60 = vmul.f32 1.442695, %v2767_v18  ;;  %2127 = vadd.xlane.f32.xlu0 %v2126_v12  ;;  %v1852_v29 = vpop.xlane.xlu0 %1851  ;;  %v2129_v24 = vadd.f32 %v5555_v50, %v5552_v22 }
 0x8ee   : > { %3998 = vpow2.f32 %v2834_v2  ;;  %v2838_v1 = vmul.f32 1.442695, %v2768_v35  ;;  %v2840_v7 = vmul.f32 1.442695, %v2769_v59  ;;  %v1932_v40 = vsub.f32 %v5168_v52, %v1852_v29 }
 0x8ef   : > { %4000 = vpow2.f32 %v2836_v60  ;;  %v1933_v9 = vsub.f32 %v5172_v28, %v1852_v29  ;;  %2130 = vadd.xlane.f32.xlu1 %v2129_v24  ;;  %v1855_v49 = vpop.xlane.xlu1 %1854 }
 0x8f0   : > { %v5566_v48 = vpop.eup %3982  ;;  %4002 = vpow2.f32 %v2838_v1  ;;  %v2024_v8 = vmul.f32 1.442695, %v1932_v40  ;;  %v1934_v47 = vsub.f32 %v5180_v14, %v1855_v49  ;;  %v1935_v5 = vsub.f32 %v5184_v4, %v1855_v49 }
 0x8f1   : > { %v5570_v36 = vpop.eup %3984  ;;  %4004 = vpow2.f32 %v2840_v7  ;;  %v2026_v10 = vmul.f32 1.442695, %v1933_v9  ;;  %v2680_v18 = vpop.xlane.xlu0 %2679 }
 0x8f2   : > { %v5572_v12 = vpop.eup %3986  ;;  %4006 = vpow2.f32 %v2024_v8  ;;  %v2028_v52 = vmul.f32 1.442695, %v1934_v47  ;;  %v2030_v28 = vmul.f32 1.442695, %v1935_v5  ;;  %v2770_v13 = vsub.f32 %v5190_v43, %v2680_v18 }
 0x8f3   : > { %v5575_v2 = vpop.eup %3988  ;;  %4008 = vpow2.f32 %v2026_v10  ;;  %v2771_v35 = vsub.f32 %v5192_v44, %v2680_v18  ;;  %v2954_v14 = vadd.f32 %v5570_v36, %v5566_v48  ;;  %v2683_v4 = vpop.xlane.xlu1 %2682 }
 0x8f4   : > { %v5580_v59 = vpop.eup %3990  ;;  %4010 = vpow2.f32 %v2028_v52  ;;  %v2842_v60 = vmul.f32 1.442695, %v2770_v13  ;;  %v2772_v29 = vsub.f32 %v5196_v38, %v2683_v4  ;;  %v2773_v24 = vsub.f32 %v5198_v41, %v2683_v4 }
 0x8f5   : > { %v5584_v1 = vpop.eup %3992  ;;  %4012 = vpow2.f32 %v2030_v28  ;;  %v2844_v43 = vmul.f32 1.442695, %v2771_v35  ;;  %2955 = vadd.xlane.f32.xlu0 %v2954_v14  ;;  %v2957_v44 = vadd.f32 %v5575_v2, %v5572_v12 }
 0x8f6   : > { %v5588_v7 = vpop.eup %3994  ;;  %4014 = vpow2.f32 %v2842_v60  ;;  %v2846_v40 = vmul.f32 1.442695, %v2772_v29  ;;  %v2848_v9 = vmul.f32 1.442695, %v2773_v24  ;;  %v2132_v49 = vadd.f32 %v5584_v1, %v5580_v59 }
 0x8f7   : > { %v5592_v8 = vpop.eup %3996  ;;  %4016 = vpow2.f32 %v2844_v43  ;;  %2958 = vadd.xlane.f32.xlu1 %v2957_v44 }
 0x8f8   : > { %v5594_v41 = vpop.eup %3998  ;;  %4018 = vpow2.f32 %v2846_v40  ;;  %v2135_v38 = vadd.f32 %v5592_v8, %v5588_v7 }
 0x8f9   : > { %6523 = vst [vmem:[#allocation94_spill] sm:$0xff] %v5594_v41  ;;  %v5598_v47 = vpop.eup %4000  ;;  %4020 = vpow2.f32 %v2848_v9  ;;  %2133 = vadd.xlane.f32.xlu0 %v2132_v49 }
 0x8fa   : > { %v5600_v5 = vpop.eup %4002  ;;  %v2960_v10 = vadd.f32 %v5598_v47, %v5594_v41 }
 0x8fb   : > { %6524 = vst [vmem:[#allocation95_spill] sm:$0xff] %v5600_v5  ;;  %v5604_v18 = vpop.eup %4004  ;;  %2136 = vadd.xlane.f32.xlu1 %v2135_v38 }
 0x8fc   : > { %v5606_v52 = vpop.eup %4006  ;;  %v2963_v28 = vadd.f32 %v5604_v18, %v5600_v5 }
 0x8fd   : > { %6525 = vst [vmem:[#allocation96_spill] sm:$0xff] %v5606_v52  ;;  %v5610_v13 = vpop.eup %4008  ;;  %2961 = vadd.xlane.f32.xlu0 %v2960_v10 }
 0x8fe   : > { %6526 = vst [vmem:[#allocation97_spill] sm:$0xff] %v5610_v13  ;;  %v5612_v35 = vpop.eup %4010  ;;  %v2138_v14 = vadd.f32 %v5610_v13, %v5606_v52  ;;  %v6533_v13 = vld [vmem:[#allocation21_spill] sm:$0xff] }
 0x8ff   : > { %6527 = vst [vmem:[#allocation98_spill] sm:$0xff] %v5612_v35  ;;  %v5616_v4 = vpop.eup %4012  ;;  %2964 = vadd.xlane.f32.xlu1 %v2963_v28 }
 0x900   : > { %6528 = vst [vmem:[#allocation99_spill] sm:$0xff] %v5616_v4  ;;  %v5618_v60 = vpop.eup %4014  ;;  %v2141_v29 = vadd.f32 %v5616_v4, %v5612_v35 }
 0x901   : > { %6529 = vst [vmem:[#allocation100_spill] sm:$0xff] %v5618_v60  ;;  %v5622_v24 = vpop.eup %4016  ;;  %2139 = vadd.xlane.f32.xlu0 %v2138_v14  ;;  %v1858_v43 = vpop.xlane.xlu0 %1857 }
 0x902   : > { %6530 = vst [vmem:[#allocation101_spill] sm:$0xff] %v5622_v24  ;;  %v5624_v44 = vpop.eup %4018  ;;  %v1936_v40 = vsub.f32 %v5214_v3, %v1858_v43  ;;  %v1937_v9 = vsub.f32 %v5218_v46, %v1858_v43  ;;  %v2966_v49 = vadd.f32 %v5622_v24, %v5618_v60  ;;  %v6534_v24 = vld [vmem:[#allocation22_spill] sm:$0xff] }
 0x903   : > { %6531 = vst [vmem:[#allocation102_spill] sm:$0xff] %v5624_v44  ;;  %v5630_v38 = vpop.eup %4020  ;;  %2142 = vadd.xlane.f32.xlu1 %v2141_v29  ;;  %v1861_v10 = vpop.xlane.xlu1 %1860 }
 0x904   : > { %6532 = vst [vmem:[#allocation103_spill] sm:$0xff] %v5630_v38  ;;  %v2032_v28 = vmul.f32 1.442695, %v1936_v40  ;;  %v2034_v52 = vmul.f32 1.442695, %v1937_v9  ;;  %v1938_v35 = vsub.f32 %v5226_v15, %v1861_v10  ;;  %v1939_v14 = vsub.f32 %v5230_v45, %v1861_v10  ;;  %v6535_v15 = vld [vmem:[#allocation23_spill] sm:$0xff] }
 0x905   : > { %2967 = vadd.xlane.f32.xlu0 %v2966_v49  ;;  %v2686_v4 = vpop.xlane.xlu0 %2685  ;;  %v2969_v3 = vadd.f32 %v5630_v38, %v5624_v44  ;;  %v6536_v45 = vld [vmem:[#allocation24_spill] sm:$0xff] }
 0x906   : > { %4022 = vpow2.f32 %v2032_v28  ;;  %v2036_v46 = vmul.f32 1.442695, %v1938_v35  ;;  %v2038_v43 = vmul.f32 1.442695, %v1939_v14  ;;  %v2774_v60 = vsub.f32 %v6533_v13, %v2686_v4  ;;  %v6537_v14 = vld [vmem:[#allocation30_spill] sm:$0xff] }
 0x907   : > { %4024 = vpow2.f32 %v2034_v52  ;;  %v2775_v29 = vsub.f32 %v6534_v24, %v2686_v4  ;;  %2970 = vadd.xlane.f32.xlu1 %v2969_v3  ;;  %v2689_v40 = vpop.xlane.xlu1 %2688  ;;  %v6538_v52 = vld [vmem:[#allocation31_spill] sm:$0xff]  ;;  %v6539_v3 = vld [vmem:[#allocation34_spill] sm:$0xff] }
 0x908   : > { %4026 = vpow2.f32 %v2036_v46  ;;  %v2850_v9 = vmul.f32 1.442695, %v2774_v60  ;;  %v2776_v5 = vsub.f32 %v6535_v15, %v2689_v40  ;;  %v2777_v49 = vsub.f32 %v6536_v45, %v2689_v40  ;;  %v6540_v46 = vld [vmem:[#allocation35_spill] sm:$0xff] }
 0x909   : > { %4028 = vpow2.f32 %v2038_v43  ;;  %v2852_v10 = vmul.f32 1.442695, %v2775_v29  ;;  %v1864_v41 = vpop.xlane.xlu0 %1863 }
 0x90a   : > { %4030 = vpow2.f32 %v2850_v9  ;;  %v2854_v28 = vmul.f32 1.442695, %v2776_v5  ;;  %v2856_v35 = vmul.f32 1.442695, %v2777_v49  ;;  %v1940_v44 = vsub.f32 %v6537_v14, %v1864_v41  ;;  %v6541_v5 = vld [vmem:[#allocation25_spill] sm:$0xff]  ;;  %v6542_v49 = vld [vmem:[#allocation26_spill] sm:$0xff] }
 0x90b   : > { %4032 = vpow2.f32 %v2852_v10  ;;  %v1941_v13 = vsub.f32 %v6538_v52, %v1864_v41  ;;  %v1867_v4 = vpop.xlane.xlu1 %1866 }
 0x90c   : > { %4034 = vpow2.f32 %v2854_v28  ;;  %v2040_v24 = vmul.f32 1.442695, %v1940_v44  ;;  %v1942_v60 = vsub.f32 %v6539_v3, %v1867_v4  ;;  %v1943_v15 = vsub.f32 %v6540_v46, %v1867_v4  ;;  %v6544_v28 = vld [vmem:[#allocation27_spill] sm:$0xff]  ;;  %v6545_v3 = vld [vmem:[#allocation28_spill] sm:$0xff] }
 0x90d   : > { %4036 = vpow2.f32 %v2856_v35  ;;  %v2042_v40 = vmul.f32 1.442695, %v1941_v13  ;;  %v2692_v43 = vpop.xlane.xlu0 %2691 }
 0x90e   : > { %4038 = vpow2.f32 %v2040_v24  ;;  %v2044_v29 = vmul.f32 1.442695, %v1942_v60  ;;  %v2046_v9 = vmul.f32 1.442695, %v1943_v15  ;;  %v2778_v45 = vsub.f32 %v6541_v5, %v2692_v43 }
 0x90f   : > { %4040 = vpow2.f32 %v2042_v40  ;;  %v2779_v10 = vsub.f32 %v6542_v49, %v2692_v43  ;;  %v2695_v14 = vpop.xlane.xlu1 %2694  ;;  %v6548_v40 = vld [vmem:[#allocation38_spill] sm:$0xff] }
 0x910   : > { %v5646_v41 = vpop.eup %4022  ;;  %4042 = vpow2.f32 %v2044_v29  ;;  %v2858_v44 = vmul.f32 1.442695, %v2778_v45  ;;  %v2780_v52 = vsub.f32 %v6544_v28, %v2695_v14  ;;  %v2781_v4 = vsub.f32 %v6545_v3, %v2695_v14  ;;  %v6550_v29 = vld [vmem:[#allocation39_spill] sm:$0xff] }
 0x911   : > { %6543 = vst [vmem:[#allocation21_spill] sm:$0xff] %v5646_v41  ;;  %v5650_v35 = vpop.eup %4024  ;;  %4044 = vpow2.f32 %v2046_v9  ;;  %v2860_v13 = vmul.f32 1.442695, %v2779_v10  ;;  %v1870_v24 = vpop.xlane.xlu0 %1869  ;;  %v6552_v10 = vld [vmem:[#allocation42_spill] sm:$0xff] }
 0x912   : > { %6546 = vst [vmem:[#allocation22_spill] sm:$0xff] %v5650_v35  ;;  %v5652_v60 = vpop.eup %4026  ;;  %4046 = vpow2.f32 %v2858_v44  ;;  %v2862_v46 = vmul.f32 1.442695, %v2780_v52  ;;  %v2864_v15 = vmul.f32 1.442695, %v2781_v4  ;;  %v1944_v43 = vsub.f32 %v6548_v40, %v1870_v24  ;;  %v6553_v44 = vld [vmem:[#allocation43_spill] sm:$0xff] }
 0x913   : > { %6547 = vst [vmem:[#allocation23_spill] sm:$0xff] %v5652_v60  ;;  %v5655_v5 = vpop.eup %4028  ;;  %4048 = vpow2.f32 %v2860_v13  ;;  %v1945_v45 = vsub.f32 %v6550_v29, %v1870_v24  ;;  %v2144_v49 = vadd.f32 %v5650_v35, %v5646_v41  ;;  %v1873_v14 = vpop.xlane.xlu1 %1872 }
 0x914   : > { %6549 = vst [vmem:[#allocation24_spill] sm:$0xff] %v5655_v5  ;;  %v5660_v28 = vpop.eup %4030  ;;  %4050 = vpow2.f32 %v2862_v46  ;;  %v2048_v9 = vmul.f32 1.442695, %v1944_v43  ;;  %v1946_v3 = vsub.f32 %v6552_v10, %v1873_v14  ;;  %v1947_v52 = vsub.f32 %v6553_v44, %v1873_v14  ;;  %v6556_v46 = vld [vmem:[#allocation29_spill] sm:$0xff]  ;;  %v6558_v14 = vld [vmem:[#allocation32_spill] sm:$0xff] }
 0x915   : > { %6551 = vst [vmem:[#allocation30_spill] sm:$0xff] %v5660_v28  ;;  %v5664_v4 = vpop.eup %4032  ;;  %4052 = vpow2.f32 %v2864_v15  ;;  %v2050_v40 = vmul.f32 1.442695, %v1945_v45  ;;  %2145 = vadd.xlane.f32.xlu0 %v2144_v49  ;;  %v2698_v13 = vpop.xlane.xlu0 %2697  ;;  %v2147_v24 = vadd.f32 %v5655_v5, %v5652_v60  ;;  %v6560_v60 = vld [vmem:[#allocation33_spill] sm:$0xff] }
 0x916   : > { %6554 = vst [vmem:[#allocation31_spill] sm:$0xff] %v5664_v4  ;;  %v5668_v29 = vpop.eup %4034  ;;  %4054 = vpow2.f32 %v2048_v9  ;;  %v2052_v41 = vmul.f32 1.442695, %v1946_v3  ;;  %v2054_v35 = vmul.f32 1.442695, %v1947_v52  ;;  %v2782_v43 = vsub.f32 %v6556_v46, %v2698_v13  ;;  %v6561_v3 = vld [vmem:[#allocation36_spill] sm:$0xff] }
 0x917   : > { %6555 = vst [vmem:[#allocation34_spill] sm:$0xff] %v5668_v29  ;;  %v5671_v38 = vpop.eup %4036  ;;  %4056 = vpow2.f32 %v2050_v40  ;;  %v2783_v10 = vsub.f32 %v6558_v14, %v2698_v13  ;;  %2148 = vadd.xlane.f32.xlu1 %v2147_v24  ;;  %v2972_v15 = vadd.f32 %v5664_v4, %v5660_v28  ;;  %v2701_v45 = vpop.xlane.xlu1 %2700 }
 0x918   : > { %6557 = vst [vmem:[#allocation35_spill] sm:$0xff] %v5671_v38  ;;  %v5676_v49 = vpop.eup %4038  ;;  %4058 = vpow2.f32 %v2052_v41  ;;  %v2866_v44 = vmul.f32 1.442695, %v2782_v43  ;;  %v2784_v9 = vsub.f32 %v6560_v60, %v2701_v45  ;;  %v2785_v52 = vsub.f32 %v6561_v3, %v2701_v45  ;;  %v6564_v41 = vld [vmem:[#allocation46_spill] sm:$0xff]  ;;  %v6566_v60 = vld [vmem:[#allocation47_spill] sm:$0xff] }
 0x919   : > { %6559 = vst [vmem:[#allocation25_spill] sm:$0xff] %v5676_v49  ;;  %v5680_v5 = vpop.eup %4040  ;;  %4060 = vpow2.f32 %v2054_v35  ;;  %v2868_v46 = vmul.f32 1.442695, %v2783_v10  ;;  %2973 = vadd.xlane.f32.xlu0 %v2972_v15  ;;  %v1876_v40 = vpop.xlane.xlu0 %1875  ;;  %v2975_v13 = vadd.f32 %v5671_v38, %v5668_v29  ;;  %v6568_v29 = vld [vmem:[#allocation50_spill] sm:$0xff] }
 0x91a   : > { %6562 = vst [vmem:[#allocation26_spill] sm:$0xff] %v5680_v5  ;;  %v5684_v24 = vpop.eup %4042  ;;  %4062 = vpow2.f32 %v2866_v44  ;;  %v2870_v14 = vmul.f32 1.442695, %v2784_v9  ;;  %v2872_v28 = vmul.f32 1.442695, %v2785_v52  ;;  %v1948_v43 = vsub.f32 %v6564_v41, %v1876_v40  ;;  %v6569_v9 = vld [vmem:[#allocation51_spill] sm:$0xff] }
 0x91b   : > { %6563 = vst [vmem:[#allocation27_spill] sm:$0xff] %v5684_v24  ;;  %v5687_v4 = vpop.eup %4044  ;;  %4064 = vpow2.f32 %v2868_v46  ;;  %v1949_v45 = vsub.f32 %v6566_v60, %v1876_v40  ;;  %2976 = vadd.xlane.f32.xlu1 %v2975_v13  ;;  %v2150_v35 = vadd.f32 %v5680_v5, %v5676_v49  ;;  %v1879_v10 = vpop.xlane.xlu1 %1878 }
 0x91c   : > { %6565 = vst [vmem:[#allocation28_spill] sm:$0xff] %v5687_v4  ;;  %v5692_v15 = vpop.eup %4046  ;;  %4066 = vpow2.f32 %v2870_v14  ;;  %v2056_v3 = vmul.f32 1.442695, %v1948_v43  ;;  %v1950_v44 = vsub.f32 %v6568_v29, %v1879_v10  ;;  %v1951_v52 = vsub.f32 %v6569_v9, %v1879_v10  ;;  %v6572_v14 = vld [vmem:[#allocation37_spill] sm:$0xff]  ;;  %v6574_v29 = vld [vmem:[#allocation40_spill] sm:$0xff] }
 0x91d   : > { %6567 = vst [vmem:[#allocation38_spill] sm:$0xff] %v5692_v15  ;;  %v5696_v38 = vpop.eup %4048  ;;  %4068 = vpow2.f32 %v2872_v28  ;;  %v2058_v41 = vmul.f32 1.442695, %v1949_v45  ;;  %2151 = vadd.xlane.f32.xlu0 %v2150_v35  ;;  %v2704_v46 = vpop.xlane.xlu0 %2703  ;;  %v2153_v40 = vadd.f32 %v5687_v4, %v5684_v24  ;;  %v6576_v24 = vld [vmem:[#allocation41_spill] sm:$0xff] }
 0x91e   : > { %6570 = vst [vmem:[#allocation39_spill] sm:$0xff] %v5696_v38  ;;  %v5700_v13 = vpop.eup %4050  ;;  %4070 = vpow2.f32 %v2056_v3  ;;  %v2060_v60 = vmul.f32 1.442695, %v1950_v44  ;;  %v2062_v49 = vmul.f32 1.442695, %v1951_v52  ;;  %v2786_v43 = vsub.f32 %v6572_v14, %v2704_v46  ;;  %v6577_v44 = vld [vmem:[#allocation44_spill] sm:$0xff] }
 0x91f   : > { %6571 = vst [vmem:[#allocation42_spill] sm:$0xff] %v5700_v13  ;;  %v5703_v5 = vpop.eup %4052  ;;  %4072 = vpow2.f32 %v2058_v41  ;;  %v2787_v10 = vsub.f32 %v6574_v29, %v2704_v46  ;;  %2154 = vadd.xlane.f32.xlu1 %v2153_v40  ;;  %v2978_v28 = vadd.f32 %v5696_v38, %v5692_v15  ;;  %v2707_v45 = vpop.xlane.xlu1 %2706 }
 0x920   : > { %6573 = vst [vmem:[#allocation43_spill] sm:$0xff] %v5703_v5  ;;  %v5708_v35 = vpop.eup %4054  ;;  %4074 = vpow2.f32 %v2060_v60  ;;  %v2874_v9 = vmul.f32 1.442695, %v2786_v43  ;;  %v2788_v3 = vsub.f32 %v6576_v24, %v2707_v45  ;;  %v2789_v52 = vsub.f32 %v6577_v44, %v2707_v45  ;;  %v6580_v60 = vld [vmem:[#allocation53_spill] sm:$0xff]  ;;  %v6582_v24 = vld [vmem:[#allocation55_spill] sm:$0xff] }
 0x921   : > { %6575 = vst [vmem:[#allocation29_spill] sm:$0xff] %v5708_v35  ;;  %v5712_v4 = vpop.eup %4056  ;;  %4076 = vpow2.f32 %v2062_v49  ;;  %v2876_v14 = vmul.f32 1.442695, %v2787_v10  ;;  %2979 = vadd.xlane.f32.xlu0 %v2978_v28  ;;  %v1882_v41 = vpop.xlane.xlu0 %1881  ;;  %v2981_v46 = vadd.f32 %v5703_v5, %v5700_v13  ;;  %v6584_v13 = vld [vmem:[#allocation57_spill] sm:$0xff] }
 0x922   : > { %6578 = vst [vmem:[#allocation32_spill] sm:$0xff] %v5712_v4  ;;  %v5716_v40 = vpop.eup %4058  ;;  %4078 = vpow2.f32 %v2874_v9  ;;  %v2878_v29 = vmul.f32 1.442695, %v2788_v3  ;;  %v2880_v15 = vmul.f32 1.442695, %v2789_v52  ;;  %v1952_v43 = vsub.f32 %v6580_v60, %v1882_v41  ;;  %v6585_v3 = vld [vmem:[#allocation59_spill] sm:$0xff] }
 0x923   : > { %6579 = vst [vmem:[#allocation33_spill] sm:$0xff] %v5716_v40  ;;  %v5719_v38 = vpop.eup %4060  ;;  %4080 = vpow2.f32 %v2876_v14  ;;  %v1953_v45 = vsub.f32 %v6582_v24, %v1882_v41  ;;  %2982 = vadd.xlane.f32.xlu1 %v2981_v46  ;;  %v2156_v49 = vadd.f32 %v5712_v4, %v5708_v35  ;;  %v1885_v10 = vpop.xlane.xlu1 %1884 }
 0x924   : > { %6581 = vst [vmem:[#allocation36_spill] sm:$0xff] %v5719_v38  ;;  %v5724_v28 = vpop.eup %4062  ;;  %4082 = vpow2.f32 %v2878_v29  ;;  %v2064_v44 = vmul.f32 1.442695, %v1952_v43  ;;  %v1954_v9 = vsub.f32 %v6584_v13, %v1885_v10  ;;  %v1955_v52 = vsub.f32 %v6585_v3, %v1885_v10  ;;  %v6588_v29 = vld [vmem:[#allocation45_spill] sm:$0xff]  ;;  %v6590_v13 = vld [vmem:[#allocation48_spill] sm:$0xff] }
 0x925   : > { %6583 = vst [vmem:[#allocation46_spill] sm:$0xff] %v5724_v28  ;;  %v5728_v5 = vpop.eup %4064  ;;  %4084 = vpow2.f32 %v2880_v15  ;;  %v2066_v60 = vmul.f32 1.442695, %v1953_v45  ;;  %2157 = vadd.xlane.f32.xlu0 %v2156_v49  ;;  %v2710_v14 = vpop.xlane.xlu0 %2709  ;;  %v2159_v41 = vadd.f32 %v5719_v38, %v5716_v40  ;;  %v6592_v40 = vld [vmem:[#allocation49_spill] sm:$0xff] }
 0x926   : > { %6586 = vst [vmem:[#allocation47_spill] sm:$0xff] %v5728_v5  ;;  %v5732_v46 = vpop.eup %4066  ;;  %4086 = vpow2.f32 %v2064_v44  ;;  %v2068_v24 = vmul.f32 1.442695, %v1954_v9  ;;  %v2070_v35 = vmul.f32 1.442695, %v1955_v52  ;;  %v2790_v43 = vsub.f32 %v6588_v29, %v2710_v14  ;;  %v6593_v9 = vld [vmem:[#allocation52_spill] sm:$0xff] }
 0x927   : > { %6587 = vst [vmem:[#allocation50_spill] sm:$0xff] %v5732_v46  ;;  %v5735_v4 = vpop.eup %4068  ;;  %4088 = vpow2.f32 %v2066_v60  ;;  %v2791_v10 = vsub.f32 %v6590_v13, %v2710_v14  ;;  %2160 = vadd.xlane.f32.xlu1 %v2159_v41  ;;  %v2984_v15 = vadd.f32 %v5728_v5, %v5724_v28  ;;  %v2713_v45 = vpop.xlane.xlu1 %2712 }
 0x928   : > { %6589 = vst [vmem:[#allocation51_spill] sm:$0xff] %v5735_v4  ;;  %v5740_v49 = vpop.eup %4070  ;;  %4090 = vpow2.f32 %v2068_v24  ;;  %v2882_v3 = vmul.f32 1.442695, %v2790_v43  ;;  %v2792_v44 = vsub.f32 %v6592_v40, %v2713_v45  ;;  %v2793_v52 = vsub.f32 %v6593_v9, %v2713_v45  ;;  %v6596_v24 = vld [vmem:[#allocation61_spill] sm:$0xff]  ;;  %v6598_v40 = vld [vmem:[#allocation63_spill] sm:$0xff] }
 0x929   : > { %6591 = vst [vmem:[#allocation37_spill] sm:$0xff] %v5740_v49  ;;  %v5744_v38 = vpop.eup %4072  ;;  %4092 = vpow2.f32 %v2070_v35  ;;  %v2884_v29 = vmul.f32 1.442695, %v2791_v10  ;;  %2985 = vadd.xlane.f32.xlu0 %v2984_v15  ;;  %v1888_v60 = vpop.xlane.xlu0 %1887  ;;  %v2987_v14 = vadd.f32 %v5735_v4, %v5732_v46  ;;  %v6600_v46 = vld [vmem:[#allocation65_spill] sm:$0xff] }
 0x92a   : > { %6594 = vst [vmem:[#allocation40_spill] sm:$0xff] %v5744_v38  ;;  %v5748_v41 = vpop.eup %4074  ;;  %4094 = vpow2.f32 %v2882_v3  ;;  %v2886_v13 = vmul.f32 1.442695, %v2792_v44  ;;  %v2888_v28 = vmul.f32 1.442695, %v2793_v52  ;;  %v1956_v43 = vsub.f32 %v6596_v24, %v1888_v60  ;;  %v6601_v44 = vld [vmem:[#allocation67_spill] sm:$0xff] }
 0x92b   : > { %6595 = vst [vmem:[#allocation41_spill] sm:$0xff] %v5748_v41  ;;  %v5751_v5 = vpop.eup %4076  ;;  %4096 = vpow2.f32 %v2884_v29  ;;  %v1957_v45 = vsub.f32 %v6598_v40, %v1888_v60  ;;  %2988 = vadd.xlane.f32.xlu1 %v2987_v14  ;;  %v2162_v35 = vadd.f32 %v5744_v38, %v5740_v49  ;;  %v1891_v10 = vpop.xlane.xlu1 %1890 }
 0x92c   : > { %6597 = vst [vmem:[#allocation44_spill] sm:$0xff] %v5751_v5  ;;  %v5756_v15 = vpop.eup %4078  ;;  %4098 = vpow2.f32 %v2886_v13  ;;  %v2072_v9 = vmul.f32 1.442695, %v1956_v43  ;;  %v1958_v3 = vsub.f32 %v6600_v46, %v1891_v10  ;;  %v1959_v52 = vsub.f32 %v6601_v44, %v1891_v10  ;;  %v6604_v13 = vld [vmem:[#allocation54_spill] sm:$0xff]  ;;  %v6606_v46 = vld [vmem:[#allocation56_spill] sm:$0xff] }
 0x92d   : > { %6599 = vst [vmem:[#allocation53_spill] sm:$0xff] %v5756_v15  ;;  %v5760_v4 = vpop.eup %4080  ;;  %4100 = vpow2.f32 %v2888_v28  ;;  %v2074_v24 = vmul.f32 1.442695, %v1957_v45  ;;  %2163 = vadd.xlane.f32.xlu0 %v2162_v35  ;;  %v2716_v29 = vpop.xlane.xlu0 %2715  ;;  %v2165_v60 = vadd.f32 %v5751_v5, %v5748_v41  ;;  %v6608_v41 = vld [vmem:[#allocation58_spill] sm:$0xff] }
 0x92e   : > { %6602 = vst [vmem:[#allocation55_spill] sm:$0xff] %v5760_v4  ;;  %v5764_v14 = vpop.eup %4082  ;;  %4102 = vpow2.f32 %v2072_v9  ;;  %v2076_v40 = vmul.f32 1.442695, %v1958_v3  ;;  %v2078_v49 = vmul.f32 1.442695, %v1959_v52  ;;  %v2794_v43 = vsub.f32 %v6604_v13, %v2716_v29  ;;  %v6609_v3 = vld [vmem:[#allocation60_spill] sm:$0xff] }
 0x92f   : > { %6603 = vst [vmem:[#allocation57_spill] sm:$0xff] %v5764_v14  ;;  %v5767_v38 = vpop.eup %4084  ;;  %4104 = vpow2.f32 %v2074_v24  ;;  %v2795_v10 = vsub.f32 %v6606_v46, %v2716_v29  ;;  %2166 = vadd.xlane.f32.xlu1 %v2165_v60  ;;  %v2990_v28 = vadd.f32 %v5760_v4, %v5756_v15  ;;  %v2719_v45 = vpop.xlane.xlu1 %2718 }
 0x930   : > { %6605 = vst [vmem:[#allocation59_spill] sm:$0xff] %v5767_v38  ;;  %v5772_v35 = vpop.eup %4086  ;;  %4106 = vpow2.f32 %v2076_v40  ;;  %v2890_v44 = vmul.f32 1.442695, %v2794_v43  ;;  %v2796_v9 = vsub.f32 %v6608_v41, %v2719_v45  ;;  %v2797_v52 = vsub.f32 %v6609_v3, %v2719_v45  ;;  %v6612_v40 = vld [vmem:[#allocation69_spill] sm:$0xff]  ;;  %v6614_v41 = vld [vmem:[#allocation71_spill] sm:$0xff] }
 0x931   : > { %6607 = vst [vmem:[#allocation45_spill] sm:$0xff] %v5772_v35  ;;  %v5776_v5 = vpop.eup %4088  ;;  %4108 = vpow2.f32 %v2078_v49  ;;  %v2892_v13 = vmul.f32 1.442695, %v2795_v10  ;;  %2991 = vadd.xlane.f32.xlu0 %v2990_v28  ;;  %v1894_v24 = vpop.xlane.xlu0 %1893  ;;  %v2993_v29 = vadd.f32 %v5767_v38, %v5764_v14  ;;  %v6616_v14 = vld [vmem:[#allocation73_spill] sm:$0xff] }
 0x932   : > { %6610 = vst [vmem:[#allocation48_spill] sm:$0xff] %v5776_v5  ;;  %v5780_v60 = vpop.eup %4090  ;;  %4110 = vpow2.f32 %v2890_v44  ;;  %v2894_v46 = vmul.f32 1.442695, %v2796_v9  ;;  %v2896_v15 = vmul.f32 1.442695, %v2797_v52  ;;  %v1960_v43 = vsub.f32 %v6612_v40, %v1894_v24  ;;  %v6617_v9 = vld [vmem:[#allocation75_spill] sm:$0xff] }
 0x933   : > { %6611 = vst [vmem:[#allocation49_spill] sm:$0xff] %v5780_v60  ;;  %v5783_v4 = vpop.eup %4092  ;;  %4112 = vpow2.f32 %v2892_v13  ;;  %v1961_v45 = vsub.f32 %v6614_v41, %v1894_v24  ;;  %2994 = vadd.xlane.f32.xlu1 %v2993_v29  ;;  %v2168_v49 = vadd.f32 %v5776_v5, %v5772_v35  ;;  %v1897_v10 = vpop.xlane.xlu1 %1896 }
 0x934   : > { %6613 = vst [vmem:[#allocation52_spill] sm:$0xff] %v5783_v4  ;;  %v5788_v28 = vpop.eup %4094  ;;  %4114 = vpow2.f32 %v2894_v46  ;;  %v2080_v3 = vmul.f32 1.442695, %v1960_v43  ;;  %v1962_v44 = vsub.f32 %v6616_v14, %v1897_v10  ;;  %v1963_v52 = vsub.f32 %v6617_v9, %v1897_v10  ;;  %v6620_v46 = vld [vmem:[#allocation62_spill] sm:$0xff]  ;;  %v6622_v14 = vld [vmem:[#allocation64_spill] sm:$0xff] }
 0x935   : > { %6615 = vst [vmem:[#allocation61_spill] sm:$0xff] %v5788_v28  ;;  %v5792_v38 = vpop.eup %4096  ;;  %4116 = vpow2.f32 %v2896_v15  ;;  %v2082_v40 = vmul.f32 1.442695, %v1961_v45  ;;  %2169 = vadd.xlane.f32.xlu0 %v2168_v49  ;;  %v2722_v13 = vpop.xlane.xlu0 %2721  ;;  %v2171_v24 = vadd.f32 %v5783_v4, %v5780_v60  ;;  %v6624_v60 = vld [vmem:[#allocation66_spill] sm:$0xff] }
 0x936   : > { %6618 = vst [vmem:[#allocation63_spill] sm:$0xff] %v5792_v38  ;;  %v5796_v29 = vpop.eup %4098  ;;  %4118 = vpow2.f32 %v2080_v3  ;;  %v2084_v41 = vmul.f32 1.442695, %v1962_v44  ;;  %v2086_v35 = vmul.f32 1.442695, %v1963_v52  ;;  %v2798_v43 = vsub.f32 %v6620_v46, %v2722_v13  ;;  %v6625_v44 = vld [vmem:[#allocation68_spill] sm:$0xff] }
 0x937   : > { %6619 = vst [vmem:[#allocation65_spill] sm:$0xff] %v5796_v29  ;;  %v5799_v5 = vpop.eup %4100  ;;  %4120 = vpow2.f32 %v2082_v40  ;;  %v2799_v10 = vsub.f32 %v6622_v14, %v2722_v13  ;;  %2172 = vadd.xlane.f32.xlu1 %v2171_v24  ;;  %v2996_v15 = vadd.f32 %v5792_v38, %v5788_v28  ;;  %v2725_v45 = vpop.xlane.xlu1 %2724 }
 0x938   : > { %6621 = vst [vmem:[#allocation67_spill] sm:$0xff] %v5799_v5  ;;  %v5804_v49 = vpop.eup %4102  ;;  %4122 = vpow2.f32 %v2084_v41  ;;  %v2898_v9 = vmul.f32 1.442695, %v2798_v43  ;;  %v2800_v3 = vsub.f32 %v6624_v60, %v2725_v45  ;;  %v2801_v52 = vsub.f32 %v6625_v44, %v2725_v45  ;;  %v6628_v41 = vld [vmem:[#allocation77_spill] sm:$0xff]  ;;  %v6630_v60 = vld [vmem:[#allocation79_spill] sm:$0xff] }
 0x939   : > { %6623 = vst [vmem:[#allocation54_spill] sm:$0xff] %v5804_v49  ;;  %v5808_v4 = vpop.eup %4104  ;;  %4124 = vpow2.f32 %v2086_v35  ;;  %v2900_v46 = vmul.f32 1.442695, %v2799_v10  ;;  %2997 = vadd.xlane.f32.xlu0 %v2996_v15  ;;  %v1900_v40 = vpop.xlane.xlu0 %1899  ;;  %v2999_v13 = vadd.f32 %v5799_v5, %v5796_v29  ;;  %v6632_v29 = vld [vmem:[#allocation81_spill] sm:$0xff] }
 0x93a   : > { %6626 = vst [vmem:[#allocation56_spill] sm:$0xff] %v5808_v4  ;;  %v5812_v24 = vpop.eup %4106  ;;  %4126 = vpow2.f32 %v2898_v9  ;;  %v2902_v14 = vmul.f32 1.442695, %v2800_v3  ;;  %v2904_v28 = vmul.f32 1.442695, %v2801_v52  ;;  %v1964_v43 = vsub.f32 %v6628_v41, %v1900_v40  ;;  %v6633_v3 = vld [vmem:[#allocation83_spill] sm:$0xff] }
 0x93b   : > { %6627 = vst [vmem:[#allocation58_spill] sm:$0xff] %v5812_v24  ;;  %v5815_v38 = vpop.eup %4108  ;;  %4128 = vpow2.f32 %v2900_v46  ;;  %v1965_v45 = vsub.f32 %v6630_v60, %v1900_v40  ;;  %3000 = vadd.xlane.f32.xlu1 %v2999_v13  ;;  %v2174_v35 = vadd.f32 %v5808_v4, %v5804_v49  ;;  %v1903_v10 = vpop.xlane.xlu1 %1902 }
 0x93c   : > { %6629 = vst [vmem:[#allocation60_spill] sm:$0xff] %v5815_v38  ;;  %v5820_v15 = vpop.eup %4110  ;;  %4130 = vpow2.f32 %v2902_v14  ;;  %v2088_v44 = vmul.f32 1.442695, %v1964_v43  ;;  %v1966_v9 = vsub.f32 %v6632_v29, %v1903_v10  ;;  %v1967_v52 = vsub.f32 %v6633_v3, %v1903_v10  ;;  %v6636_v14 = vld [vmem:[#allocation70_spill] sm:$0xff]  ;;  %v6638_v29 = vld [vmem:[#allocation72_spill] sm:$0xff] }
 0x93d   : > { %6631 = vst [vmem:[#allocation69_spill] sm:$0xff] %v5820_v15  ;;  %v5824_v5 = vpop.eup %4112  ;;  %4132 = vpow2.f32 %v2904_v28  ;;  %v2090_v41 = vmul.f32 1.442695, %v1965_v45  ;;  %2175 = vadd.xlane.f32.xlu0 %v2174_v35  ;;  %v2728_v46 = vpop.xlane.xlu0 %2727  ;;  %v2177_v40 = vadd.f32 %v5815_v38, %v5812_v24  ;;  %v6640_v24 = vld [vmem:[#allocation74_spill] sm:$0xff] }
 0x93e   : > { %6634 = vst [vmem:[#allocation71_spill] sm:$0xff] %v5824_v5  ;;  %v5828_v13 = vpop.eup %4114  ;;  %4134 = vpow2.f32 %v2088_v44  ;;  %v2092_v60 = vmul.f32 1.442695, %v1966_v9  ;;  %v2094_v49 = vmul.f32 1.442695, %v1967_v52  ;;  %v2802_v43 = vsub.f32 %v6636_v14, %v2728_v46  ;;  %v6641_v9 = vld [vmem:[#allocation76_spill] sm:$0xff] }
 0x93f   : > { %6635 = vst [vmem:[#allocation73_spill] sm:$0xff] %v5828_v13  ;;  %v5831_v4 = vpop.eup %4116  ;;  %4136 = vpow2.f32 %v2090_v41  ;;  %v2803_v10 = vsub.f32 %v6638_v29, %v2728_v46  ;;  %2178 = vadd.xlane.f32.xlu1 %v2177_v40  ;;  %v3002_v28 = vadd.f32 %v5824_v5, %v5820_v15  ;;  %v2731_v45 = vpop.xlane.xlu1 %2730 }
 0x940   : > { %6637 = vst [vmem:[#allocation75_spill] sm:$0xff] %v5831_v4  ;;  %v5836_v35 = vpop.eup %4118  ;;  %4138 = vpow2.f32 %v2092_v60  ;;  %v2906_v3 = vmul.f32 1.442695, %v2802_v43  ;;  %v2804_v44 = vsub.f32 %v6640_v24, %v2731_v45  ;;  %v2805_v52 = vsub.f32 %v6641_v9, %v2731_v45  ;;  %v6642_v60 = vld [vmem:[#allocation78_spill] sm:$0xff]  ;;  %v6643_v24 = vld [vmem:[#allocation80_spill] sm:$0xff] }
 0x941   : > { %6639 = vst [vmem:[#allocation62_spill] sm:$0xff] %v5836_v35  ;;  %v5840_v38 = vpop.eup %4120  ;;  %4140 = vpow2.f32 %v2094_v49  ;;  %v2908_v14 = vmul.f32 1.442695, %v2803_v10  ;;  %3003 = vadd.xlane.f32.xlu0 %v3002_v28  ;;  %v2734_v41 = vpop.xlane.xlu0 %2733  ;;  %v3005_v46 = vadd.f32 %v5831_v4, %v5828_v13  ;;  %v6645_v13 = vld [vmem:[#allocation82_spill] sm:$0xff] }
 0x942   : > { %v5844_v40 = vpop.eup %4122  ;;  %4142 = vpow2.f32 %v2906_v3  ;;  %v2910_v29 = vmul.f32 1.442695, %v2804_v44  ;;  %v2912_v15 = vmul.f32 1.442695, %v2805_v52  ;;  %v2806_v43 = vsub.f32 %v6642_v60, %v2734_v41  ;;  %v6646_v44 = vld [vmem:[#allocation84_spill] sm:$0xff] }
 0x943   : > { %v5847_v5 = vpop.eup %4124  ;;  %4144 = vpow2.f32 %v2908_v14  ;;  %v2807_v45 = vsub.f32 %v6643_v24, %v2734_v41  ;;  %3006 = vadd.xlane.f32.xlu1 %v3005_v46  ;;  %v2180_v49 = vadd.f32 %v5840_v38, %v5836_v35  ;;  %v2737_v10 = vpop.xlane.xlu1 %2736 }
 0x944   : > { %v5852_v28 = vpop.eup %4126  ;;  %4146 = vpow2.f32 %v2910_v29  ;;  %v2914_v9 = vmul.f32 1.442695, %v2806_v43  ;;  %v2808_v3 = vsub.f32 %v6645_v13, %v2737_v10  ;;  %v2809_v52 = vsub.f32 %v6646_v44, %v2737_v10 }
 0x945   : > { %6644 = vst [vmem:[#allocation64_spill] sm:$0xff] %v5852_v28  ;;  %v5856_v4 = vpop.eup %4128  ;;  %4148 = vpow2.f32 %v2912_v15  ;;  %v2916_v60 = vmul.f32 1.442695, %v2807_v45  ;;  %2181 = vadd.xlane.f32.xlu0 %v2180_v49  ;;  %v2740_v14 = vpop.xlane.xlu0 %2739  ;;  %v2183_v41 = vadd.f32 %v5847_v5, %v5844_v40 }
 0x946   : > { %v5860_v46 = vpop.eup %4130  ;;  %4150 = vpow2.f32 %v2914_v9  ;;  %v2918_v24 = vmul.f32 1.442695, %v2808_v3  ;;  %v2920_v35 = vmul.f32 1.442695, %v2809_v52  ;;  %v2810_v29 = vsub.f32 %v5408_v51, %v2740_v14  ;;  %v6647_v3 = vld [vmem:[#allocation86_spill] sm:$0xff] }
 0x947   : > { %v5863_v43 = vpop.eup %4132  ;;  %4152 = vpow2.f32 %v2916_v60  ;;  %v2811_v13 = vsub.f32 %v5410_v30, %v2740_v14  ;;  %2184 = vadd.xlane.f32.xlu1 %v2183_v41  ;;  %v3008_v15 = vadd.f32 %v5856_v4, %v5852_v28  ;;  %v2743_v45 = vpop.xlane.xlu1 %2742 }
 0x948   : > { %v5868_v49 = vpop.eup %4134  ;;  %4154 = vpow2.f32 %v2918_v24  ;;  %v2922_v10 = vmul.f32 1.442695, %v2810_v29  ;;  %v2812_v9 = vsub.f32 %v5416_v32, %v2743_v45  ;;  %v2813_v44 = vsub.f32 %v6647_v3, %v2743_v45 }
 0x949   : > { %v5872_v52 = vpop.eup %4136  ;;  %4156 = vpow2.f32 %v2920_v35  ;;  %v2924_v51 = vmul.f32 1.442695, %v2811_v13  ;;  %3009 = vadd.xlane.f32.xlu0 %v3008_v15  ;;  %v2746_v60 = vpop.xlane.xlu0 %2745  ;;  %v3011_v30 = vadd.f32 %v5863_v43, %v5860_v46 }
 0x94a   : > { %v5876_v14 = vpop.eup %4138  ;;  %4158 = vpow2.f32 %v2922_v10  ;;  %v2926_v41 = vmul.f32 1.442695, %v2812_v9  ;;  %v2928_v28 = vmul.f32 1.442695, %v2813_v44  ;;  %v2814_v24 = vsub.f32 %v5424_v63, %v2746_v60 }
 0x94b   : > { %v5879_v29 = vpop.eup %4140  ;;  %4160 = vpow2.f32 %v2924_v51  ;;  %v2815_v32 = vsub.f32 %v5426_v37, %v2746_v60  ;;  %3012 = vadd.xlane.f32.xlu1 %v3011_v30  ;;  %v2186_v35 = vadd.f32 %v5872_v52, %v5868_v49  ;;  %v2749_v13 = vpop.xlane.xlu1 %2748 }
 0x94c   : > { %v5884_v15 = vpop.eup %4142  ;;  %4162 = vpow2.f32 %v2926_v41  ;;  %v2930_v45 = vmul.f32 1.442695, %v2814_v24  ;;  %v2816_v10 = vsub.f32 %v5432_v58, %v2749_v13  ;;  %v2817_v9 = vsub.f32 %v5434_v6, %v2749_v13 }
 0x94d   : > { %6648 = vst [vmem:[#allocation66_spill] sm:$0xff] %v5884_v15  ;;  %v5888_v3 = vpop.eup %4144  ;;  %4164 = vpow2.f32 %v2928_v28  ;;  %v2932_v63 = vmul.f32 1.442695, %v2815_v32  ;;  %2187 = vadd.xlane.f32.xlu0 %v2186_v35  ;;  %v2189_v37 = vadd.f32 %v5879_v29, %v5876_v14 }
 0x94e   : > { %v5892_v44 = vpop.eup %4146  ;;  %4166 = vpow2.f32 %v2930_v45  ;;  %v2934_v51 = vmul.f32 1.442695, %v2816_v10  ;;  %v2936_v60 = vmul.f32 1.442695, %v2817_v9  ;;  %v3014_v30 = vadd.f32 %v5888_v3, %v5884_v15 }
 0x94f   : > { %6649 = vst [vmem:[#allocation68_spill] sm:$0xff] %v5892_v44  ;;  %v5896_v41 = vpop.eup %4148  ;;  %4168 = vpow2.f32 %v2932_v63  ;;  %2190 = vadd.xlane.f32.xlu1 %v2189_v37 }
 0x950   : > { %v5898_v58 = vpop.eup %4150  ;;  %4170 = vpow2.f32 %v2934_v51  ;;  %v3017_v6 = vadd.f32 %v5896_v41, %v5892_v44 }
 0x951   : > { %6650 = vst [vmem:[#allocation77_spill] sm:$0xff] %v5898_v58  ;;  %v5902_v28 = vpop.eup %4152  ;;  %4172 = vpow2.f32 %v2936_v60  ;;  %3015 = vadd.xlane.f32.xlu0 %v3014_v30  ;;  %v2098_v24 = vpop.xlane.xlu0 %2097 }
 0x952   : > { %6651 = vst [vmem:[#allocation79_spill] sm:$0xff] %v5902_v28  ;;  %v5904_v32 = vpop.eup %4154  ;;  %v3020_v35 = vadd.f32 %v5902_v28, %v5898_v58  ;;  %4174 = vrcp.f32 %v2098_v24 }
 0x953   : > { %6652 = vst [vmem:[#allocation81_spill] sm:$0xff] %v5904_v32  ;;  %v5908_v13 = vpop.eup %4156  ;;  %3018 = vadd.xlane.f32.xlu1 %v3017_v6  ;;  %v2101_v10 = vpop.xlane.xlu1 %2100 }
 0x954   : > { %6653 = vst [vmem:[#allocation83_spill] sm:$0xff] %v5908_v13  ;;  %v5910_v45 = vpop.eup %4158  ;;  %v3023_v9 = vadd.f32 %v5908_v13, %v5904_v32  ;;  %4176 = vrcp.f32 %v2101_v10 }
 0x955   : > { %6654 = vst [vmem:[#allocation70_spill] sm:$0xff] %v5910_v45  ;;  %v5914_v63 = vpop.eup %4160  ;;  %3021 = vadd.xlane.f32.xlu0 %v3020_v35  ;;  %v5916_v37 = vpop.xlane.xlu0 %2751 }
 0x956   : > { %6655 = vst [vmem:[#allocation72_spill] sm:$0xff] %v5914_v63  ;;  %v5918_v51 = vpop.eup %4162  ;;  %v3026_v60 = vadd.f32 %v5914_v63, %v5910_v45 }
 0x957   : > { %6656 = vst [vmem:[#allocation74_spill] sm:$0xff] %v5918_v51  ;;  %v5922_v30 = vpop.eup %4164  ;;  %3024 = vadd.xlane.f32.xlu1 %v3023_v9  ;;  %v2755_v24 = vpop.xlane.xlu1 %2754 }
 0x958   : > { %6657 = vst [vmem:[#allocation76_spill] sm:$0xff] %v5922_v30  ;;  %v5924_v6 = vpop.eup %4166  ;;  %v3029_v58 = vadd.f32 %v5922_v30, %v5918_v51  ;;  %v2820_v35 = vsub.f32 %v5454_v20, %v2755_v24  ;;  %v2821_v10 = vsub.f32 %v5460_v61, %v2755_v24 }
 0x959   : > { %6658 = vst [vmem:[#allocation78_spill] sm:$0xff] %v5924_v6  ;;  %v5928_v32 = vpop.eup %4168  ;;  %3027 = vadd.xlane.f32.xlu0 %v3026_v60  ;;  %v2104_v13 = vpop.xlane.xlu0 %2103 }
 0x95a   : > { %6659 = vst [vmem:[#allocation80_spill] sm:$0xff] %v5928_v32  ;;  %v5932_v28 = vpop.eup %4170  ;;  %v3032_v45 = vadd.f32 %v5928_v32, %v5924_v6  ;;  %v2942_v63 = vmul.f32 1.442695, %v2820_v35  ;;  %v2944_v44 = vmul.f32 1.442695, %v2821_v10  ;;  %4178 = vrcp.f32 %v2104_v13  ;;  %v6662_v13 = vld [vmem:[#allocation87_spill] sm:$0xff] }
 0x95b   : > { %6660 = vst [vmem:[#allocation82_spill] sm:$0xff] %v5932_v28  ;;  %v5936_v9 = vpop.eup %4172  ;;  %3030 = vadd.xlane.f32.xlu1 %v3029_v58  ;;  %v2107_v51 = vpop.xlane.xlu1 %2106  ;;  %v6663_v6 = vld [vmem:[#allocation90_spill] sm:$0xff] }
 0x95c   : > { %6661 = vst [vmem:[#allocation84_spill] sm:$0xff] %v5936_v9  ;;  %v3035_v30 = vadd.f32 %v5936_v9, %v5932_v28  ;;  %v4175_v20 = vpop.eup %4174  ;;  %4180 = vpow2.f32 %v2942_v63 }
 0x95d   : > { %3033 = vadd.xlane.f32.xlu0 %v3032_v45  ;;  %v5940_v61 = vpop.xlane.xlu0 %2757  ;;  %4182 = vpow2.f32 %v2944_v44  ;;  %v2225_v35 = vmul.f32 %v4175_v20, %v5444_v25  ;;  %v2224_v10 = vmul.f32 %v4175_v20, %v6662_v13 }
 0x95e   : > { %v4177_v60 = vpop.eup %4176  ;;  %4184 = vrcp.f32 %v2107_v51 }
 0x95f   : > { %3036 = vadd.xlane.f32.xlu1 %v3035_v30  ;;  %v5942_v24 = vpop.xlane.xlu1 %2760  ;;  %v2227_v58 = vmul.f32 %v4177_v60, %v5458_v62  ;;  %v2226_v32 = vmul.f32 %v4177_v60, %v6663_v6 }
 0x961   : > { %v2110_v28 = vpop.xlane.xlu0 %2109  ;;  %v2289_v9 = vpack.c.bf16 %v2227_v58, %v2225_v35  ;;  %v2288_v63 = vpack.c.bf16 %v2226_v32, %v2224_v10  ;;  %v6664_v32 = vld [vmem:[#allocation91_spill] sm:$0xff]  ;;  %v1093_v10 = vld [vmem:[%s6279_s6 + $0x58] sm:$0xff] }
 0x962   : > { %4186 = vrcp.f32 %v2110_v28 }
 0x963   : > { %2320 = vmatprep.subr.bf16.mxu1 %v2289_v9 }
 0x964   : > { %v2113_v45 = vpop.xlane.xlu1 %2112  ;;  %2321 = vmatpush1.bf16.xpose.msra.mxu1 %v2288_v63  ;;  %v4179_v44 = vpop.eup %4178 }
 0x965   : > { %4188 = vrcp.f32 %v2113_v45  ;;  %v2229_v6 = vmul.f32 %v4179_v44, %v5472_v31  ;;  %v2228_v9 = vmul.f32 %v4179_v44, %v6664_v32 }
 0x966   : > { %v5948_v51 = vpop.eup %4180 }
 0x967   : > { %v5950_v30 = vpop.eup %4182 }
 0x968   : > { %v4185_v25 = vpop.eup %4184  ;;  %v3041_v62 = vadd.f32 %v5950_v30, %v5948_v51 }
 0x969   : > { %v2116_v15 = vpop.xlane.xlu0 %2115  ;;  %v2231_v20 = vmul.f32 %v4185_v25, %v5486_v0  ;;  %v2230_v28 = vmul.f32 %v4185_v25, %v5476_v55 }
 0x96a   : > { %4190 = vrcp.f32 %v2116_v15  ;;  %3042 = vadd.xlane.f32.xlu1 %v3041_v62 }
 0x96b   : > { %v2291_v60 = vpack.c.bf16 %v2231_v20, %v2229_v6  ;;  %v2290_v58 = vpack.c.bf16 %v2230_v28, %v2228_v9 }
 0x96c   : > { %v2119_v35 = vpop.xlane.xlu1 %2118  ;;  %v4187_v13 = vpop.eup %4186 }
 0x96d   : > { %4192 = vrcp.f32 %v2119_v35  ;;  %2322 = vmatprep.subr.bf16.mxu1 %v2291_v60  ;;  %v2233_v0 = vmul.f32 %v4187_v13, %v5498_v42  ;;  %v2232_v55 = vmul.f32 %v4187_v13, %v5496_v33  ;;  %v6665_v33 = vld [vmem:[#allocation88_spill] sm:$0xff]  ;;  %v6666_v60 = vld [vmem:[#allocation89_spill] sm:$0xff] }
 0x96e   : > { %2323 = vmatpush1.bf16.xpose.msra.mxu1 %v2290_v58  ;;  %v2818_v9 = vsub.f32 %v6665_v33, %v5916_v37  ;;  %v2819_v35 = vsub.f32 %v6666_v60, %v5916_v37 }
 0x96f   : > { %v4189_v31 = vpop.eup %4188 }
 0x970   : > { %v2235_v45 = vmul.f32 %v4189_v31, %v5506_v34  ;;  %v2234_v15 = vmul.f32 %v4189_v31, %v5500_v56  ;;  %v1102_v56 = vld [vmem:[%s6279_s6 + $0xa0] sm:$0xff] }
 0x971   : > { %v2122_v63 = vpop.xlane.xlu0 %2121 }
 0x972   : > { %4194 = vrcp.f32 %v2122_v63  ;;  %v2293_v44 = vpack.c.bf16 %v2235_v45, %v2233_v0  ;;  %v2292_v62 = vpack.c.bf16 %v2234_v15, %v2232_v55  ;;  %v2938_v63 = vmul.f32 1.442695, %v2818_v9  ;;  %v6668_v45 = vld [vmem:[#allocation93_spill] sm:$0xff] }
 0x973   : > { %1163 = vperm.xlu0 %3900, %v1093_v10   ;;  %v2940_v0 = vmul.f32 1.442695, %v2819_v35 }
 0x974   : > { %v2125_v25 = vpop.xlane.xlu1 %2124  ;;  %v4191_v6 = vpop.eup %4190  ;;  %2324 = vmatprep.subr.bf16.mxu1 %v2293_v44 }
 0x975   : > { %4196 = vrcp.f32 %v2125_v25  ;;  %v2237_v32 = vmul.f32 %v4191_v6, %v5514_v57  ;;  %v2236_v28 = vmul.f32 %v4191_v6, %v5512_v54  ;;  %v2823_v54 = vsub.f32 %v6668_v45, %v5940_v61 }
 0x976   : > { %2325 = vmatpush1.bf16.xpose.msra.mxu1 %v2292_v62 }
 0x977   : > { %v4193_v20 = vpop.eup %4192  ;;  %v2948_v6 = vmul.f32 1.442695, %v2823_v54 }
 0x978   : > { %v2239_v42 = vmul.f32 %v4193_v20, %v5522_v11  ;;  %v2238_v34 = vmul.f32 %v4193_v20, %v5516_v53  ;;  %v6667_v11 = vld [vmem:[#allocation92_spill] sm:$0xff] }
 0x979   : > { %v2822_v10 = vsub.f32 %v6667_v11, %v5940_v61  ;;  %v2824_v61 = vsub.f32 %v5484_v39, %v5942_v24 }
 0x97a   : > { %v2128_v58 = vpop.xlane.xlu0 %2127  ;;  %v2295_v13 = vpack.c.bf16 %v2239_v42, %v2237_v32  ;;  %v2294_v57 = vpack.c.bf16 %v2238_v34, %v2236_v28 }
 0x97b   : > { %4198 = vrcp.f32 %v2128_v58  ;;  %1208 = vperm.xlu1 %3901, %v1102_v56   ;;  %v2946_v37 = vmul.f32 1.442695, %v2822_v10  ;;  %v2950_v33 = vmul.f32 1.442695, %v2824_v61 }
 0x97c   : > { %2326 = vmatprep.subr.bf16.mxu1 %v2295_v13  ;;  %v2131_v53 = vpop.xlane.xlu1 %2130  ;;  %v4195_v31 = vpop.eup %4194 }
 0x97d   : > { %4200 = vrcp.f32 %v2131_v53  ;;  %v2241_v15 = vmul.f32 %v4195_v31, %v5530_v19  ;;  %v2240_v62 = vmul.f32 %v4195_v31, %v5528_v21 }
 0x97e   : > { %2327 = vmatpush1.bf16.xpose.msra.mxu1 %v2294_v57  ;;  %4202 = vpow2.f32 %v2938_v63 }
 0x97f   : > { %v4197_v55 = vpop.eup %4196  ;;  %4204 = vpow2.f32 %v2940_v0 }
 0x980   : > { %v2243_v44 = vmul.f32 %v4197_v55, %v5538_v17  ;;  %v2242_v25 = vmul.f32 %v4197_v55, %v5532_v27  ;;  %v2825_v27 = vsub.f32 %v5488_v26, %v5942_v24 }
 0x982   : > { %v2956_v20 = vpop.xlane.xlu0 %2955  ;;  %v2297_v32 = vpack.c.bf16 %v2243_v44, %v2241_v15  ;;  %v2296_v42 = vpack.c.bf16 %v2242_v25, %v2240_v62  ;;  %v2952_v35 = vmul.f32 1.442695, %v2825_v27  ;;  %v6669_v27 = vld [vmem:[#allocation94_spill] sm:$0xff] }
 0x983   : > { %4206 = vrcp.f32 %v2956_v20 }
 0x984   : > { %4208 = vpow2.f32 %v2946_v37  ;;  %2328 = vmatprep.subr.bf16.mxu1 %v2297_v32  ;;  %v2959_v34 = vpop.xlane.xlu1 %2958 }
 0x985   : > { %v4199_v19 = vpop.eup %4198  ;;  %4210 = vrcp.f32 %v2959_v34 }
 0x986   : > { %4212 = vpow2.f32 %v2948_v6  ;;  %v2134_v17 = vpop.xlane.xlu0 %2133  ;;  %2329 = vmatpush1.bf16.xpose.msra.mxu1 %v2296_v42  ;;  %v2245_v56 = vmul.f32 %v4199_v19, %v5550_v16  ;;  %v2244_v60 = vmul.f32 %v4199_v19, %v5546_v23 }
 0x987   : > { %v4201_v21 = vpop.eup %4200  ;;  %4214 = vrcp.f32 %v2134_v17  ;;  %v6670_v17 = vld [vmem:[#allocation95_spill] sm:$0xff] }
 0x988   : > { %v2137_v9 = vpop.xlane.xlu1 %2136  ;;  %v2247_v28 = vmul.f32 %v4201_v21, %v5555_v50  ;;  %v2246_v39 = vmul.f32 %v4201_v21, %v5552_v22  ;;  %v5992_v57 = vpop.eup %4202 }
 0x989   : > { %4216 = vrcp.f32 %v2137_v9  ;;  %v5994_v24 = vpop.eup %4204 }
 0x98a   : > { %v2962_v58 = vpop.xlane.xlu0 %2961  ;;  %v2299_v13 = vpack.c.bf16 %v2247_v28, %v2245_v56  ;;  %v2298_v26 = vpack.c.bf16 %v2246_v39, %v2244_v60  ;;  %v3038_v23 = vadd.f32 %v5994_v24, %v5992_v57  ;;  %v6671_v28 = vld [vmem:[#allocation97_spill] sm:$0xff]  ;;  %v6672_v60 = vld [vmem:[#allocation99_spill] sm:$0xff] }
 0x98b   : > { %4218 = vrcp.f32 %v2962_v58  ;;  %v6673_v58 = vld [vmem:[#allocation96_spill] sm:$0xff] }
 0x98c   : > { %4220 = vpow2.f32 %v2950_v33  ;;  %2330 = vmatprep.subr.bf16.mxu1 %v2299_v13  ;;  %v2965_v11 = vpop.xlane.xlu1 %2964 }
 0x98d   : > { %v4207_v16 = vpop.eup %4206  ;;  %4222 = vrcp.f32 %v2965_v11 }
 0x98e   : > { %v5996_v50 = vpop.eup %4208  ;;  %4224 = vpow2.f32 %v2952_v35  ;;  %v2140_v22 = vpop.xlane.xlu0 %2139  ;;  %2331 = vmatpush1.bf16.xpose.msra.mxu1 %v2298_v26  ;;  %v3083_v63 = vmul.f32 %v4207_v16, %v5570_v36  ;;  %v3082_v45 = vmul.f32 %v4207_v16, %v5566_v48  ;;  %v6674_v26 = vld [vmem:[#allocation98_spill] sm:$0xff] }
 0x98f   : > { %v4211_v10 = vpop.eup %4210  ;;  %4226 = vrcp.f32 %v2140_v22 }
 0x990   : > { %v6000_v53 = vpop.eup %4212  ;;  %v2143_v31 = vpop.xlane.xlu1 %2142  ;;  %v3085_v0 = vmul.f32 %v4211_v10, %v5575_v2  ;;  %v3084_v54 = vmul.f32 %v4211_v10, %v5572_v12 }
 0x991   : > { %v4215_v55 = vpop.eup %4214  ;;  %4228 = vrcp.f32 %v2143_v31  ;;  %v3044_v62 = vadd.f32 %v6000_v53, %v5996_v50 }
 0x992   : > { %3039 = vadd.xlane.f32.xlu0 %v3038_v23  ;;  %v2968_v37 = vpop.xlane.xlu0 %2967  ;;  %v3147_v15 = vpack.c.bf16 %v3085_v0, %v3083_v63  ;;  %v3146_v44 = vpack.c.bf16 %v3084_v54, %v3082_v45  ;;  %v2249_v36 = vmul.f32 %v4215_v55, %v5584_v1  ;;  %v2248_v48 = vmul.f32 %v4215_v55, %v5580_v59  ;;  %v6675_v23 = vld [vmem:[#allocation101_spill] sm:$0xff]  ;;  %v6676_v63 = vld [vmem:[#allocation103_spill] sm:$0xff]  ;;  %v6677_v45 = vld [vmem:[#allocation100_spill] sm:$0xff] }
 0x993   : > { %v4217_v25 = vpop.eup %4216  ;;  %4230 = vrcp.f32 %v2968_v37  ;;  %v6678_v55 = vld [vmem:[#allocation102_spill] sm:$0xff] }
 0x994   : > { %3178 = vmatprep.subr.bf16.mxu0 %v3147_v15  ;;  %v2971_v6 = vpop.xlane.xlu1 %2970  ;;  %v2251_v2 = vmul.f32 %v4217_v25, %v5592_v8  ;;  %v2250_v12 = vmul.f32 %v4217_v25, %v5588_v7 }
 0x995   : > { %v4219_v20 = vpop.eup %4218  ;;  %4232 = vrcp.f32 %v2971_v6  ;;  %3179 = vmatpush1.bf16.xpose.msra.mxu0 %v3146_v44 }
 0x996   : > { %v6012_v32 = vpop.eup %4220  ;;  %3045 = vadd.xlane.f32.xlu0 %v3044_v62  ;;  %v2301_v42 = vpack.c.bf16 %v2251_v2, %v2249_v36  ;;  %v2300_v61 = vpack.c.bf16 %v2250_v12, %v2248_v48  ;;  %v3087_v1 = vmul.f32 %v4219_v20, %v5598_v47  ;;  %v3086_v59 = vmul.f32 %v4219_v20, %v6669_v27  ;;  %v1103_v2 = vld [vmem:[%s6279_s6 + $0xa8] sm:$0xff]  ;;  %v6679_v27 = vld [vmem:[#allocation22_spill] sm:$0xff] }
 0x997   : > { %v4223_v34 = vpop.eup %4222 }
 0x998   : > { %v6014_v19 = vpop.eup %4224  ;;  %2332 = vmatprep.subr.bf16.mxu1 %v2301_v42  ;;  %v3089_v8 = vmul.f32 %v4223_v34, %v5604_v18  ;;  %v3088_v7 = vmul.f32 %v4223_v34, %v6670_v17  ;;  %v1105_v42 = vld [vmem:[%s6279_s6 + $0xb8] sm:$0xff]  ;;  %v1104_v34 = vld [vmem:[%s6279_s6 + $0xb0] sm:$0xff]  ;;  %v6680_v17 = vld [vmem:[#allocation24_spill] sm:$0xff] }
 0x999   : > { %v4227_v21 = vpop.eup %4226  ;;  %2333 = vmatpush1.bf16.xpose.msra.mxu1 %v2300_v61  ;;  %v3047_v18 = vadd.f32 %v6014_v19, %v6012_v32 }
 0x99a   : > { %v3149_v33 = vpack.c.bf16 %v3089_v8, %v3087_v1  ;;  %v3148_v9 = vpack.c.bf16 %v3088_v7, %v3086_v59  ;;  %v2253_v39 = vmul.f32 %v4227_v21, %v6671_v28  ;;  %v2252_v13 = vmul.f32 %v4227_v21, %v6673_v58  ;;  %v6681_v21 = vld [vmem:[#allocation21_spill] sm:$0xff] }
 0x99b   : > { %v4229_v56 = vpop.eup %4228 }
 0x99c   : > { %3180 = vmatprep.subr.bf16.mxu0 %v3149_v33  ;;  %v2255_v35 = vmul.f32 %v4229_v56, %v6672_v60  ;;  %v2254_v47 = vmul.f32 %v4229_v56, %v6674_v26  ;;  %v6683_v26 = vld [vmem:[#allocation31_spill] sm:$0xff] }
 0x99d   : > { %v4231_v11 = vpop.eup %4230  ;;  %3181 = vmatpush1.bf16.xpose.msra.mxu0 %v3148_v9  ;;  %v6682_v9 = vld [vmem:[#allocation23_spill] sm:$0xff] }
 0x99e   : > { %v2303_v16 = vpack.c.bf16 %v2255_v35, %v2253_v39  ;;  %v2302_v22 = vpack.c.bf16 %v2254_v47, %v2252_v13  ;;  %v3091_v31 = vmul.f32 %v4231_v11, %v6675_v23  ;;  %v3090_v54 = vmul.f32 %v4231_v11, %v6677_v45  ;;  %v3412_v39 = vld [vmem:[%s6281_s8] sm:$0xff]  ;;  %v6686_v23 = vld [vmem:[#allocation34_spill] sm:$0xff] }
 0x99f   : > { %v4233_v10 = vpop.eup %4232  ;;  %3048 = vadd.xlane.f32.xlu1 %v3047_v18  ;;  %v6684_v18 = vld [vmem:[#allocation35_spill] sm:$0xff] }
 0x9a0   : > { %2334 = vmatprep.subr.bf16.mxu1 %v2303_v16  ;;  %v3093_v0 = vmul.f32 %v4233_v10, %v6676_v63  ;;  %v3092_v37 = vmul.f32 %v4233_v10, %v6678_v55 }
 0x9a1   : > { %2335 = vmatpush1.bf16.xpose.msra.mxu1 %v2302_v22  ;;  %v6685_v22 = vld [vmem:[#allocation30_spill] sm:$0xff] }
 0x9a2   : > { %v2146_v15 = vpop.xlane.xlu0 %2145  ;;  %v3151_v44 = vpack.c.bf16 %v3093_v0, %v3091_v31  ;;  %v3150_v25 = vpack.c.bf16 %v3092_v37, %v3090_v54  ;;  %v3413_v0 = vld [vmem:[%s6281_s8 + $0x8] sm:$0xff] }
 0x9a3   : > { %4234 = vrcp.f32 %v2146_v15  ;;  %v6687_v15 = vld [vmem:[#allocation26_spill] sm:$0xff] }
 0x9a4   : > { %3182 = vmatprep.subr.bf16.mxu0 %v3151_v44  ;;  %v2149_v62 = vpop.xlane.xlu1 %2148 }
 0x9a5   : > { %4236 = vrcp.f32 %v2149_v62  ;;  %3183 = vmatpush1.bf16.xpose.msra.mxu0 %v3150_v25  ;;  %v6688_v62 = vld [vmem:[#allocation28_spill] sm:$0xff] }
 0x9a6   : > { %v2974_v6 = vpop.xlane.xlu0 %2973 }
 0x9a7   : > { %4238 = vrcp.f32 %v2974_v6 }
 0x9a8   : > { %v2977_v36 = vpop.xlane.xlu1 %2976 }
 0x9a9   : > { %4240 = vrcp.f32 %v2977_v36  ;;  %v6689_v36 = vld [vmem:[#allocation25_spill] sm:$0xff] }
 0x9aa   : > { %v2152_v48 = vpop.xlane.xlu0 %2151 }
 0x9ab   : > { %4242 = vrcp.f32 %v2152_v48  ;;  %v6690_v48 = vld [vmem:[#allocation27_spill] sm:$0xff] }
 0x9ac   : > { %1213 = vperm.xlu0 %3900, %v1103_v2   ;;  %v2155_v12 = vpop.xlane.xlu1 %2154 }
 0x9ad   : > { %v4235_v20 = vpop.eup %4234  ;;  %4244 = vrcp.f32 %v2155_v12 }
 0x9ae   : > { %v2980_v61 = vpop.xlane.xlu0 %2979  ;;  %v2257_v59 = vmul.f32 %v4235_v20, %v6679_v27  ;;  %v2256_v33 = vmul.f32 %v4235_v20, %v6681_v21  ;;  %v6691_v27 = vld [vmem:[#allocation39_spill] sm:$0xff] }
 0x9af   : > { %v4237_v1 = vpop.eup %4236  ;;  %4246 = vrcp.f32 %v2980_v61 }
 0x9b0   : > { %1223 = vperm.xlu0 %3900, %v1105_v42   ;;  %v2983_v8 = vpop.xlane.xlu1 %2982  ;;  %v2259_v7 = vmul.f32 %v4237_v1, %v6680_v17  ;;  %v2258_v56 = vmul.f32 %v4237_v1, %v6682_v9  ;;  %1218 = vperm.xlu1 %3901, %v1104_v34   ;;  %v3414_v42 = vld [vmem:[%s6281_s8 + $0x10] sm:$0xff] }
 0x9b1   : > { %v4239_v28 = vpop.eup %4238  ;;  %4248 = vrcp.f32 %v2983_v8 }
 0x9b2   : > { %v2158_v60 = vpop.xlane.xlu0 %2157  ;;  %v2305_v35 = vpack.c.bf16 %v2259_v7, %v2257_v59  ;;  %v2304_v58 = vpack.c.bf16 %v2258_v56, %v2256_v33  ;;  %v3095_v47 = vmul.f32 %v4239_v28, %v6683_v26  ;;  %v3094_v10 = vmul.f32 %v4239_v28, %v6685_v22  ;;  %v6692_v7 = vld [vmem:[#allocation43_spill] sm:$0xff]  ;;  %v6693_v33 = vld [vmem:[#allocation38_spill] sm:$0xff] }
 0x9b3   : > { %v4241_v13 = vpop.eup %4240  ;;  %4250 = vrcp.f32 %v2158_v60  ;;  %v6694_v56 = vld [vmem:[#allocation42_spill] sm:$0xff] }
 0x9b4   : > { %3422 = vperm.xlu0 %3900, %v3412_v39   ;;  %2336 = vmatprep.subr.bf16.mxu1 %v2305_v35  ;;  %v2161_v11 = vpop.xlane.xlu1 %2160  ;;  %v3097_v16 = vmul.f32 %v4241_v13, %v6684_v18  ;;  %v3096_v31 = vmul.f32 %v4241_v13, %v6686_v23  ;;  %v3415_v60 = vld [vmem:[%s6281_s8 + $0x18] sm:$0xff] }
 0x9b5   : > { %v4243_v63 = vpop.eup %4242  ;;  %4252 = vrcp.f32 %v2161_v11  ;;  %2337 = vmatpush1.bf16.xpose.msra.mxu1 %v2304_v58 }
 0x9b6   : > { %v2986_v45 = vpop.xlane.xlu0 %2985  ;;  %v3153_v54 = vpack.c.bf16 %v3097_v16, %v3095_v47  ;;  %v3152_v55 = vpack.c.bf16 %v3096_v31, %v3094_v10  ;;  %v2261_v44 = vmul.f32 %v4243_v63, %v6687_v15  ;;  %v2260_v2 = vmul.f32 %v4243_v63, %v6689_v36  ;;  %v6695_v47 = vld [vmem:[#allocation32_spill] sm:$0xff]  ;;  %v6697_v10 = vld [vmem:[#allocation29_spill] sm:$0xff] }
 0x9b7   : > { %v4245_v37 = vpop.eup %4244  ;;  %4254 = vrcp.f32 %v2986_v45  ;;  %v6696_v16 = vld [vmem:[#allocation36_spill] sm:$0xff]  ;;  %v6698_v31 = vld [vmem:[#allocation33_spill] sm:$0xff]  ;;  %v3416_v45 = vld [vmem:[%s6281_s8 + $0x20] sm:$0xff] }
 0x9b8   : > { %3427 = vperm.xlu0 %3900, %v3413_v0   ;;  %3184 = vmatprep.subr.bf16.mxu0 %v3153_v54  ;;  %v2989_v25 = vpop.xlane.xlu1 %2988  ;;  %v2263_v6 = vmul.f32 %v4245_v37, %v6688_v62  ;;  %v2262_v12 = vmul.f32 %v4245_v37, %v6690_v48 }
 0x9b9   : > { %v4247_v20 = vpop.eup %4246  ;;  %4256 = vrcp.f32 %v2989_v25  ;;  %3185 = vmatpush1.bf16.xpose.msra.mxu0 %v3152_v55 }
 0x9ba   : > { %v2164_v61 = vpop.xlane.xlu0 %2163  ;;  %v2307_v34 = vpack.c.bf16 %v2263_v6, %v2261_v44  ;;  %v2306_v1 = vpack.c.bf16 %v2262_v12, %v2260_v2  ;;  %v3099_v59 = vmul.f32 %v4247_v20, %v6691_v27  ;;  %v3098_v9 = vmul.f32 %v4247_v20, %v6693_v33  ;;  %v6699_v44 = vld [vmem:[#allocation47_spill] sm:$0xff]  ;;  %v6701_v2 = vld [vmem:[#allocation46_spill] sm:$0xff] }
 0x9bb   : > { %v4249_v8 = vpop.eup %4248  ;;  %4258 = vrcp.f32 %v2164_v61  ;;  %v6700_v6 = vld [vmem:[#allocation51_spill] sm:$0xff]  ;;  %v6702_v12 = vld [vmem:[#allocation50_spill] sm:$0xff]  ;;  %v3417_v61 = vld [vmem:[%s6281_s8 + $0x28] sm:$0xff] }
 0x9bc   : > { %3432 = vperm.xlu0 %3900, %v3414_v42   ;;  %2338 = vmatprep.subr.bf16.mxu1 %v2307_v34  ;;  %v2167_v17 = vpop.xlane.xlu1 %2166  ;;  %v3101_v21 = vmul.f32 %v4249_v8, %v6692_v7  ;;  %v3100_v28 = vmul.f32 %v4249_v8, %v6694_v56 }
 0x9bd   : > { %v4251_v39 = vpop.eup %4250  ;;  %4260 = vrcp.f32 %v2167_v17  ;;  %2339 = vmatpush1.bf16.xpose.msra.mxu1 %v2306_v1 }
 0x9be   : > { %v2992_v35 = vpop.xlane.xlu0 %2991  ;;  %v3155_v58 = vpack.c.bf16 %v3101_v21, %v3099_v59  ;;  %v3154_v13 = vpack.c.bf16 %v3100_v28, %v3098_v9  ;;  %v2265_v11 = vmul.f32 %v4251_v39, %v6695_v47  ;;  %v2264_v23 = vmul.f32 %v4251_v39, %v6697_v10  ;;  %v6703_v59 = vld [vmem:[#allocation40_spill] sm:$0xff]  ;;  %v6705_v9 = vld [vmem:[#allocation37_spill] sm:$0xff] }
 0x9bf   : > { %v4253_v26 = vpop.eup %4252  ;;  %4262 = vrcp.f32 %v2992_v35  ;;  %v6704_v21 = vld [vmem:[#allocation44_spill] sm:$0xff]  ;;  %v6706_v28 = vld [vmem:[#allocation41_spill] sm:$0xff] }
 0x9c0   : > { %3437 = vperm.xlu0 %3900, %v3415_v60   ;;  %3186 = vmatprep.subr.bf16.mxu0 %v3155_v58  ;;  %v2995_v18 = vpop.xlane.xlu1 %2994  ;;  %v2267_v22 = vmul.f32 %v4253_v26, %v6696_v16  ;;  %v2266_v63 = vmul.f32 %v4253_v26, %v6698_v31  ;;  %v3418_v35 = vld [vmem:[%s6281_s8 + $0x30] sm:$0xff] }
 0x9c1   : > { %v4255_v0 = vpop.eup %4254  ;;  %4264 = vrcp.f32 %v2995_v18  ;;  %3187 = vmatpush1.bf16.xpose.msra.mxu0 %v3154_v13 }
 0x9c2   : > { %v2170_v54 = vpop.xlane.xlu0 %2169  ;;  %v2309_v55 = vpack.c.bf16 %v2267_v22, %v2265_v11  ;;  %v2308_v37 = vpack.c.bf16 %v2266_v63, %v2264_v23  ;;  %v3103_v25 = vmul.f32 %v4255_v0, %v6699_v44  ;;  %v3102_v48 = vmul.f32 %v4255_v0, %v6701_v2  ;;  %v6707_v11 = vld [vmem:[#allocation55_spill] sm:$0xff]  ;;  %v6709_v23 = vld [vmem:[#allocation53_spill] sm:$0xff] }
 0x9c3   : > { %v4257_v15 = vpop.eup %4256  ;;  %4266 = vrcp.f32 %v2170_v54  ;;  %v6708_v22 = vld [vmem:[#allocation59_spill] sm:$0xff]  ;;  %v6710_v63 = vld [vmem:[#allocation57_spill] sm:$0xff]  ;;  %v3419_v54 = vld [vmem:[%s6281_s8 + $0x38] sm:$0xff] }
 0x9c4   : > { %3442 = vperm.xlu0 %3900, %v3416_v45   ;;  %2340 = vmatprep.subr.bf16.mxu1 %v2309_v55  ;;  %v2173_v62 = vpop.xlane.xlu1 %2172  ;;  %v3105_v36 = vmul.f32 %v4257_v15, %v6700_v6  ;;  %v3104_v20 = vmul.f32 %v4257_v15, %v6702_v12 }
 0x9c5   : > { %v4259_v42 = vpop.eup %4258  ;;  %4268 = vrcp.f32 %v2173_v62  ;;  %2341 = vmatpush1.bf16.xpose.msra.mxu1 %v2308_v37 }
 0x9c6   : > { %v2998_v34 = vpop.xlane.xlu0 %2997  ;;  %v3157_v1 = vpack.c.bf16 %v3105_v36, %v3103_v25  ;;  %v3156_v8 = vpack.c.bf16 %v3104_v20, %v3102_v48  ;;  %v2269_v17 = vmul.f32 %v4259_v42, %v6703_v59  ;;  %v2268_v56 = vmul.f32 %v4259_v42, %v6705_v9  ;;  %v6711_v25 = vld [vmem:[#allocation48_spill] sm:$0xff]  ;;  %v6713_v48 = vld [vmem:[#allocation45_spill] sm:$0xff] }
 0x9c7   : > { %v4261_v27 = vpop.eup %4260  ;;  %4270 = vrcp.f32 %v2998_v34  ;;  %v6712_v36 = vld [vmem:[#allocation52_spill] sm:$0xff]  ;;  %v6714_v20 = vld [vmem:[#allocation49_spill] sm:$0xff] }
 0x9c8   : > { %3447 = vperm.xlu0 %3900, %v3417_v61   ;;  %3188 = vmatprep.subr.bf16.mxu0 %v3157_v1  ;;  %v3001_v7 = vpop.xlane.xlu1 %3000  ;;  %v2271_v33 = vmul.f32 %v4261_v27, %v6704_v21  ;;  %v2270_v39 = vmul.f32 %v4261_v27, %v6706_v28  ;;  %v3914_v61 = vld [vmem:[%s6280_s7] sm:$0xff]  }
 0x9c9   : > { %v4263_v60 = vpop.eup %4262  ;;  %4272 = vrcp.f32 %v3001_v7  ;;  %3189 = vmatpush1.bf16.xpose.msra.mxu0 %v3156_v8 }
 0x9ca   : > { %v2176_v58 = vpop.xlane.xlu0 %2175  ;;  %v2311_v13 = vpack.c.bf16 %v2271_v33, %v2269_v17  ;;  %v2310_v26 = vpack.c.bf16 %v2270_v39, %v2268_v56  ;;  %v3107_v18 = vmul.f32 %v4263_v60, %v6707_v11  ;;  %v3106_v31 = vmul.f32 %v4263_v60, %v6709_v23  ;;  %v6715_v17 = vld [vmem:[#allocation63_spill] sm:$0xff]  ;;  %v6717_v56 = vld [vmem:[#allocation61_spill] sm:$0xff] }
 0x9cb   : > { %v4265_v47 = vpop.eup %4264  ;;  %4274 = vrcp.f32 %v2176_v58  ;;  %v6716_v33 = vld [vmem:[#allocation67_spill] sm:$0xff]  ;;  %v6718_v39 = vld [vmem:[#allocation65_spill] sm:$0xff] }
 0x9cc   : > { %3452 = vperm.xlu0 %3900, %v3418_v35   ;;  %2342 = vmatprep.subr.bf16.mxu1 %v2311_v13  ;;  %v2179_v16 = vpop.xlane.xlu1 %2178  ;;  %v3109_v10 = vmul.f32 %v4265_v47, %v6708_v22  ;;  %v3108_v0 = vmul.f32 %v4265_v47, %v6710_v63  ;;  %v3915_v35 = vld [vmem:[%s6280_s7 + $0x8] sm:$0xff]  }
 0x9cd   : > { %v4267_v45 = vpop.eup %4266  ;;  %4276 = vrcp.f32 %v2179_v16  ;;  %2343 = vmatpush1.bf16.xpose.msra.mxu1 %v2310_v26 }
 0x9ce   : > { %v3004_v55 = vpop.xlane.xlu0 %3003  ;;  %v3159_v37 = vpack.c.bf16 %v3109_v10, %v3107_v18  ;;  %v3158_v15 = vpack.c.bf16 %v3108_v0, %v3106_v31  ;;  %v2273_v62 = vmul.f32 %v4267_v45, %v6711_v25  ;;  %v2272_v12 = vmul.f32 %v4267_v45, %v6713_v48  ;;  %v6719_v18 = vld [vmem:[#allocation56_spill] sm:$0xff]  ;;  %v6721_v31 = vld [vmem:[#allocation54_spill] sm:$0xff]  ;;  %v6725_v48 = vld [vmem:[#allocation69_spill] sm:$0xff] }
 0x9cf   : > { %v4269_v44 = vpop.eup %4268  ;;  %4278 = vrcp.f32 %v3004_v55  ;;  %v6720_v10 = vld [vmem:[#allocation60_spill] sm:$0xff]  ;;  %v6722_v0 = vld [vmem:[#allocation58_spill] sm:$0xff] }
 0x9d0   : > { %3457 = vperm.xlu0 %3900, %v3419_v54   ;;  %3190 = vmatprep.subr.bf16.mxu0 %v3159_v37  ;;  %v3007_v6 = vpop.xlane.xlu1 %3006  ;;  %v2275_v2 = vmul.f32 %v4269_v44, %v6712_v36  ;;  %v2274_v42 = vmul.f32 %v4269_v44, %v6714_v20  ;;  %v6724_v36 = vld [vmem:[#allocation75_spill] sm:$0xff]  ;;  %v6726_v20 = vld [vmem:[#allocation73_spill] sm:$0xff] }
 0x9d1   : > { %v4271_v34 = vpop.eup %4270  ;;  %4280 = vrcp.f32 %v3007_v6  ;;  %3191 = vmatpush1.bf16.xpose.msra.mxu0 %v3158_v15 }
 0x9d2   : > { %v2182_v1 = vpop.xlane.xlu0 %2181  ;;  %v2313_v8 = vpack.c.bf16 %v2275_v2, %v2273_v62  ;;  %v2312_v27 = vpack.c.bf16 %v2274_v42, %v2272_v12  ;;  %v3111_v7 = vmul.f32 %v4271_v34, %v6715_v17  ;;  %v3110_v28 = vmul.f32 %v4271_v34, %v6717_v56  ;;  %v6723_v62 = vld [vmem:[#allocation71_spill] sm:$0xff] }
 0x9d3   : > { %v4273_v59 = vpop.eup %4272  ;;  %4282 = vrcp.f32 %v2182_v1  ;;  %3279 = vxpose.xlu1.c.b16.start [1/4] (short) (narrow) %v3914_v61, 64 }
 0x9d4   : > { %2344 = vmatprep.subr.bf16.mxu1 %v2313_v8  ;;  %v2185_v21 = vpop.xlane.xlu1 %2184  ;;  %v3113_v9 = vmul.f32 %v4273_v59, %v6716_v33  ;;  %v3112_v60 = vmul.f32 %v4273_v59, %v6718_v39 }
 0x9d5   : > { %v4275_v58 = vpop.eup %4274  ;;  %4284 = vrcp.f32 %v2185_v21  ;;  %2345 = vmatpush1.bf16.xpose.msra.mxu1 %v2312_v27  ;;  %v6727_v21 = vld [vmem:[#allocation62_spill] sm:$0xff] }
 0x9d6   : > { %v3010_v13 = vpop.xlane.xlu0 %3009  ;;  %v3161_v26 = vpack.c.bf16 %v3113_v9, %v3111_v7  ;;  %v3160_v47 = vpack.c.bf16 %v3112_v60, %v3110_v28  ;;  %v2277_v16 = vmul.f32 %v4275_v58, %v6719_v18  ;;  %v2276_v63 = vmul.f32 %v4275_v58, %v6721_v31 }
 0x9d7   : > { %v4277_v11 = vpop.eup %4276  ;;  %4286 = vrcp.f32 %v3010_v13  ;;  %3280 = vxpose.xlu1.c.b16.cont [2/4] (short) (narrow) %v3915_v35, 64 }
 0x9d8   : > { %3192 = vmatprep.subr.bf16.mxu0 %v3161_v26  ;;  %v3013_v22 = vpop.xlane.xlu1 %3012  ;;  %v2279_v23 = vmul.f32 %v4277_v11, %v6720_v10  ;;  %v2278_v45 = vmul.f32 %v4277_v11, %v6722_v0  ;;  %v6728_v26 = vld [vmem:[#allocation64_spill] sm:$0xff] }
 0x9d9   : > { %v4279_v54 = vpop.eup %4278  ;;  %4288 = vrcp.f32 %v3013_v22  ;;  %3193 = vmatpush1.bf16.xpose.msra.mxu0 %v3160_v47 }
 0x9da   : > { %v2188_v55 = vpop.xlane.xlu0 %2187  ;;  %v2315_v37 = vpack.c.bf16 %v2279_v23, %v2277_v16  ;;  %v2314_v15 = vpack.c.bf16 %v2278_v45, %v2276_v63  ;;  %v3115_v6 = vmul.f32 %v4279_v54, %v6723_v62  ;;  %v3114_v12 = vmul.f32 %v4279_v54, %v6725_v48  ;;  %v6732_v48 = vld [vmem:[#allocation83_spill] sm:$0xff] }
 0x9db   : > { %v4281_v44 = vpop.eup %4280  ;;  %4290 = vrcp.f32 %v2188_v55 }
 0x9dc   : > { %2346 = vmatprep.subr.bf16.mxu1 %v2315_v37  ;;  %v2191_v25 = vpop.xlane.xlu1 %2190  ;;  %v3117_v2 = vmul.f32 %v4281_v44, %v6724_v36  ;;  %v3116_v42 = vmul.f32 %v4281_v44, %v6726_v20  ;;  %v6729_v37 = vld [vmem:[#allocation66_spill] sm:$0xff]  ;;  %v6730_v44 = vld [vmem:[#allocation68_spill] sm:$0xff]  ;;  %v6731_v36 = vld [vmem:[#allocation79_spill] sm:$0xff] }
 0x9dd   : > { %v4283_v61 = vpop.eup %4282  ;;  %4292 = vrcp.f32 %v2191_v25  ;;  %2347 = vmatpush1.bf16.xpose.msra.mxu1 %v2314_v15  ;;  %v6734_v20 = vld [vmem:[#allocation7_spill] sm:$0xff] }
 0x9de   : > { %v3016_v34 = vpop.xlane.xlu0 %3015  ;;  %v3163_v1 = vpack.c.bf16 %v3117_v2, %v3115_v6  ;;  %v3162_v8 = vpack.c.bf16 %v3116_v42, %v3114_v12  ;;  %v2281_v17 = vmul.f32 %v4283_v61, %v5840_v38  ;;  %v2280_v33 = vmul.f32 %v4283_v61, %v6727_v21 }
 0x9df   : > { %v4285_v27 = vpop.eup %4284  ;;  %4294 = vrcp.f32 %v3016_v34 }
 0x9e0   : > { %3194 = vmatprep.subr.bf16.mxu0 %v3163_v1  ;;  %v3019_v59 = vpop.xlane.xlu1 %3018  ;;  %v2283_v7 = vmul.f32 %v4285_v27, %v5847_v5  ;;  %v2282_v9 = vmul.f32 %v4285_v27, %v5844_v40 }
 0x9e1   : > { %v4287_v56 = vpop.eup %4286  ;;  %4296 = vrcp.f32 %v3019_v59  ;;  %3195 = vmatpush1.bf16.xpose.msra.mxu0 %v3162_v8  ;;  %v6735_v8 = vld [vmem:[#allocation8_spill] sm:$0xff]  ;;  %v6736_v59 = vld [vmem:[#allocation9_spill] sm:$0xff] }
 0x9e2   : > { %v3022_v28 = vpop.xlane.xlu0 %3021  ;;  %v2317_v39 = vpack.c.bf16 %v2283_v7, %v2281_v17  ;;  %v2316_v60 = vpack.c.bf16 %v2282_v9, %v2280_v33  ;;  %v3119_v13 = vmul.f32 %v4287_v56, %v5856_v4  ;;  %v3118_v5 = vmul.f32 %v4287_v56, %v6728_v26  ;;  %v6737_v7 = vld [vmem:[#allocation10_spill] sm:$0xff]  ;;  %v6738_v33 = vld [vmem:[#allocation81_spill] sm:$0xff]  ;;  %v6739_v56 = vld [vmem:[#allocation19_spill] sm:$0xff] }
 0x9e3   : > { %v4289_v35 = vpop.eup %4288  ;;  %4298 = vrcp.f32 %v3022_v28  ;;  %v6740_v28 = vld [vmem:[#allocation20_spill] sm:$0xff] }
 0x9e4   : > { %2348 = vmatprep.subr.bf16.mxu1 %v2317_v39  ;;  %v3025_v58 = vpop.xlane.xlu1 %3024  ;;  %v3121_v38 = vmul.f32 %v4289_v35, %v5863_v43  ;;  %v3120_v47 = vmul.f32 %v4289_v35, %v5860_v46  ;;  %v6741_v39 = vpack.c.bf16 %v6739_v56, %v6740_v28  ;;  %v6758_v28 = vld [vmem:[#allocation15_spill] sm:$0xff] }
 0x9e5   : > { %v4291_v11 = vpop.eup %4290  ;;  %4300 = vrcp.f32 %v3025_v58  ;;  %2349 = vmatpush1.bf16.xpose.msra.mxu1 %v2316_v60  ;;  %v6742_v60 = vld [vmem:[#allocation76_spill] sm:$0xff] }
 0x9e6   : > { %v3028_v40 = vpop.xlane.xlu0 %3027  ;;  %v3165_v18 = vpack.c.bf16 %v3121_v38, %v3119_v13  ;;  %v3164_v16 = vpack.c.bf16 %v3120_v47, %v3118_v5  ;;  %v2285_v10 = vmul.f32 %v4291_v11, %v5872_v52  ;;  %v2284_v43 = vmul.f32 %v4291_v11, %v5868_v49  ;;  %v6743_v38 = vld [vmem:[#allocation77_spill] sm:$0xff]  ;;  %v6744_v5 = vld [vmem:[#allocation72_spill] sm:$0xff] }
 0x9e7   : > { %v4293_v22 = vpop.eup %4292  ;;  %4302 = vrcp.f32 %v3028_v40 }
 0x9e8   : > { %3196 = vmatprep.subr.bf16.mxu0 %v3165_v18  ;;  %v3031_v23 = vpop.xlane.xlu1 %3030  ;;  %v2287_v4 = vmul.f32 %v4293_v22, %v5879_v29  ;;  %v2286_v31 = vmul.f32 %v4293_v22, %v5876_v14  ;;  %v6745_v22 = vld [vmem:[#allocation74_spill] sm:$0xff] }
 0x9e9   : > { %v4295_v63 = vpop.eup %4294  ;;  %4304 = vrcp.f32 %v3031_v23  ;;  %3197 = vmatpush1.bf16.xpose.msra.mxu0 %v3164_v16  ;;  %v6746_v23 = vld [vmem:[#allocation84_spill] sm:$0xff] }
 0x9ea   : > { %v2319_v46 = vpack.c.bf16 %v2287_v4, %v2285_v10  ;;  %v2318_v0 = vpack.c.bf16 %v2286_v31, %v2284_v43  ;;  %v3123_v55 = vmul.f32 %v4295_v63, %v5888_v3  ;;  %v3122_v15 = vmul.f32 %v4295_v63, %v6729_v37  ;;  %v3034_v49 = vpop.xlane.xlu0 %3033  ;;  %v6747_v43 = vld [vmem:[#allocation70_spill] sm:$0xff] }
 0x9eb   : > { %v4297_v45 = vpop.eup %4296  ;;  %v6748_v63 = vmov 0   ;;  %v6751_v37 = vld [vmem:[#allocation78_spill] sm:$0xff] }
 0x9ec   : > { %2350 = vmatprep.subr.bf16.mxu1 %v2319_v46  ;;  %v3037_v54 = vpop.xlane.xlu1 %3036  ;;  %v3125_v52 = vmul.f32 %v4297_v45, %v5896_v41  ;;  %v3124_v29 = vmul.f32 %v4297_v45, %v6730_v44  ;;  %v6733_v41 = vld [vmem:[#allocation85_spill] sm:$0xff]  ;;  %v6749_v46 = vld [vmem:[#allocation80_spill] sm:$0xff] }
 0x9ed   : > { %v4299_v25 = vpop.eup %4298  ;;  %2351 = vmatpush1.bf16.xpose.msra.mxu1 %v2318_v0  ;;  %4306 = vrcp.f32 %v3037_v54  ;;  %v1407_v42 = vadd.f32 %v6734_v20, %v6733_v41  ;;  %v1409_v27 = vadd.f32 %v6735_v8, %v6733_v41  ;;  %v6755_v8 = vld [vmem:[#allocation14_spill] sm:$0xff] }
 0x9ee   : > { %v3167_v14 = vpack.c.bf16 %v3125_v52, %v3123_v55  ;;  %v3166_v62 = vpack.c.bf16 %v3124_v29, %v3122_v15  ;;  %v3127_v2 = vmul.f32 %v4299_v25, %v6731_v36  ;;  %4308 = vrcp.f32 %v3034_v49  ;;  %v6750_v55 = vld [vmem:[#allocation82_spill] sm:$0xff]  ;;  %v6752_v36 = vld [vmem:[#allocation11_spill] sm:$0xff] }
 0x9ef   : > { %v4301_v6 = vpop.eup %4300  ;;  %v3126_v26 = vmul.f32 %v4299_v25, %v6743_v38 }
 0x9f0   : > { %3198 = vmatprep.subr.bf16.mxu0 %v3167_v14  ;;  %v3129_v12 = vmul.f32 %v4301_v6, %v6732_v48  ;;  %v3128_v9 = vmul.f32 %v4301_v6, %v6738_v33 }
 0x9f1   : > { %3199 = vmatpush1.bf16.xpose.msra.mxu0 %v3166_v62  ;;  %v4303_v3 = vpop.eup %4302 }
 0x9f2   : > { %v1164_v61 = vpop.permute.xlu0 %1163  ;;  %v3169_v34 = vpack.c.bf16 %v3129_v12, %v3127_v2  ;;  %v3131_v47 = vmul.f32 %v4303_v3, %v6744_v5  ;;  %v3168_v11 = vpack.c.bf16 %v3128_v9, %v3126_v26  ;;  %v3130_v31 = vmul.f32 %v4303_v3, %v6747_v43 }
 0x9f3   : > { %v4305_v1 = vpop.eup %4304  ;;  %v1411_v17 = vadd.f32 %v6736_v59, %v1164_v61  ;;  %v1413_v21 = vadd.f32 %v6737_v7, %v1164_v61 }
 0x9f4   : > { %2353 = vmatmul.mubr.bf16.vlgmr.msra.gmra.mrb[92].mxu1 %v6741_v39  ;;  %3200 = vmatprep.subr.bf16.mxu0 %v3169_v34  ;;  %v3133_v35 = vmul.f32 %v4305_v1, %v6742_v60  ;;  %v3132_v10 = vmul.f32 %v4305_v1, %v6745_v22  ;;  %v6754_v34 = vld [vmem:[#allocation13_spill] sm:$0xff]  ;;  %v6759_v60 = vld [vmem:[#allocation16_spill] sm:$0xff] }
 0x9f5   : > { %v1485_v58 = vpack.c.bf16 %v1411_v17, %v1407_v42  ;;  %v1486_v13 = vpack.c.bf16 %v1413_v21, %v1409_v27  ;;  %v6753_v42 = vld [vmem:[#allocation12_spill] sm:$0xff]  ;;  %v3916_v22 = vld [vmem:[%s6280_s7 + $0x10] sm:$0xff]  }
 0x9f6   : > { %v3171_v40 = vpack.c.bf16 %v3133_v35, %v3131_v47  ;;  %v3170_v45 = vpack.c.bf16 %v3132_v10, %v3130_v31  ;;  %3281 = vxpose.xlu1.c.b16.cont [3/4] (short) (narrow) %v3916_v22, 64 }
 0x9f7   : > { %2362 = vmatprep.mubr.bf16.mxu1 %v1486_v13  ;;  %v4307_v18 = vpop.eup %4306  ;;  %v3043_v29 = vpop.xlane.xlu1 %3042 }
 0x9f8   : > { %v4309_v16 = vpop.eup %4308  ;;  %v3137_v4 = vmul.f32 %v4307_v18, %v6746_v23  ;;  %v3136_v52 = vmul.f32 %v4307_v18, %v6750_v55  ;;  %4310 = vrcp.f32 %v3043_v29 }
 0x9f9   : > { %3201 = vmatpush1.bf16.xpose.msra.mxu0 %v3168_v11  ;;  %v3135_v0 = vmul.f32 %v4309_v16, %v6749_v46  ;;  %v3134_v15 = vmul.f32 %v4309_v16, %v6751_v37 }
 0x9fa   : > { %3202 = vmatprep.subr.bf16.mxu0 %v3171_v40 }
 0x9fb   : > { %v3173_v54 = vpack.c.bf16 %v3137_v4, %v3135_v0  ;;  %v3172_v44 = vpack.c.bf16 %v3136_v52, %v3134_v15  ;;  %v1209_v49 = vpop.permute.xlu1 %1208 }
 0x9fc   : > { %2363 = vmatmul.mubr.bf16.gmra.mrb[96].mxu1 %v1485_v58  ;;  %v1457_v2 = vadd.f32 %v6752_v36, %v1209_v49  ;;  %v1459_v61 = vadd.f32 %v6753_v42, %v1209_v49 }
 0x9fd   : > { %3339 = vmatprep.mubr.bf16.mxu1 %v6748_v63 }
 0xa01   : > { %3203 = vmatpush1.bf16.xpose.msra.mxu0 %v3170_v45 }
 0xa02   : > { %3204 = vmatprep.subr.bf16.mxu0 %v3173_v54  ;;  %v4311_v62 = vpop.eup %4310 }
 0xa03   : > { %v3141_v3 = vmul.f32 %v4311_v62, %v5950_v30  ;;  %v3140_v20 = vmul.f32 %v4311_v62, %v5948_v51  ;;  %v6756_v30 = vld [vmem:[#allocation17_spill] sm:$0xff] }
 0xa09   : > { %3205 = vmatpush1.bf16.xpose.msra.mxu0 %v3172_v44 }
 0xa1f   : > { %v3040_v25 = vpop.xlane.xlu0 %3039 }
 0xa20   : > { %4312 = vrcp.f32 %v3040_v25 }
 0xa23   : > { %v3046_v14 = vpop.xlane.xlu0 %3045 }
 0xa24   : > { %4314 = vrcp.f32 %v3046_v14 }
 0xa2a   : > { %v4313_v6 = vpop.eup %4312 }
 0xa2b   : > { %v1214_v48 = vpop.permute.xlu0 %1213  ;;  %v3139_v12 = vmul.f32 %v4313_v6, %v5994_v24  ;;  %v3138_v41 = vmul.f32 %v4313_v6, %v5992_v57  ;;  %v6757_v57 = vld [vmem:[#allocation18_spill] sm:$0xff] }
 0xa2c   : > { %v1461_v1 = vadd.f32 %v6754_v34, %v1214_v48  ;;  %v1463_v27 = vadd.f32 %v6755_v8, %v1214_v48  ;;  %v3049_v59 = vpop.xlane.xlu1 %3048  ;;  %v3381_v34 = vld [vmem:[%s4489_s25 + $0x8] sm:$0xff]  ;;  %v3382_v8 = vld [vmem:[%s4489_s25 + $0x10] sm:$0xff] }
 0xa2d   : > { %v3175_v17 = vpack.c.bf16 %v3141_v3, %v3139_v12  ;;  %v3174_v7 = vpack.c.bf16 %v3140_v20, %v3138_v41  ;;  %4316 = vrcp.f32 %v3049_v59 }
 0xa2e   : > { %v1495_v21 = vpack.c.bf16 %v1461_v1, %v1457_v2  ;;  %v1496_v33 = vpack.c.bf16 %v1463_v27, %v1459_v61  ;;  %v4315_v38 = vpop.eup %4314  ;;  %v3380_v61 = vld [vmem:[%s4489_s25] sm:$0xff] }
 0xa2f   : > { %v1224_v24 = vpop.permute.xlu0 %1223  ;;  %3206 = vmatprep.subr.bf16.mxu0 %v3175_v17  ;;  %v3143_v5 = vmul.f32 %v4315_v38, %v6000_v53  ;;  %v3142_v11 = vmul.f32 %v4315_v38, %v5996_v50  ;;  %v3917_v53 = vld [vmem:[%s6280_s7 + $0x18] sm:$0xff]  }
 0xa30   : > { %v1471_v9 = vadd.f32 %v6756_v30, %v1224_v24  ;;  %v1473_v56 = vadd.f32 %v6757_v57, %v1224_v24  ;;  %3207 = vmatpush1.bf16.xpose.msra.mxu0 %v3174_v7  ;;  %3210 = vmatprep.mubr.bf16.mxu0 %v1496_v33  ;;  %v1219_v51 = vpop.permute.xlu1 %1218  ;;  %v3383_v17 = vld [vmem:[%s4489_s25 + $0x18] sm:$0xff] }
 0xa31   : > { %v1467_v39 = vadd.f32 %v6758_v28, %v1219_v51  ;;  %v1469_v35 = vadd.f32 %v6759_v60, %v1219_v51  ;;  %3282 = vxpose.xlu1.c.b16.end [4/4] (short) (narrow) %v3917_v53, 64  ;;  %v3384_v28 = vld [vmem:[%s4489_s25 + $0x20] sm:$0xff]  ;;  %v3387_v38 = vld [vmem:[%s4489_s25 + $0x38] sm:$0xff] }
 0xa33   : > { %v1497_v58 = vpack.c.bf16 %v1471_v9, %v1467_v39  ;;  %v1498_v13 = vpack.c.bf16 %v1473_v56, %v1469_v35  ;;  %v3423_v41 = vpop.permute.xlu0 %3422  ;;  %v3385_v39 = vld [vmem:[%s4489_s25 + $0x28] sm:$0xff]  ;;  %v3386_v35 = vld [vmem:[%s4489_s25 + $0x30] sm:$0xff] }
 0xa37   : > { %v4317_v26 = vpop.eup %4316  ;;  %v3428_v20 = vpop.permute.xlu0 %3427 }
 0xa38   : > { %v3145_v47 = vmul.f32 %v4317_v26, %v6014_v19  ;;  %v3144_v40 = vmul.f32 %v4317_v26, %v6012_v32 }
 0xa3a   : > { %v3177_v18 = vpack.c.bf16 %v3145_v47, %v3143_v5  ;;  %v3176_v16 = vpack.c.bf16 %v3144_v40, %v3142_v11 }
 0xa3b   : > { %v3433_v42 = vpop.permute.xlu0 %3432 }
 0xa3c   : > { %3208 = vmatprep.subr.bf16.mxu0 %v3177_v18 }
 0xa3d   : > { %3209 = vmatpush1.bf16.xpose.msra.mxu0 %v3176_v16 }
 0xa3f   : > { %v3438_v30 = vpop.permute.xlu0 %3437 }
 0xa43   : > { %v3443_v26 = vpop.permute.xlu0 %3442 }
 0xa44   : > { %3211 = vmatmul.mubr.bf16.vlgmr.msra.gmra.mrb[108].mxu0 %v1495_v21 }
 0xa45   : > { %3220 = vmatprep.mubr.bf16.mxu0 %v1498_v13 }
 0xa4c   : > { %3221 = vmatmul.mubr.bf16.gmra.mrb[112].mxu0 %v1497_v58 }
 0xa8b   : > { %v3287_v2 = vpop.trf.xlu1 }
 0xa8f   : > { %v3288_v48 = vpop.trf.xlu1 }
 0xa93   : > { %v3289_v12 = vpop.trf.xlu1 }
 0xa97   : > { %v3290_v3 = vpop.trf.xlu1 }
 0xac7   : > { %v2354_v50 = vpop.f32.mrb[92].mxu1 }
 0xac8   : > { %v2356_v19 = vpop.f32.mrb[93].mxu1 }
 0xac9   : > { %v2358_v32 = vpop.f32.mrb[94].mxu1 }
 0xaca   : > { %v2373_v10 = vpack.c.bf16 %v2358_v32, %v2354_v50  ;;  %v2360_v23 = vpop.f32.mrb[95].mxu1  ;;  %v3389_v32 = vld [vmem:[%s4489_s25 + $0x48] sm:$0xff] }
 0xacb   : > { %v2374_v4 = vpack.c.bf16 %v2360_v23, %v2356_v19  ;;  %v3388_v19 = vld [vmem:[%s4489_s25 + $0x40] sm:$0xff] }
 0xacd   : > { %3307 = vmatprep.subr.bf16.mxu1 %v2374_v4  ;;  %v3390_v4 = vld [vmem:[%s4489_s25 + $0x50] sm:$0xff] }
 0xace   : > { %3308 = vmatpush1.bf16.msra.mxu1 %v2373_v10  ;;  %v3448_v10 = vpop.permute.xlu0 %3447 }
 0xacf   : > { %v2364_v43 = vpop.f32.mrb[96].mxu1 }
 0xad0   : > { %v2366_v31 = vpop.f32.mrb[97].mxu1 }
 0xad1   : > { %v2368_v46 = vpop.f32.mrb[98].mxu1 }
 0xad2   : > { %v2375_v0 = vpack.c.bf16 %v2368_v46, %v2364_v43  ;;  %v2370_v45 = vpop.f32.mrb[99].mxu1  ;;  %v3391_v46 = vld [vmem:[%s4489_s25 + $0x58] sm:$0xff] }
 0xad3   : > { %v2376_v54 = vpack.c.bf16 %v2370_v45, %v2366_v31 }
 0xad5   : > { %3309 = vmatprep.subr.bf16.mxu1 %v2376_v54 }
 0xad6   : > { %3310 = vmatpush1.bf16.msra.mxu1 %v2375_v0 }
 0xb17   : > { %v3212_v55 = vpop.f32.mrb[108].mxu0 }
 0xb18   : > { %v3214_v52 = vpop.f32.mrb[109].mxu0 }
 0xb19   : > { %v3216_v37 = vpop.f32.mrb[110].mxu0 }
 0xb1a   : > { %v3231_v15 = vpack.c.bf16 %v3216_v37, %v3212_v55  ;;  %v3218_v44 = vpop.f32.mrb[111].mxu0 }
 0xb1b   : > { %v3232_v29 = vpack.c.bf16 %v3218_v44, %v3214_v52 }
 0xb1d   : > { %3311 = vmatprep.subr.bf16.mxu1 %v3232_v29  ;;  %v3453_v29 = vpop.permute.xlu0 %3452 }
 0xb1e   : > { %3312 = vmatpush1.bf16.msra.mxu1 %v3231_v15 }
 0xb1f   : > { %v3222_v25 = vpop.f32.mrb[112].mxu0 }
 0xb20   : > { %v3224_v49 = vpop.f32.mrb[113].mxu0 }
 0xb21   : > { %v3226_v14 = vpop.f32.mrb[114].mxu0 }
 0xb22   : > { %v3233_v62 = vpack.c.bf16 %v3226_v14, %v3222_v25  ;;  %v3228_v6 = vpop.f32.mrb[115].mxu0  ;;  %v3393_v14 = vld [vmem:[%s4489_s25 + $0x68] sm:$0xff] }
 0xb23   : > { %v3234_v36 = vpack.c.bf16 %v3228_v6, %v3224_v49  ;;  %v3392_v49 = vld [vmem:[%s4489_s25 + $0x60] sm:$0xff]  ;;  %v3394_v6 = vld [vmem:[%s4489_s25 + $0x70] sm:$0xff] }
 0xb25   : > { %3313 = vmatprep.subr.bf16.mxu1 %v3234_v36 }
 0xb26   : > { %3314 = vmatpush1.bf16.msra.mxu1 %v3233_v62 }
 0xb29   : > { %3659 = vmatmul.mubr.msk.bf16.vlgmr.msra.gmra.mrb[100].mxu1 %vm376_vm0, %v3287_v2 }
 0xb2a   : > { %3349 = vmatprep.mubr.bf16.mxu1 %v6748_v63 }
 0xb31   : > { %3660 = vmatmul.mubr.msk.bf16.gmra.mrb[104].mxu1 %vm376_vm0, %v3288_v48  ;;  %v3395_v48 = vld [vmem:[%s4489_s25 + $0x78] sm:$0xff]  ;;  %s6223_s25 = scalar_lea.hbm %s6282_s9, %s3669_s27 }
 0xb32   : > { %3359 = vmatprep.mubr.bf16.mxu1 %v6748_v63 }
 0xb39   : > { %3661 = vmatmul.mubr.msk.bf16.gmra.mrb[108].mxu1 %vm376_vm0, %v3289_v12 }
 0xb3a   : > { %3369 = vmatprep.mubr.bf16.mxu1 %v6748_v63 }
 0xb41   : > { %3662 = vmatmul.mubr.msk.bf16.gmra.mrb[112].mxu1 %vm376_vm0, %v3290_v3 }
 0xbfc   : > { %v3341_v1 = vpop.f32.mrb[100].mxu1 }
 0xbfd   : > { %v3396_v27 = vadd.f32 %v3380_v61, %v3341_v1  ;;  %v3343_v59 = vpop.f32.mrb[101].mxu1  ;;  %v3458_v61 = vpop.permute.xlu0 %3457 }
 0xbfe   : > { %v3397_v7 = vadd.f32 %v3381_v34, %v3343_v59  ;;  %v3345_v63 = vpop.f32.mrb[102].mxu1 }
 0xbff   : > { %v3460_v21 = vadd.f32 %v3423_v41, %v3396_v27  ;;  %v3398_v33 = vadd.f32 %v3382_v8, %v3345_v63  ;;  %v3347_v24 = vpop.f32.mrb[103].mxu1 }
 0xc00   : > { %v3461_v9 = vadd.f32 %v3423_v41, %v3397_v7  ;;  %v3399_v57 = vadd.f32 %v3383_v17, %v3347_v24 }
 0xc01   : > { %3476 = vst [vmem:[%s6191_s26] sm:$0xff] %v3460_v21  ;;  %v3462_v56 = vadd.f32 %v3428_v20, %v3398_v33 }
 0xc02   : > { %3477 = vst [vmem:[%s6191_s26 + $0x8] sm:$0xff] %v3461_v9  ;;  %v3463_v51 = vadd.f32 %v3428_v20, %v3399_v57 }
 0xc03   : > { %3478 = vst [vmem:[%s6191_s26 + $0x10] sm:$0xff] %v3462_v56 }
 0xc04   : > { %3479 = vst [vmem:[%s6191_s26 + $0x18] sm:$0xff] %v3463_v51  ;;  %v3351_v60 = vpop.f32.mrb[104].mxu1 }
 0xc05   : > { %v3400_v58 = vadd.f32 %v3384_v28, %v3351_v60  ;;  %v3353_v13 = vpop.f32.mrb[105].mxu1 }
 0xc06   : > { %v3401_v5 = vadd.f32 %v3385_v39, %v3353_v13  ;;  %v3355_v47 = vpop.f32.mrb[106].mxu1 }
 0xc07   : > { %v3464_v11 = vadd.f32 %v3433_v42, %v3400_v58  ;;  %v3402_v40 = vadd.f32 %v3386_v35, %v3355_v47  ;;  %v3357_v18 = vpop.f32.mrb[107].mxu1 }
 0xc08   : > { %v3465_v16 = vadd.f32 %v3433_v42, %v3401_v5  ;;  %v3403_v22 = vadd.f32 %v3387_v38, %v3357_v18 }
 0xc09   : > { %3480 = vst [vmem:[%s6191_s26 + $0x20] sm:$0xff] %v3464_v11  ;;  %v3466_v53 = vadd.f32 %v3438_v30, %v3402_v40 }
 0xc0a   : > { %3481 = vst [vmem:[%s6191_s26 + $0x28] sm:$0xff] %v3465_v16  ;;  %v3467_v50 = vadd.f32 %v3438_v30, %v3403_v22 }
 0xc0b   : > { %3482 = vst [vmem:[%s6191_s26 + $0x30] sm:$0xff] %v3466_v53 }
 0xc0c   : > { %3483 = vst [vmem:[%s6191_s26 + $0x38] sm:$0xff] %v3467_v50  ;;  %v3361_v23 = vpop.f32.mrb[108].mxu1 }
 0xc0d   : > { %v3404_v43 = vadd.f32 %v3388_v19, %v3361_v23  ;;  %v3363_v31 = vpop.f32.mrb[109].mxu1 }
 0xc0e   : > { %v3405_v0 = vadd.f32 %v3389_v32, %v3363_v31  ;;  %v3365_v45 = vpop.f32.mrb[110].mxu1 }
 0xc0f   : > { %v3468_v54 = vadd.f32 %v3443_v26, %v3404_v43  ;;  %v3406_v55 = vadd.f32 %v3390_v4, %v3365_v45  ;;  %v3367_v52 = vpop.f32.mrb[111].mxu1 }
 0xc10   : > { %v3469_v37 = vadd.f32 %v3443_v26, %v3405_v0  ;;  %v3407_v15 = vadd.f32 %v3391_v46, %v3367_v52 }
 0xc11   : > { %3484 = vst [vmem:[%s6191_s26 + $0x40] sm:$0xff] %v3468_v54  ;;  %v3470_v44 = vadd.f32 %v3448_v10, %v3406_v55 }
 0xc12   : > { %3485 = vst [vmem:[%s6191_s26 + $0x48] sm:$0xff] %v3469_v37  ;;  %v3471_v25 = vadd.f32 %v3448_v10, %v3407_v15 }
 0xc13   : > { %3486 = vst [vmem:[%s6191_s26 + $0x50] sm:$0xff] %v3470_v44 }
 0xc14   : > { %3487 = vst [vmem:[%s6191_s26 + $0x58] sm:$0xff] %v3471_v25  ;;  %v3371_v62 = vpop.f32.mrb[112].mxu1 }
 0xc15   : > { %v3408_v36 = vadd.f32 %v3392_v49, %v3371_v62  ;;  %v3373_v2 = vpop.f32.mrb[113].mxu1 }
 0xc16   : > { %v3409_v12 = vadd.f32 %v3393_v14, %v3373_v2  ;;  %v3375_v3 = vpop.f32.mrb[114].mxu1 }
 0xc17   : > { %v3472_v41 = vadd.f32 %v3453_v29, %v3408_v36  ;;  %v3410_v20 = vadd.f32 %v3394_v6, %v3375_v3  ;;  %v3377_v42 = vpop.f32.mrb[115].mxu1 }
 0xc18   : > { %v3473_v34 = vadd.f32 %v3453_v29, %v3409_v12  ;;  %v3411_v1 = vadd.f32 %v3395_v48, %v3377_v42 }
 0xc19   : > { %3488 = vst [vmem:[%s6191_s26 + $0x60] sm:$0xff] %v3472_v41  ;;  %v3474_v8 = vadd.f32 %v3458_v61, %v3410_v20 }
 0xc1a   : > { %3489 = vst [vmem:[%s6191_s26 + $0x68] sm:$0xff] %v3473_v34  ;;  %v3475_v27 = vadd.f32 %v3458_v61, %v3411_v1 }
 0xc1b   : > { %3490 = vst [vmem:[%s6191_s26 + $0x70] sm:$0xff] %v3474_v8 }
 0xc1c   : > { %3491 = vst [vmem:[%s6191_s26 + $0x78] sm:$0xff] %v3475_v27 }
 0xc1d   : > { %4331 = shalt.err (!%p4328_p3)
}
 0xc1e   : > { %s4332_s23 = scalar_lea.hbm %s6223_s25, 2048  ;;  %s4336_s27 = scalar_lea.hbm %s6282_s9, 4096 }
 0xc1f   : > { %p4333_p4 = scmp.ne.s32.totalorder %s6223_s25, %s4332_s23  ;;  %p4337_p9 = scmp.lt.u32.totalorder %s6223_s25, %s6282_s9 }
 0xc20   : > { %p4338_p10 = scmp.lt.u32.totalorder %s4336_s27, %s4332_s23  ;;  %p4340_p12 = scmp.lt.u32.totalorder %s4332_s23, %s6223_s25 }
 0xc21   : > { %p4334_p7 = pnand %p4333_p4, %p4474_p5 }
 0xc22   : > { %p4339_p11 = por %p4338_p10, %p4337_p9 }
 0xc23   : > { %p4335_p8 = pneg %p4334_p7 }
 0xc24   : > { %p4341_p13 = por %p4340_p12, %p4339_p11 }
 0xc26   : > { %p4342_p0 = pnand %p4341_p13, %p4335_p8 }
 0xc28   : > { %4345 = shalt.err (!%p4342_p0)
}
 0xc29   : > { %s4384_s16 = smov 256   ;;  %s4385_s17 = smov 16  }
 0xc2a   : > { %3858 = dma.vmem_to_hbm [thread:$0]  (%p4474_p5), %s6225_s28, 2048, %s6223_s25, %s6232_s13, %s4384_s16, %s4384_s16, %s4385_s17  }
 0xc2b PF: > { %p3864_p1 = scmp.ge.s32.totalorder %s4380_s12, 2  ;;  %s3521_s21 = sand.u32 1, %s4368_s30  }
 0xc2c   : > { %s3522_s22 = scalar_lea.sflag [#allocation5], %s3521_s21 }
 0xc2d   : > { %p3861_p2 = pnand %p3864_p1, %p4478_p6 }
 0xc2f   : > { %4363 = dma.done.wait (!%p3861_p2), %s3522_s22, 2048  }
 0xc30   : > { %4365 = vsyncadd (!%p3861_p2), %s3522_s22, 4294965248  ;;  %p19_p3 = scmp.ge.s32.totalorder %s4461_s15, 4   ;;  %s6760_s30 = smov %s4372_s10 }
 0xc31   : > { %s6761_s10 = smov %s4376_s11  ;;  %s6762_s11 = smov %s4472_s18 }
 0xc32   : > { %s6763_s12 = smov %s4461_s15  ;;  %21 = sbr.rel (!%p19_p3) target bundleno = 3 (0x3), region = 91 }
 0xc39   :  { %3527 = vsyncpa [#allocation5], 1 }
 0xc3a   :  { %3529 = vsyncpa [#allocation5 + $0x1], 1 }

</bundles_post_ra>
